<compile_context>
chip_gen: v7x
topology: tpu7x:2x2x1
jax: 0.10.0
libtpu: 0.0.40
codegen_flags: <defaults>
</compile_context>

<pallas_src>
import functools

import jax
import jax.numpy as jnp
from jax import lax
from jax.experimental import pallas as pl
from jax.experimental.pallas import tpu as pltpu

LANE = 128                                # channel axes padded to the TPU lane width
_EPS = 1e-5
_VMEM_LIMIT = 48 * 1024 * 1024            # <= v7x physical 64 MiB, with headroom
_VMEM_BUDGET = 24 * 1024 * 1024           # target working set for row-tile selection


def _round_up(x, m):
    return (x + m - 1) // m * m


def _pick_row_tile(h, w, c_in, c_out, itemsize):
    """Largest divisor of H whose estimated per-tile VMEM working set fits the budget."""
    best = 1
    for tr in range(1, h + 1):
        if h % tr:
            continue
        if tr * w > 4096:                                    # keep the MXU M dim reasonable
            continue
        need = (2 * (tr + 2) * (w + 2) * c_in * itemsize     # double-buffered input window
                + 2 * tr * w * c_out * itemsize              # double-buffered output tile
                + tr * w * (c_out * 4 + c_in * itemsize)     # f32 accumulator + tap operand
                + 2 * 9 * c_in * c_out * itemsize)           # weights
        if need <= _VMEM_BUDGET:
            best = tr
    return best
    # TODO(synk): support a masked ragged last tile so TR is not restricted to divisors of H.


# ------------------------------ kernels ------------------------------
def _conv3x3_stats_kernel(x_hbm, w_ref, aff_ref, y_ref, stats_ref, xbuf, sem,
                          *, apply_input_act):
    """One (batch, row-tile) step: 3x3 same conv + per-tile BN partial statistics.

    x_hbm    : (N, H, W, Cin)       stage input, left in HBM (pl.ANY), row windows DMA'd
    w_ref    : (9*Cin, Cout)        conv weights, (kh, kw, cin) flattened along K
    aff_ref  : (2, Cin)             [scale; shift] of the previous stage's BN (used iff
                                    apply_input_act: input read becomes max(x*s+t, 0))
    y_ref    : (TR, W, Cout)        raw (pre-BN) conv output tile
    stats_ref: (2, Cout)            per-tile per-channel [sum; sum of squares]
    xbuf     : (2, TR+2, W+2, Cin)  VMEM double buffer; columns 0 / W+1 are the zero
                                    column-halo, rows 0 / TR+1 the row-halo
    sem      : (2, 3)               DMA semaphores (slot x {top, center, bottom})
    """
    _, h, w_img, cin = x_hbm.shape
    tr, _, cout = y_ref.shape
    b = pl.program_id(0)
    i = pl.program_id(1)
    rt = pl.num_programs(1)
    slot = i & 1

    def tile_copies(idx, sl):
        r0 = idx * tr
        top = jnp.maximum(r0 - 1, 0)                 # clamped halo rows (zeroed at borders)
        bot = jnp.minimum(r0 + tr, h - 1)
        return (
            pltpu.make_async_copy(x_hbm.at[b, pl.ds(top, 1)],
                                  xbuf.at[sl, pl.ds(0, 1), pl.ds(1, w_img)],
                                  sem.at[sl, 0]),
            pltpu.make_async_copy(x_hbm.at[b, pl.ds(r0, tr)],
                                  xbuf.at[sl, pl.ds(1, tr), pl.ds(1, w_img)],
                                  sem.at[sl, 1]),
            pltpu.make_async_copy(x_hbm.at[b, pl.ds(bot, 1)],
                                  xbuf.at[sl, pl.ds(tr + 1, 1), pl.ds(1, w_img)],
                                  sem.at[sl, 2]),
        )

    # First tile of every image is fetched here (row axis is "arbitrary", so every batch
    # element always starts at i == 0 on whichever core runs it).
    @pl.when(i == 0)
    def _():
        for c in tile_copies(0, 0):
            c.start()

    # Prefetch the next row tile into the other slot before we wait / compute on this one.
    @pl.when(i + 1 < rt)
    def _():
        for c in tile_copies(i + 1, 1 - slot):
            c.start()

    for c in tile_copies(i, slot):
        c.wait()

    # Fused previous-stage BatchNorm + ReLU, applied in f32 to the real (interior) columns
    # and written back to the buffer in the matmul dtype (one cast per slab).
    if apply_input_act:
        raw = xbuf[slot, :, pl.ds(1, w_img), :].astype(jnp.float32)
        act = jnp.maximum(raw * aff_ref[0:1, :] + aff_ref[1:2, :], 0.0)
        xbuf[slot, :, pl.ds(1, w_img), :] = act.astype(xbuf.dtype)

    # Zero-pad the halo: the two edge columns always (DMA never writes them), the halo rows
    # only at the image border.  Done after the affine so it cannot leak into the padding.
    zcol = jnp.zeros((tr + 2, 1, cin), xbuf.dtype)
    xbuf[slot, :, pl.ds(0, 1), :] = zcol
    xbuf[slot, :, pl.ds(w_img + 1, 1), :] = zcol

    @pl.when(i == 0)
    def _():
        xbuf[slot, pl.ds(0, 1), :, :] = jnp.zeros((1, w_img + 2, cin), xbuf.dtype)

    @pl.when(i == rt - 1)
    def _():
        xbuf[slot, pl.ds(tr + 1, 1), :, :] = jnp.zeros((1, w_img + 2, cin), xbuf.dtype)

    # 3x3 conv as 9 per-tap accumulated MXU matmuls (K = Cin per tap, f32 accumulation).
    acc = jnp.zeros((tr * w_img, cout), jnp.float32)
    for kh in range(3):
        for kw in range(3):
            lhs = xbuf[slot, pl.ds(kh, tr), pl.ds(kw, w_img), :].reshape(tr * w_img, cin)
            rhs = w_ref[pl.ds((kh * 3 + kw) * cin, cin), :]
            acc = acc + jnp.dot(lhs, rhs, preferred_element_type=jnp.float32)

    y_ref[...] = acc.reshape(tr, w_img, cout).astype(y_ref.dtype)
    s = jnp.sum(acc, axis=0, keepdims=True)
    ss = jnp.sum(acc * acc, axis=0, keepdims=True)
    stats_ref[...] = jnp.concatenate([s, ss], axis=0)


def _bn_relu_unpad_kernel(y_ref, aff_ref, o_ref):
    """Final-stage epilogue: per-channel affine (BN) + ReLU, dropping the channel padding."""
    cr = o_ref.shape[-1]
    y = y_ref[...][:, :, :cr].astype(jnp.float32)
    o_ref[...] = jnp.maximum(y * aff_ref[0:1, :] + aff_ref[1:2, :], 0.0)


# --------------------------- pallas wrappers ---------------------------
def _conv3x3_stats(x, w2d, aff, *, apply_input_act, tr):
    n, h, w, cin = x.shape
    cout = w2d.shape[1]
    rt = h // tr
    # Row axis must stay "arbitrary": the scratch double-buffer carries a prefetch from row
    # tile i to i+1 within one image.  Batch axis is "parallel" (megacore-friendly).
    # TODO(synk): for N == 1 on v7x, split the row axis across the two TensorCores instead.
    return pl.pallas_call(
        functools.partial(_conv3x3_stats_kernel, apply_input_act=apply_input_act),
        grid=(n, rt),
        in_specs=[
            pl.BlockSpec(memory_space=pl.ANY),                        # input stays in HBM
            pl.BlockSpec((9 * cin, cout), lambda b, i: (0, 0)),
            pl.BlockSpec((2, cin), lambda b, i: (0, 0)),
        ],
        out_specs=[
            pl.BlockSpec((None, tr, w, cout), lambda b, i: (b, i, 0, 0)),
            pl.BlockSpec((None, None, 2, cout), lambda b, i: (b, i, 0, 0)),
        ],
        out_shape=[
            jax.ShapeDtypeStruct((n, h, w, cout), x.dtype),           # raw conv output
            jax.ShapeDtypeStruct((n, rt, 2, cout), jnp.float32),      # per-tile BN partials
        ],
        scratch_shapes=[
            pltpu.VMEM((2, tr + 2, w + 2, cin), x.dtype),             # row window, 2 slots
            pltpu.SemaphoreType.DMA((2, 3)),
        ],
        compiler_params=pltpu.CompilerParams(
            dimension_semantics=("parallel", "arbitrary"),
            vmem_limit_bytes=_VMEM_LIMIT),
    )(x, w2d, aff)


def _bn_affine(stats, gamma, beta, count):
    """Reduce per-tile (sum, sumsq) to per-channel BN scale/shift (training-mode stats)."""
    s = jnp.sum(stats, axis=(0, 1))                                   # (2, C)
    mean = s[0] / count
    var = jnp.maximum(s[1] / count - mean * mean, 0.0)                # biased variance
    scale = gamma * lax.rsqrt(var + _EPS)
    shift = beta - mean * scale
    return jnp.stack([scale, shift], axis=0)                          # (2, C), f32


def _bn_relu_unpad(y, aff, *, tr):
    n, h, w, c2 = y.shape
    cr = aff.shape[1]
    rt = h // tr
    return pl.pallas_call(
        _bn_relu_unpad_kernel,
        grid=(n, rt),
        in_specs=[pl.BlockSpec((None, tr, w, c2), lambda b, i: (b, i, 0, 0)),
                  pl.BlockSpec((2, cr), lambda b, i: (0, 0))],
        out_specs=pl.BlockSpec((None, tr, w, cr), lambda b, i: (b, i, 0, 0)),
        out_shape=jax.ShapeDtypeStruct((n, h, w, cr), jnp.float32),
        compiler_params=pltpu.CompilerParams(
            dimension_semantics=("parallel", "parallel"),
            vmem_limit_bytes=_VMEM_LIMIT),
    )(y, aff)


def double_conv(x_nchw, params, *, compute_dtype=jnp.bfloat16):
    """DoubleConv forward (training-mode BatchNorm).  NCHW in / NCHW out (f32).

    compute_dtype=bfloat16 (default): bf16 MXU operands + bf16 HBM intermediates with f32
    accumulation / BN math -- the fast path on v5e/v6e/v7x.
    compute_dtype=float32: bit-faithful path matching the PyTorch module numerics.
    """
    n, cin, h, w = x_nchw.shape
    cout = params["w1"].shape[-1]
    c1 = _round_up(cin, LANE)
    c2 = _round_up(cout, LANE)
    # TODO(synk): for small-channel stems (Cin/Cout < 64) keep the HBM activations at the
    # real channel count (pad only inside VMEM) to avoid inflating HBM traffic.
    itemsize = jnp.dtype(compute_dtype).itemsize
    tr = _pick_row_tile(h, w, max(c1, c2), c2, itemsize)

    # NCHW -> NHWC (channels on the 128-lane axis), pad channels, cast once.
    x = jnp.transpose(x_nchw, (0, 2, 3, 1)).astype(compute_dtype)
    x = jnp.pad(x, ((0, 0), (0, 0), (0, 0), (0, c1 - cin)))

    # Conv weights (HWIO) -> (9*Cin_pad, Cout_pad) in the compute dtype.
    w1 = jnp.pad(params["w1"], ((0, 0), (0, 0), (0, c1 - cin), (0, c2 - cout)))
    w1 = w1.reshape(9 * c1, c2).astype(compute_dtype)
    w2 = jnp.pad(params["w2"], ((0, 0), (0, 0), (0, c2 - cout), (0, c2 - cout)))
    w2 = w2.reshape(9 * c2, c2).astype(compute_dtype)
    # gamma/beta zero-padded: padded channels get scale=0, shift=0 and stay exactly zero.
    g1 = jnp.pad(params["g1"].astype(jnp.float32), (0, c2 - cout))
    be1 = jnp.pad(params["beta1"].astype(jnp.float32), (0, c2 - cout))
    g2 = jnp.pad(params["g2"].astype(jnp.float32), (0, c2 - cout))
    be2 = jnp.pad(params["beta2"].astype(jnp.float32), (0, c2 - cout))
    # Conv biases (params["b1"], params["b2"]) cancel exactly under training-mode BatchNorm
    # (mean subtraction), so they are intentionally not computed.
    # TODO(synk): PyTorch-style running_mean/running_var updates are not produced here.

    count = n * h * w
    no_aff = jnp.zeros((2, c1), jnp.float32)          # stage-1 input has no prior BN

    # Stage 1: conv1 + per-tile BN1 partial statistics.
    y1, st1 = _conv3x3_stats(x, w1, no_aff, apply_input_act=False, tr=tr)
    aff1 = _bn_affine(st1, g1, be1, count)
    # Stage 2: BN1+ReLU fused into the input read; conv2 + per-tile BN2 partial statistics.
    y2, st2 = _conv3x3_stats(y1, w2, aff1, apply_input_act=True, tr=tr)
    aff2 = _bn_affine(st2, g2, be2, count)
    # Final BN2 + ReLU epilogue, fused with dropping the channel padding.
    out = _bn_relu_unpad(y2, aff2[:, :cout], tr=tr)   # (N, H, W, cout), f32
    # TODO(synk): for W >= 128 the epilogue could emit NCHW directly (W on the lane axis)
    # and fold this transpose into the kernel as well.
    return jnp.transpose(out, (0, 3, 1, 2))           # NHWC -> NCHW


# --------------------------- pure-JAX reference ---------------------------
def _ref_stage(x_nhwc, w_hwio, b, gamma, beta):
    y = lax.conv_general_dilated(
        x_nhwc, w_hwio, window_strides=(1, 1), padding="SAME",
        dimension_numbers=("NHWC", "HWIO", "NHWC"),
        precision=lax.Precision.HIGHEST) + b
    mean = jnp.mean(y, axis=(0, 1, 2), keepdims=True)
    var = jnp.mean((y - mean) ** 2, axis=(0, 1, 2), keepdims=True)
    return jnp.maximum((y - mean) * lax.rsqrt(var + _EPS) * gamma + beta, 0.0)


def _ref_double_conv(x_nchw, params):
    a = jnp.transpose(x_nchw, (0, 2, 3, 1)).astype(jnp.float32)
    a = _ref_stage(a, params["w1"], params["b1"], params["g1"], params["beta1"])
    a = _ref_stage(a, params["w2"], params["b2"], params["g2"], params["beta2"])
    return jnp.transpose(a, (0, 3, 1, 2))


if __name__ == "__main__":
    key = jax.random.PRNGKey(0)
    in_ch, out_ch = 4, 8
    N, H, W = 2, 16, 16
    ks = jax.random.split(key, 5)

    x = jax.random.normal(ks[0], (N, in_ch, H, W), jnp.float32)

    # Synthetic parameters following nn.Conv2d / nn.BatchNorm2d shapes (weights in HWIO).
    params = {
        "w1": 0.1 * jax.random.normal(ks[1], (3, 3, in_ch, out_ch), jnp.float32),
        "b1": 0.05 * jax.random.normal(ks[2], (out_ch,), jnp.float32),
        "g1": jnp.ones((out_ch,), jnp.float32),
        "beta1": jnp.zeros((out_ch,), jnp.float32),
        "w2": 0.1 * jax.random.normal(ks[3], (3, 3, out_ch, out_ch), jnp.float32),
        "b2": 0.05 * jax.random.normal(ks[4], (out_ch,), jnp.float32),
        "g2": jnp.ones((out_ch,), jnp.float32),
        "beta2": jnp.zeros((out_ch,), jnp.float32),
    }

    ref = _ref_double_conv(x, params)

    # 1) bit-faithful f32 path vs the PyTorch-equivalent reference.
    run_f32 = jax.jit(functools.partial(double_conv, compute_dtype=jnp.float32))
    out32 = jax.block_until_ready(run_f32(x, params))
    assert out32.shape == (N, out_ch, H, W)
    assert jnp.allclose(out32, ref, atol=1e-3, rtol=1e-3), \
        float(jnp.max(jnp.abs(out32 - ref)))

    # 2) default bf16 fast path (bf16 MXU operands + bf16 intermediates, f32 BN math):
    #    looser sanity tolerance vs the f32 reference.
    run_bf16 = jax.jit(double_conv)
    out16 = jax.block_until_ready(run_bf16(x, params))
    assert out16.shape == (N, out_ch, H, W)
    assert jnp.allclose(out16, ref, atol=1e-1, rtol=1e-1), \
        float(jnp.max(jnp.abs(out16 - ref)))

    print("KERNEL_OK")
</pallas_src>

<mosaic_0001>
module attributes {stable_mosaic.version = 11 : i64} {
  func.func @_bn_relu_unpad_kernel(%arg0: i32, %arg1: i32, %arg2: memref<1x16x16x128xf32, #tpu.memory_space<vmem>>, %arg3: memref<2x8xf32, #tpu.memory_space<vmem>>, %arg4: memref<1x16x16x8xf32, #tpu.memory_space<vmem>>) attributes {dimension_semantics = [#tpu.dimension_semantics<parallel>, #tpu.dimension_semantics<parallel>], iteration_bounds = array<i64: 2, 1>, scalar_prefetch = 0 : i64, scratch_operands = 0 : i64, tpu.core_type = #tpu.core_type<tc>, window_params = [{transform_indices = @transform_0, window_bounds = array<i64: 1, 16, 16, 128>}, {pipeline_mode = #tpu.pipeline_mode<synchronous>, transform_indices = @transform_1, window_bounds = array<i64: 2, 8>}, {transform_indices = @transform_2, window_bounds = array<i64: 1, 16, 16, 8>}]} {
    %c0 = arith.constant 0 : index
    %c0_0 = arith.constant 0 : index
    %c0_1 = arith.constant 0 : index
    %c0_2 = arith.constant 0 : index
    %0 = vector.load %arg2[%c0, %c0_0, %c0_1, %c0_2] : memref<1x16x16x128xf32, #tpu.memory_space<vmem>>, vector<1x16x16x128xf32>
    %1 = vector.shape_cast %0 : vector<1x16x16x128xf32> to vector<16x16x128xf32>
    %2 = vector.extract_strided_slice %1 {offsets = [0, 0, 0], sizes = [16, 16, 8], strides = [1, 1, 1]} : vector<16x16x128xf32> to vector<16x16x8xf32>
    %c0_3 = arith.constant 0 : index
    %c0_4 = arith.constant 0 : index
    %3 = vector.load %arg3[%c0_3, %c0_4] : memref<2x8xf32, #tpu.memory_space<vmem>>, vector<1x8xf32>
    %4 = vector.shape_cast %3 : vector<1x8xf32> to vector<1x1x8xf32>
    %5 = vector.broadcast %4 : vector<1x1x8xf32> to vector<16x16x8xf32>
    %6 = arith.mulf %2, %5 : vector<16x16x8xf32>
    %c1 = arith.constant 1 : index
    %c0_5 = arith.constant 0 : index
    %7 = vector.load %arg3[%c1, %c0_5] : memref<2x8xf32, #tpu.memory_space<vmem>>, vector<1x8xf32>
    %8 = vector.shape_cast %7 : vector<1x8xf32> to vector<1x1x8xf32>
    %9 = vector.broadcast %8 : vector<1x1x8xf32> to vector<16x16x8xf32>
    %10 = arith.addf %6, %9 : vector<16x16x8xf32>
    %cst = arith.constant 0.000000e+00 : f32
    %11 = vector.broadcast %cst : f32 to vector<16x16x8xf32>
    %12 = arith.maximumf %10, %11 : vector<16x16x8xf32>
    %c0_6 = arith.constant 0 : index
    %c0_7 = arith.constant 0 : index
    %c0_8 = arith.constant 0 : index
    %c0_9 = arith.constant 0 : index
    %13 = vector.load %arg4[%c0_6, %c0_7, %c0_8, %c0_9] : memref<1x16x16x8xf32, #tpu.memory_space<vmem>>, vector<1x16x16x8xf32>
    %14 = vector.shape_cast %13 : vector<1x16x16x8xf32> to vector<16x16x8xf32>
    %15 = vector.shape_cast %12 : vector<16x16x8xf32> to vector<1x16x16x8xf32>
    tpu.vector_store %arg4[%c0_6, %c0_7, %c0_8, %c0_9], %15 {strides = array<i32>} : memref<1x16x16x8xf32, #tpu.memory_space<vmem>>, vector<1x16x16x8xf32>,
    return
  }
  func.func @transform_0(%arg0: i32, %arg1: i32) -> (i32, i32, i32, i32) {
    %c0_i32 = arith.constant 0 : i32
    %c0_i32_0 = arith.constant 0 : i32
    %c0_i32_1 = arith.constant 0 : i32
    return %arg0, %arg1, %c0_i32, %c0_i32_0 : i32, i32, i32, i32
  }
  func.func @transform_1(%arg0: i32, %arg1: i32) -> (i32, i32) {
    %c0_i32 = arith.constant 0 : i32
    %c0_i32_0 = arith.constant 0 : i32
    %c0_i32_1 = arith.constant 0 : i32
    return %c0_i32, %c0_i32_0 : i32, i32
  }
  func.func @transform_2(%arg0: i32, %arg1: i32) -> (i32, i32, i32, i32) {
    %c0_i32 = arith.constant 0 : i32
    %c0_i32_0 = arith.constant 0 : i32
    %c0_i32_1 = arith.constant 0 : i32
    return %arg0, %arg1, %c0_i32, %c0_i32_0 : i32, i32, i32, i32
  }
}

module attributes {stable_mosaic.version = 11 : i64} {
  func.func @_conv3x3_stats_kernel(%arg0: i32, %arg1: i32, %arg2: memref<2x16x16x128xf32, #tpu.memory_space<any>>, %arg3: memref<1152x128xf32, #tpu.memory_space<vmem>>, %arg4: memref<2x128xf32, #tpu.memory_space<vmem>>, %arg5: memref<1x16x16x128xf32, #tpu.memory_space<vmem>>, %arg6: memref<1x1x2x128xf32, #tpu.memory_space<vmem>>, %arg7: memref<2x18x18x128xf32, #tpu.memory_space<vmem>>, %arg8: memref<2x3x!tpu.dma_semaphore, #tpu.memory_space<semaphore_mem>>) attributes {dimension_semantics = [#tpu.dimension_semantics<parallel>, #tpu.dimension_semantics<arbitrary>], iteration_bounds = array<i64: 2, 1>, scalar_prefetch = 0 : i64, scratch_operands = 2 : i64, tpu.core_type = #tpu.core_type<tc>, window_params = [{}, {pipeline_mode = #tpu.pipeline_mode<synchronous>, transform_indices = @transform_1, window_bounds = array<i64: 1152, 128>}, {pipeline_mode = #tpu.pipeline_mode<synchronous>, transform_indices = @transform_2, window_bounds = array<i64: 2, 128>}, {transform_indices = @transform_3, window_bounds = array<i64: 1, 16, 16, 128>}, {transform_indices = @transform_4, window_bounds = array<i64: 1, 1, 2, 128>}]} {
    %c1_i32 = arith.constant 1 : i32
    %0 = arith.andi %arg1, %c1_i32 : i32
    %c0_i32 = arith.constant 0 : i32
    %1 = arith.cmpi eq, %arg1, %c0_i32 : i32
    %2 = arith.extui %1 : i1 to i32
    %c0_i32_0 = arith.constant 0 : i32
    %3 = arith.cmpi ne, %2, %c0_i32_0 : i32
    scf.if %3 {
      %c-1_i32 = arith.constant -1 : i32
      %c0_i32_97 = arith.constant 0 : i32
      %140 = arith.maxsi %c-1_i32, %c0_i32_97 : i32
      %c16_i32_98 = arith.constant 16 : i32
      %c15_i32_99 = arith.constant 15 : i32
      %141 = arith.minsi %c16_i32_98, %c15_i32_99 : i32
      %c0_i32_100 = arith.constant 0 : i32
      %c0_i32_101 = arith.constant 0 : i32
      %c0_i32_102 = arith.constant 0 : i32
      %c0_i32_103 = arith.constant 0 : i32
      %c0_i32_104 = arith.constant 0 : i32
      %142 = tpu.memref_slice %arg2[%arg0, %140, %c0_i32_103, %c0_i32_104] : memref<2x16x16x128xf32, #tpu.memory_space<any>> -> memref<1x1x16x128xf32, #tpu.memory_space<any>>
      %143 = tpu.memref_squeeze %142 : memref<1x1x16x128xf32, #tpu.memory_space<any>> -> memref<1x16x128xf32, #tpu.memory_space<any>>
      %c0_i32_105 = arith.constant 0 : i32
      %c1_i32_106 = arith.constant 1 : i32
      %c0_i32_107 = arith.constant 0 : i32
      %144 = tpu.memref_slice %arg7[%c0_i32_100, %c0_i32_105, %c1_i32_106, %c0_i32_107] : memref<2x18x18x128xf32, #tpu.memory_space<vmem>> -> memref<1x1x16x128xf32, #tpu.memory_space<vmem>>
      %145 = tpu.memref_squeeze %144 : memref<1x1x16x128xf32, #tpu.memory_space<vmem>> -> memref<1x16x128xf32, #tpu.memory_space<vmem>>
      %146 = tpu.memref_slice %arg8[%c0_i32_101, %c0_i32_102] : memref<2x3x!tpu.dma_semaphore, #tpu.memory_space<semaphore_mem>> -> memref<1x1x!tpu.dma_semaphore, #tpu.memory_space<semaphore_mem>>
      %147 = tpu.memref_squeeze %146 : memref<1x1x!tpu.dma_semaphore, #tpu.memory_space<semaphore_mem>> -> memref<!tpu.dma_semaphore, #tpu.memory_space<semaphore_mem>>
      tpu.enqueue_dma source(%143 : memref<1x16x128xf32, #tpu.memory_space<any>>) target(%145 : memref<1x16x128xf32, #tpu.memory_space<vmem>>) target_semaphore(%147 : memref<!tpu.dma_semaphore, #tpu.memory_space<semaphore_mem>>)
      %c0_i32_108 = arith.constant 0 : i32
      %c0_i32_109 = arith.constant 0 : i32
      %c1_i32_110 = arith.constant 1 : i32
      %c0_i32_111 = arith.constant 0 : i32
      %c0_i32_112 = arith.constant 0 : i32
      %c0_i32_113 = arith.constant 0 : i32
      %148 = tpu.memref_slice %arg2[%arg0, %c0_i32_111, %c0_i32_112, %c0_i32_113] : memref<2x16x16x128xf32, #tpu.memory_space<any>> -> memref<1x16x16x128xf32, #tpu.memory_space<any>>
      %149 = tpu.memref_squeeze %148 : memref<1x16x16x128xf32, #tpu.memory_space<any>> -> memref<16x16x128xf32, #tpu.memory_space<any>>
      %c1_i32_114 = arith.constant 1 : i32
      %c1_i32_115 = arith.constant 1 : i32
      %c0_i32_116 = arith.constant 0 : i32
      %150 = tpu.memref_slice %arg7[%c0_i32_108, %c1_i32_114, %c1_i32_115, %c0_i32_116] : memref<2x18x18x128xf32, #tpu.memory_space<vmem>> -> memref<1x16x16x128xf32, #tpu.memory_space<vmem>>
      %151 = tpu.memref_squeeze %150 : memref<1x16x16x128xf32, #tpu.memory_space<vmem>> -> memref<16x16x128xf32, #tpu.memory_space<vmem>>
      %152 = tpu.memref_slice %arg8[%c0_i32_109, %c1_i32_110] : memref<2x3x!tpu.dma_semaphore, #tpu.memory_space<semaphore_mem>> -> memref<1x1x!tpu.dma_semaphore, #tpu.memory_space<semaphore_mem>>
      %153 = tpu.memref_squeeze %152 : memref<1x1x!tpu.dma_semaphore, #tpu.memory_space<semaphore_mem>> -> memref<!tpu.dma_semaphore, #tpu.memory_space<semaphore_mem>>
      tpu.enqueue_dma source(%149 : memref<16x16x128xf32, #tpu.memory_space<any>>) target(%151 : memref<16x16x128xf32, #tpu.memory_space<vmem>>) target_semaphore(%153 : memref<!tpu.dma_semaphore, #tpu.memory_space<semaphore_mem>>)
      %c0_i32_117 = arith.constant 0 : i32
      %c0_i32_118 = arith.constant 0 : i32
      %c2_i32_119 = arith.constant 2 : i32
      %c0_i32_120 = arith.constant 0 : i32
      %c0_i32_121 = arith.constant 0 : i32
      %154 = tpu.memref_slice %arg2[%arg0, %141, %c0_i32_120, %c0_i32_121] : memref<2x16x16x128xf32, #tpu.memory_space<any>> -> memref<1x1x16x128xf32, #tpu.memory_space<any>>
      %155 = tpu.memref_squeeze %154 : memref<1x1x16x128xf32, #tpu.memory_space<any>> -> memref<1x16x128xf32, #tpu.memory_space<any>>
      %c17_i32_122 = arith.constant 17 : i32
      %c1_i32_123 = arith.constant 1 : i32
      %c0_i32_124 = arith.constant 0 : i32
      %156 = tpu.memref_slice %arg7[%c0_i32_117, %c17_i32_122, %c1_i32_123, %c0_i32_124] : memref<2x18x18x128xf32, #tpu.memory_space<vmem>> -> memref<1x1x16x128xf32, #tpu.memory_space<vmem>>
      %157 = tpu.memref_squeeze %156 : memref<1x1x16x128xf32, #tpu.memory_space<vmem>> -> memref<1x16x128xf32, #tpu.memory_space<vmem>>
      %158 = tpu.memref_slice %arg8[%c0_i32_118, %c2_i32_119] : memref<2x3x!tpu.dma_semaphore, #tpu.memory_space<semaphore_mem>> -> memref<1x1x!tpu.dma_semaphore, #tpu.memory_space<semaphore_mem>>
      %159 = tpu.memref_squeeze %158 : memref<1x1x!tpu.dma_semaphore, #tpu.memory_space<semaphore_mem>> -> memref<!tpu.dma_semaphore, #tpu.memory_space<semaphore_mem>>
      tpu.enqueue_dma source(%155 : memref<1x16x128xf32, #tpu.memory_space<any>>) target(%157 : memref<1x16x128xf32, #tpu.memory_space<vmem>>) target_semaphore(%159 : memref<!tpu.dma_semaphore, #tpu.memory_space<semaphore_mem>>)
    } else {
    }
    %c1_i32_1 = arith.constant 1 : i32
    %4 = arith.addi %arg1, %c1_i32_1 : i32
    %c1_i32_2 = arith.constant 1 : i32
    %5 = arith.cmpi slt, %4, %c1_i32_2 : i32
    %6 = arith.extui %5 : i1 to i32
    %c0_i32_3 = arith.constant 0 : i32
    %7 = arith.cmpi ne, %6, %c0_i32_3 : i32
    scf.if %7 {
      %c1_i32_97 = arith.constant 1 : i32
      %140 = arith.addi %arg1, %c1_i32_97 : i32
      %c1_i32_98 = arith.constant 1 : i32
      %141 = arith.subi %c1_i32_98, %0 : i32
      %c16_i32_99 = arith.constant 16 : i32
      %142 = arith.muli %140, %c16_i32_99 : i32
      %c1_i32_100 = arith.constant 1 : i32
      %143 = arith.subi %142, %c1_i32_100 : i32
      %c0_i32_101 = arith.constant 0 : i32
      %144 = arith.maxsi %143, %c0_i32_101 : i32
      %c16_i32_102 = arith.constant 16 : i32
      %145 = arith.addi %142, %c16_i32_102 : i32
      %c15_i32_103 = arith.constant 15 : i32
      %146 = arith.minsi %145, %c15_i32_103 : i32
      %c0_i32_104 = arith.constant 0 : i32
      %c0_i32_105 = arith.constant 0 : i32
      %c0_i32_106 = arith.constant 0 : i32
      %147 = tpu.memref_slice %arg2[%arg0, %144, %c0_i32_105, %c0_i32_106] : memref<2x16x16x128xf32, #tpu.memory_space<any>> -> memref<1x1x16x128xf32, #tpu.memory_space<any>>
      %148 = tpu.memref_squeeze %147 : memref<1x1x16x128xf32, #tpu.memory_space<any>> -> memref<1x16x128xf32, #tpu.memory_space<any>>
      %c0_i32_107 = arith.constant 0 : i32
      %c1_i32_108 = arith.constant 1 : i32
      %c0_i32_109 = arith.constant 0 : i32
      %149 = tpu.memref_slice %arg7[%141, %c0_i32_107, %c1_i32_108, %c0_i32_109] : memref<2x18x18x128xf32, #tpu.memory_space<vmem>> -> memref<1x1x16x128xf32, #tpu.memory_space<vmem>>
      %150 = tpu.memref_squeeze %149 : memref<1x1x16x128xf32, #tpu.memory_space<vmem>> -> memref<1x16x128xf32, #tpu.memory_space<vmem>>
      %151 = tpu.memref_slice %arg8[%141, %c0_i32_104] : memref<2x3x!tpu.dma_semaphore, #tpu.memory_space<semaphore_mem>> -> memref<1x1x!tpu.dma_semaphore, #tpu.memory_space<semaphore_mem>>
      %152 = tpu.memref_squeeze %151 : memref<1x1x!tpu.dma_semaphore, #tpu.memory_space<semaphore_mem>> -> memref<!tpu.dma_semaphore, #tpu.memory_space<semaphore_mem>>
      tpu.enqueue_dma source(%148 : memref<1x16x128xf32, #tpu.memory_space<any>>) target(%150 : memref<1x16x128xf32, #tpu.memory_space<vmem>>) target_semaphore(%152 : memref<!tpu.dma_semaphore, #tpu.memory_space<semaphore_mem>>)
      %c1_i32_110 = arith.constant 1 : i32
      %c0_i32_111 = arith.constant 0 : i32
      %c0_i32_112 = arith.constant 0 : i32
      %153 = tpu.memref_slice %arg2[%arg0, %142, %c0_i32_111, %c0_i32_112] : memref<2x16x16x128xf32, #tpu.memory_space<any>> -> memref<1x16x16x128xf32, #tpu.memory_space<any>>
      %154 = tpu.memref_squeeze %153 : memref<1x16x16x128xf32, #tpu.memory_space<any>> -> memref<16x16x128xf32, #tpu.memory_space<any>>
      %c1_i32_113 = arith.constant 1 : i32
      %c1_i32_114 = arith.constant 1 : i32
      %c0_i32_115 = arith.constant 0 : i32
      %155 = tpu.memref_slice %arg7[%141, %c1_i32_113, %c1_i32_114, %c0_i32_115] : memref<2x18x18x128xf32, #tpu.memory_space<vmem>> -> memref<1x16x16x128xf32, #tpu.memory_space<vmem>>
      %156 = tpu.memref_squeeze %155 : memref<1x16x16x128xf32, #tpu.memory_space<vmem>> -> memref<16x16x128xf32, #tpu.memory_space<vmem>>
      %157 = tpu.memref_slice %arg8[%141, %c1_i32_110] : memref<2x3x!tpu.dma_semaphore, #tpu.memory_space<semaphore_mem>> -> memref<1x1x!tpu.dma_semaphore, #tpu.memory_space<semaphore_mem>>
      %158 = tpu.memref_squeeze %157 : memref<1x1x!tpu.dma_semaphore, #tpu.memory_space<semaphore_mem>> -> memref<!tpu.dma_semaphore, #tpu.memory_space<semaphore_mem>>
      tpu.enqueue_dma source(%154 : memref<16x16x128xf32, #tpu.memory_space<any>>) target(%156 : memref<16x16x128xf32, #tpu.memory_space<vmem>>) target_semaphore(%158 : memref<!tpu.dma_semaphore, #tpu.memory_space<semaphore_mem>>)
      %c2_i32_116 = arith.constant 2 : i32
      %c0_i32_117 = arith.constant 0 : i32
      %c0_i32_118 = arith.constant 0 : i32
      %159 = tpu.memref_slice %arg2[%arg0, %146, %c0_i32_117, %c0_i32_118] : memref<2x16x16x128xf32, #tpu.memory_space<any>> -> memref<1x1x16x128xf32, #tpu.memory_space<any>>
      %160 = tpu.memref_squeeze %159 : memref<1x1x16x128xf32, #tpu.memory_space<any>> -> memref<1x16x128xf32, #tpu.memory_space<any>>
      %c17_i32_119 = arith.constant 17 : i32
      %c1_i32_120 = arith.constant 1 : i32
      %c0_i32_121 = arith.constant 0 : i32
      %161 = tpu.memref_slice %arg7[%141, %c17_i32_119, %c1_i32_120, %c0_i32_121] : memref<2x18x18x128xf32, #tpu.memory_space<vmem>> -> memref<1x1x16x128xf32, #tpu.memory_space<vmem>>
      %162 = tpu.memref_squeeze %161 : memref<1x1x16x128xf32, #tpu.memory_space<vmem>> -> memref<1x16x128xf32, #tpu.memory_space<vmem>>
      %163 = tpu.memref_slice %arg8[%141, %c2_i32_116] : memref<2x3x!tpu.dma_semaphore, #tpu.memory_space<semaphore_mem>> -> memref<1x1x!tpu.dma_semaphore, #tpu.memory_space<semaphore_mem>>
      %164 = tpu.memref_squeeze %163 : memref<1x1x!tpu.dma_semaphore, #tpu.memory_space<semaphore_mem>> -> memref<!tpu.dma_semaphore, #tpu.memory_space<semaphore_mem>>
      tpu.enqueue_dma source(%160 : memref<1x16x128xf32, #tpu.memory_space<any>>) target(%162 : memref<1x16x128xf32, #tpu.memory_space<vmem>>) target_semaphore(%164 : memref<!tpu.dma_semaphore, #tpu.memory_space<semaphore_mem>>)
    } else {
    }
    %c16_i32 = arith.constant 16 : i32
    %8 = arith.muli %arg1, %c16_i32 : i32
    %c1_i32_4 = arith.constant 1 : i32
    %9 = arith.subi %8, %c1_i32_4 : i32
    %c0_i32_5 = arith.constant 0 : i32
    %10 = arith.maxsi %9, %c0_i32_5 : i32
    %c16_i32_6 = arith.constant 16 : i32
    %11 = arith.addi %8, %c16_i32_6 : i32
    %c15_i32 = arith.constant 15 : i32
    %12 = arith.minsi %11, %c15_i32 : i32
    %c0_i32_7 = arith.constant 0 : i32
    %c0_i32_8 = arith.constant 0 : i32
    %c0_i32_9 = arith.constant 0 : i32
    %13 = tpu.memref_slice %arg2[%arg0, %10, %c0_i32_8, %c0_i32_9] : memref<2x16x16x128xf32, #tpu.memory_space<any>> -> memref<1x1x16x128xf32, #tpu.memory_space<any>>
    %14 = tpu.memref_squeeze %13 : memref<1x1x16x128xf32, #tpu.memory_space<any>> -> memref<1x16x128xf32, #tpu.memory_space<any>>
    %c0_i32_10 = arith.constant 0 : i32
    %c1_i32_11 = arith.constant 1 : i32
    %c0_i32_12 = arith.constant 0 : i32
    %15 = tpu.memref_slice %arg7[%0, %c0_i32_10, %c1_i32_11, %c0_i32_12] : memref<2x18x18x128xf32, #tpu.memory_space<vmem>> -> memref<1x1x16x128xf32, #tpu.memory_space<vmem>>
    %16 = tpu.memref_squeeze %15 : memref<1x1x16x128xf32, #tpu.memory_space<vmem>> -> memref<1x16x128xf32, #tpu.memory_space<vmem>>
    %17 = tpu.memref_slice %arg8[%0, %c0_i32_7] : memref<2x3x!tpu.dma_semaphore, #tpu.memory_space<semaphore_mem>> -> memref<1x1x!tpu.dma_semaphore, #tpu.memory_space<semaphore_mem>>
    %18 = tpu.memref_squeeze %17 : memref<1x1x!tpu.dma_semaphore, #tpu.memory_space<semaphore_mem>> -> memref<!tpu.dma_semaphore, #tpu.memory_space<semaphore_mem>>
    tpu.wait_dma2 semaphore(%18 : memref<!tpu.dma_semaphore, #tpu.memory_space<semaphore_mem>>) src(%14 : memref<1x16x128xf32, #tpu.memory_space<any>>) dst(%16 : memref<1x16x128xf32, #tpu.memory_space<vmem>>)
    %c1_i32_13 = arith.constant 1 : i32
    %c0_i32_14 = arith.constant 0 : i32
    %c0_i32_15 = arith.constant 0 : i32
    %19 = tpu.memref_slice %arg2[%arg0, %8, %c0_i32_14, %c0_i32_15] : memref<2x16x16x128xf32, #tpu.memory_space<any>> -> memref<1x16x16x128xf32, #tpu.memory_space<any>>
    %20 = tpu.memref_squeeze %19 : memref<1x16x16x128xf32, #tpu.memory_space<any>> -> memref<16x16x128xf32, #tpu.memory_space<any>>
    %c1_i32_16 = arith.constant 1 : i32
    %c1_i32_17 = arith.constant 1 : i32
    %c0_i32_18 = arith.constant 0 : i32
    %21 = tpu.memref_slice %arg7[%0, %c1_i32_16, %c1_i32_17, %c0_i32_18] : memref<2x18x18x128xf32, #tpu.memory_space<vmem>> -> memref<1x16x16x128xf32, #tpu.memory_space<vmem>>
    %22 = tpu.memref_squeeze %21 : memref<1x16x16x128xf32, #tpu.memory_space<vmem>> -> memref<16x16x128xf32, #tpu.memory_space<vmem>>
    %23 = tpu.memref_slice %arg8[%0, %c1_i32_13] : memref<2x3x!tpu.dma_semaphore, #tpu.memory_space<semaphore_mem>> -> memref<1x1x!tpu.dma_semaphore, #tpu.memory_space<semaphore_mem>>
    %24 = tpu.memref_squeeze %23 : memref<1x1x!tpu.dma_semaphore, #tpu.memory_space<semaphore_mem>> -> memref<!tpu.dma_semaphore, #tpu.memory_space<semaphore_mem>>
    tpu.wait_dma2 semaphore(%24 : memref<!tpu.dma_semaphore, #tpu.memory_space<semaphore_mem>>) src(%20 : memref<16x16x128xf32, #tpu.memory_space<any>>) dst(%22 : memref<16x16x128xf32, #tpu.memory_space<vmem>>)
    %c2_i32 = arith.constant 2 : i32
    %c0_i32_19 = arith.constant 0 : i32
    %c0_i32_20 = arith.constant 0 : i32
    %25 = tpu.memref_slice %arg2[%arg0, %12, %c0_i32_19, %c0_i32_20] : memref<2x16x16x128xf32, #tpu.memory_space<any>> -> memref<1x1x16x128xf32, #tpu.memory_space<any>>
    %26 = tpu.memref_squeeze %25 : memref<1x1x16x128xf32, #tpu.memory_space<any>> -> memref<1x16x128xf32, #tpu.memory_space<any>>
    %c17_i32 = arith.constant 17 : i32
    %c1_i32_21 = arith.constant 1 : i32
    %c0_i32_22 = arith.constant 0 : i32
    %27 = tpu.memref_slice %arg7[%0, %c17_i32, %c1_i32_21, %c0_i32_22] : memref<2x18x18x128xf32, #tpu.memory_space<vmem>> -> memref<1x1x16x128xf32, #tpu.memory_space<vmem>>
    %28 = tpu.memref_squeeze %27 : memref<1x1x16x128xf32, #tpu.memory_space<vmem>> -> memref<1x16x128xf32, #tpu.memory_space<vmem>>
    %29 = tpu.memref_slice %arg8[%0, %c2_i32] : memref<2x3x!tpu.dma_semaphore, #tpu.memory_space<semaphore_mem>> -> memref<1x1x!tpu.dma_semaphore, #tpu.memory_space<semaphore_mem>>
    %30 = tpu.memref_squeeze %29 : memref<1x1x!tpu.dma_semaphore, #tpu.memory_space<semaphore_mem>> -> memref<!tpu.dma_semaphore, #tpu.memory_space<semaphore_mem>>
    tpu.wait_dma2 semaphore(%30 : memref<!tpu.dma_semaphore, #tpu.memory_space<semaphore_mem>>) src(%26 : memref<1x16x128xf32, #tpu.memory_space<any>>) dst(%28 : memref<1x16x128xf32, #tpu.memory_space<vmem>>)
    %31 = arith.index_cast %0 : i32 to index
    %c0 = arith.constant 0 : index
    %c1 = arith.constant 1 : index
    %c0_23 = arith.constant 0 : index
    %32 = vector.load %arg7[%31, %c0, %c1, %c0_23] : memref<2x18x18x128xf32, #tpu.memory_space<vmem>>, vector<1x18x16x128xf32>
    %33 = vector.shape_cast %32 : vector<1x18x16x128xf32> to vector<18x16x128xf32>
    %c0_24 = arith.constant 0 : index
    %c0_25 = arith.constant 0 : index
    %34 = vector.load %arg4[%c0_24, %c0_25] : memref<2x128xf32, #tpu.memory_space<vmem>>, vector<1x128xf32>
    %35 = vector.shape_cast %34 : vector<1x128xf32> to vector<1x1x128xf32>
    %36 = vector.broadcast %35 : vector<1x1x128xf32> to vector<18x16x128xf32>
    %37 = arith.mulf %33, %36 : vector<18x16x128xf32>
    %c1_26 = arith.constant 1 : index
    %c0_27 = arith.constant 0 : index
    %38 = vector.load %arg4[%c1_26, %c0_27] : memref<2x128xf32, #tpu.memory_space<vmem>>, vector<1x128xf32>
    %39 = vector.shape_cast %38 : vector<1x128xf32> to vector<1x1x128xf32>
    %40 = vector.broadcast %39 : vector<1x1x128xf32> to vector<18x16x128xf32>
    %41 = arith.addf %37, %40 : vector<18x16x128xf32>
    %cst = arith.constant 0.000000e+00 : f32
    %42 = vector.broadcast %cst : f32 to vector<18x16x128xf32>
    %43 = arith.maximumf %41, %42 : vector<18x16x128xf32>
    %44 = arith.index_cast %0 : i32 to index
    %c0_28 = arith.constant 0 : index
    %c1_29 = arith.constant 1 : index
    %c0_30 = arith.constant 0 : index
    %45 = vector.load %arg7[%44, %c0_28, %c1_29, %c0_30] : memref<2x18x18x128xf32, #tpu.memory_space<vmem>>, vector<1x18x16x128xf32>
    %46 = vector.shape_cast %45 : vector<1x18x16x128xf32> to vector<18x16x128xf32>
    %47 = vector.shape_cast %43 : vector<18x16x128xf32> to vector<1x18x16x128xf32>
    tpu.vector_store %arg7[%44, %c0_28, %c1_29, %c0_30], %47 {strides = array<i32>} : memref<2x18x18x128xf32, #tpu.memory_space<vmem>>, vector<1x18x16x128xf32>,
    %cst_31 = arith.constant 0.000000e+00 : f32
    %48 = vector.broadcast %cst_31 : f32 to vector<18x1x128xf32>
    %49 = arith.index_cast %0 : i32 to index
    %c0_32 = arith.constant 0 : index
    %c0_33 = arith.constant 0 : index
    %c0_34 = arith.constant 0 : index
    %50 = vector.load %arg7[%49, %c0_32, %c0_33, %c0_34] : memref<2x18x18x128xf32, #tpu.memory_space<vmem>>, vector<1x18x1x128xf32>
    %51 = vector.shape_cast %50 : vector<1x18x1x128xf32> to vector<18x1x128xf32>
    %52 = vector.shape_cast %48 : vector<18x1x128xf32> to vector<1x18x1x128xf32>
    tpu.vector_store %arg7[%49, %c0_32, %c0_33, %c0_34], %52 {strides = array<i32>} : memref<2x18x18x128xf32, #tpu.memory_space<vmem>>, vector<1x18x1x128xf32>,
    %53 = arith.index_cast %0 : i32 to index
    %c0_35 = arith.constant 0 : index
    %c17 = arith.constant 17 : index
    %c0_36 = arith.constant 0 : index
    %54 = vector.load %arg7[%53, %c0_35, %c17, %c0_36] : memref<2x18x18x128xf32, #tpu.memory_space<vmem>>, vector<1x18x1x128xf32>
    %55 = vector.shape_cast %54 : vector<1x18x1x128xf32> to vector<18x1x128xf32>
    %56 = vector.shape_cast %48 : vector<18x1x128xf32> to vector<1x18x1x128xf32>
    tpu.vector_store %arg7[%53, %c0_35, %c17, %c0_36], %56 {strides = array<i32>} : memref<2x18x18x128xf32, #tpu.memory_space<vmem>>, vector<1x18x1x128xf32>,
    %c0_i32_37 = arith.constant 0 : i32
    %57 = arith.cmpi eq, %arg1, %c0_i32_37 : i32
    %58 = arith.extui %57 : i1 to i32
    %c0_i32_38 = arith.constant 0 : i32
    %59 = arith.cmpi ne, %58, %c0_i32_38 : i32
    scf.if %59 {
      %cst_97 = arith.constant 0.000000e+00 : f32
      %140 = vector.broadcast %cst_97 : f32 to vector<1x18x128xf32>
      %141 = arith.index_cast %0 : i32 to index
      %c0_98 = arith.constant 0 : index
      %c0_99 = arith.constant 0 : index
      %c0_100 = arith.constant 0 : index
      %142 = vector.load %arg7[%141, %c0_98, %c0_99, %c0_100] : memref<2x18x18x128xf32, #tpu.memory_space<vmem>>, vector<1x1x18x128xf32>
      %143 = vector.shape_cast %142 : vector<1x1x18x128xf32> to vector<1x18x128xf32>
      %144 = vector.shape_cast %140 : vector<1x18x128xf32> to vector<1x1x18x128xf32>
      tpu.vector_store %arg7[%141, %c0_98, %c0_99, %c0_100], %144 {strides = array<i32>} : memref<2x18x18x128xf32, #tpu.memory_space<vmem>>, vector<1x1x18x128xf32>,
    } else {
    }
    %c0_i32_39 = arith.constant 0 : i32
    %60 = arith.cmpi eq, %arg1, %c0_i32_39 : i32
    %61 = arith.extui %60 : i1 to i32
    %c0_i32_40 = arith.constant 0 : i32
    %62 = arith.cmpi ne, %61, %c0_i32_40 : i32
    scf.if %62 {
      %cst_97 = arith.constant 0.000000e+00 : f32
      %140 = vector.broadcast %cst_97 : f32 to vector<1x18x128xf32>
      %141 = arith.index_cast %0 : i32 to index
      %c17_98 = arith.constant 17 : index
      %c0_99 = arith.constant 0 : index
      %c0_100 = arith.constant 0 : index
      %142 = vector.load %arg7[%141, %c17_98, %c0_99, %c0_100] : memref<2x18x18x128xf32, #tpu.memory_space<vmem>>, vector<1x1x18x128xf32>
      %143 = vector.shape_cast %142 : vector<1x1x18x128xf32> to vector<1x18x128xf32>
      %144 = vector.shape_cast %140 : vector<1x18x128xf32> to vector<1x1x18x128xf32>
      tpu.vector_store %arg7[%141, %c17_98, %c0_99, %c0_100], %144 {strides = array<i32>} : memref<2x18x18x128xf32, #tpu.memory_space<vmem>>, vector<1x1x18x128xf32>,
    } else {
    }
    %cst_41 = arith.constant 0.000000e+00 : f32
    %63 = vector.broadcast %cst_41 : f32 to vector<256x128xf32>
    %64 = arith.index_cast %0 : i32 to index
    %c0_42 = arith.constant 0 : index
    %c0_43 = arith.constant 0 : index
    %c0_44 = arith.constant 0 : index
    %65 = vector.load %arg7[%64, %c0_42, %c0_43, %c0_44] : memref<2x18x18x128xf32, #tpu.memory_space<vmem>>, vector<1x16x16x128xf32>
    %66 = vector.shape_cast %65 : vector<1x16x16x128xf32> to vector<16x16x128xf32>
    %67 = vector.shape_cast %66 : vector<16x16x128xf32> to vector<256x128xf32>
    %c0_45 = arith.constant 0 : index
    %c0_46 = arith.constant 0 : index
    %68 = vector.load %arg3[%c0_45, %c0_46] : memref<1152x128xf32, #tpu.memory_space<vmem>>, vector<128x128xf32>
    %cst_47 = arith.constant dense<0.000000e+00> : vector<256x128xf32>
    %69 = tpu.matmul %67, %68, %cst_47 {dimension_numbers = #tpu.dot_dimension_numbers<[1], [0], [0], [1], [0, 0, 1, 1], [], []>} : vector<256x128xf32>, vector<128x128xf32>, vector<256x128xf32> -> vector<256x128xf32>
    %70 = arith.addf %63, %69 : vector<256x128xf32>
    %71 = arith.index_cast %0 : i32 to index
    %c0_48 = arith.constant 0 : index
    %c1_49 = arith.constant 1 : index
    %c0_50 = arith.constant 0 : index
    %72 = vector.load %arg7[%71, %c0_48, %c1_49, %c0_50] : memref<2x18x18x128xf32, #tpu.memory_space<vmem>>, vector<1x16x16x128xf32>
    %73 = vector.shape_cast %72 : vector<1x16x16x128xf32> to vector<16x16x128xf32>
    %74 = vector.shape_cast %73 : vector<16x16x128xf32> to vector<256x128xf32>
    %c128 = arith.constant 128 : index
    %c0_51 = arith.constant 0 : index
    %75 = vector.load %arg3[%c128, %c0_51] : memref<1152x128xf32, #tpu.memory_space<vmem>>, vector<128x128xf32>
    %cst_52 = arith.constant dense<0.000000e+00> : vector<256x128xf32>
    %76 = tpu.matmul %74, %75, %cst_52 {dimension_numbers = #tpu.dot_dimension_numbers<[1], [0], [0], [1], [0, 0, 1, 1], [], []>} : vector<256x128xf32>, vector<128x128xf32>, vector<256x128xf32> -> vector<256x128xf32>
    %77 = arith.addf %70, %76 : vector<256x128xf32>
    %78 = arith.index_cast %0 : i32 to index
    %c0_53 = arith.constant 0 : index
    %c2 = arith.constant 2 : index
    %c0_54 = arith.constant 0 : index
    %79 = vector.load %arg7[%78, %c0_53, %c2, %c0_54] : memref<2x18x18x128xf32, #tpu.memory_space<vmem>>, vector<1x16x16x128xf32>
    %80 = vector.shape_cast %79 : vector<1x16x16x128xf32> to vector<16x16x128xf32>
    %81 = vector.shape_cast %80 : vector<16x16x128xf32> to vector<256x128xf32>
    %c256 = arith.constant 256 : index
    %c0_55 = arith.constant 0 : index
    %82 = vector.load %arg3[%c256, %c0_55] : memref<1152x128xf32, #tpu.memory_space<vmem>>, vector<128x128xf32>
    %cst_56 = arith.constant dense<0.000000e+00> : vector<256x128xf32>
    %83 = tpu.matmul %81, %82, %cst_56 {dimension_numbers = #tpu.dot_dimension_numbers<[1], [0], [0], [1], [0, 0, 1, 1], [], []>} : vector<256x128xf32>, vector<128x128xf32>, vector<256x128xf32> -> vector<256x128xf32>
    %84 = arith.addf %77, %83 : vector<256x128xf32>
    %85 = arith.index_cast %0 : i32 to index
    %c1_57 = arith.constant 1 : index
    %c0_58 = arith.constant 0 : index
    %c0_59 = arith.constant 0 : index
    %86 = vector.load %arg7[%85, %c1_57, %c0_58, %c0_59] : memref<2x18x18x128xf32, #tpu.memory_space<vmem>>, vector<1x16x16x128xf32>
    %87 = vector.shape_cast %86 : vector<1x16x16x128xf32> to vector<16x16x128xf32>
    %88 = vector.shape_cast %87 : vector<16x16x128xf32> to vector<256x128xf32>
    %c384 = arith.constant 384 : index
    %c0_60 = arith.constant 0 : index
    %89 = vector.load %arg3[%c384, %c0_60] : memref<1152x128xf32, #tpu.memory_space<vmem>>, vector<128x128xf32>
    %cst_61 = arith.constant dense<0.000000e+00> : vector<256x128xf32>
    %90 = tpu.matmul %88, %89, %cst_61 {dimension_numbers = #tpu.dot_dimension_numbers<[1], [0], [0], [1], [0, 0, 1, 1], [], []>} : vector<256x128xf32>, vector<128x128xf32>, vector<256x128xf32> -> vector<256x128xf32>
    %91 = arith.addf %84, %90 : vector<256x128xf32>
    %92 = arith.index_cast %0 : i32 to index
    %c1_62 = arith.constant 1 : index
    %c1_63 = arith.constant 1 : index
    %c0_64 = arith.constant 0 : index
    %93 = vector.load %arg7[%92, %c1_62, %c1_63, %c0_64] : memref<2x18x18x128xf32, #tpu.memory_space<vmem>>, vector<1x16x16x128xf32>
    %94 = vector.shape_cast %93 : vector<1x16x16x128xf32> to vector<16x16x128xf32>
    %95 = vector.shape_cast %94 : vector<16x16x128xf32> to vector<256x128xf32>
    %c512 = arith.constant 512 : index
    %c0_65 = arith.constant 0 : index
    %96 = vector.load %arg3[%c512, %c0_65] : memref<1152x128xf32, #tpu.memory_space<vmem>>, vector<128x128xf32>
    %cst_66 = arith.constant dense<0.000000e+00> : vector<256x128xf32>
    %97 = tpu.matmul %95, %96, %cst_66 {dimension_numbers = #tpu.dot_dimension_numbers<[1], [0], [0], [1], [0, 0, 1, 1], [], []>} : vector<256x128xf32>, vector<128x128xf32>, vector<256x128xf32> -> vector<256x128xf32>
    %98 = arith.addf %91, %97 : vector<256x128xf32>
    %99 = arith.index_cast %0 : i32 to index
    %c1_67 = arith.constant 1 : index
    %c2_68 = arith.constant 2 : index
    %c0_69 = arith.constant 0 : index
    %100 = vector.load %arg7[%99, %c1_67, %c2_68, %c0_69] : memref<2x18x18x128xf32, #tpu.memory_space<vmem>>, vector<1x16x16x128xf32>
    %101 = vector.shape_cast %100 : vector<1x16x16x128xf32> to vector<16x16x128xf32>
    %102 = vector.shape_cast %101 : vector<16x16x128xf32> to vector<256x128xf32>
    %c640 = arith.constant 640 : index
    %c0_70 = arith.constant 0 : index
    %103 = vector.load %arg3[%c640, %c0_70] : memref<1152x128xf32, #tpu.memory_space<vmem>>, vector<128x128xf32>
    %cst_71 = arith.constant dense<0.000000e+00> : vector<256x128xf32>
    %104 = tpu.matmul %102, %103, %cst_71 {dimension_numbers = #tpu.dot_dimension_numbers<[1], [0], [0], [1], [0, 0, 1, 1], [], []>} : vector<256x128xf32>, vector<128x128xf32>, vector<256x128xf32> -> vector<256x128xf32>
    %105 = arith.addf %98, %104 : vector<256x128xf32>
    %106 = arith.index_cast %0 : i32 to index
    %c2_72 = arith.constant 2 : index
    %c0_73 = arith.constant 0 : index
    %c0_74 = arith.constant 0 : index
    %107 = vector.load %arg7[%106, %c2_72, %c0_73, %c0_74] : memref<2x18x18x128xf32, #tpu.memory_space<vmem>>, vector<1x16x16x128xf32>
    %108 = vector.shape_cast %107 : vector<1x16x16x128xf32> to vector<16x16x128xf32>
    %109 = vector.shape_cast %108 : vector<16x16x128xf32> to vector<256x128xf32>
    %c768 = arith.constant 768 : index
    %c0_75 = arith.constant 0 : index
    %110 = vector.load %arg3[%c768, %c0_75] : memref<1152x128xf32, #tpu.memory_space<vmem>>, vector<128x128xf32>
    %cst_76 = arith.constant dense<0.000000e+00> : vector<256x128xf32>
    %111 = tpu.matmul %109, %110, %cst_76 {dimension_numbers = #tpu.dot_dimension_numbers<[1], [0], [0], [1], [0, 0, 1, 1], [], []>} : vector<256x128xf32>, vector<128x128xf32>, vector<256x128xf32> -> vector<256x128xf32>
    %112 = arith.addf %105, %111 : vector<256x128xf32>
    %113 = arith.index_cast %0 : i32 to index
    %c2_77 = arith.constant 2 : index
    %c1_78 = arith.constant 1 : index
    %c0_79 = arith.constant 0 : index
    %114 = vector.load %arg7[%113, %c2_77, %c1_78, %c0_79] : memref<2x18x18x128xf32, #tpu.memory_space<vmem>>, vector<1x16x16x128xf32>
    %115 = vector.shape_cast %114 : vector<1x16x16x128xf32> to vector<16x16x128xf32>
    %116 = vector.shape_cast %115 : vector<16x16x128xf32> to vector<256x128xf32>
    %c896 = arith.constant 896 : index
    %c0_80 = arith.constant 0 : index
    %117 = vector.load %arg3[%c896, %c0_80] : memref<1152x128xf32, #tpu.memory_space<vmem>>, vector<128x128xf32>
    %cst_81 = arith.constant dense<0.000000e+00> : vector<256x128xf32>
    %118 = tpu.matmul %116, %117, %cst_81 {dimension_numbers = #tpu.dot_dimension_numbers<[1], [0], [0], [1], [0, 0, 1, 1], [], []>} : vector<256x128xf32>, vector<128x128xf32>, vector<256x128xf32> -> vector<256x128xf32>
    %119 = arith.addf %112, %118 : vector<256x128xf32>
    %120 = arith.index_cast %0 : i32 to index
    %c2_82 = arith.constant 2 : index
    %c2_83 = arith.constant 2 : index
    %c0_84 = arith.constant 0 : index
    %121 = vector.load %arg7[%120, %c2_82, %c2_83, %c0_84] : memref<2x18x18x128xf32, #tpu.memory_space<vmem>>, vector<1x16x16x128xf32>
    %122 = vector.shape_cast %121 : vector<1x16x16x128xf32> to vector<16x16x128xf32>
    %123 = vector.shape_cast %122 : vector<16x16x128xf32> to vector<256x128xf32>
    %c1024 = arith.constant 1024 : index
    %c0_85 = arith.constant 0 : index
    %124 = vector.load %arg3[%c1024, %c0_85] : memref<1152x128xf32, #tpu.memory_space<vmem>>, vector<128x128xf32>
    %cst_86 = arith.constant dense<0.000000e+00> : vector<256x128xf32>
    %125 = tpu.matmul %123, %124, %cst_86 {dimension_numbers = #tpu.dot_dimension_numbers<[1], [0], [0], [1], [0, 0, 1, 1], [], []>} : vector<256x128xf32>, vector<128x128xf32>, vector<256x128xf32> -> vector<256x128xf32>
    %126 = arith.addf %119, %125 : vector<256x128xf32>
    %127 = vector.shape_cast %126 : vector<256x128xf32> to vector<16x16x128xf32>
    %c0_87 = arith.constant 0 : index
    %c0_88 = arith.constant 0 : index
    %c0_89 = arith.constant 0 : index
    %c0_90 = arith.constant 0 : index
    %128 = vector.load %arg5[%c0_87, %c0_88, %c0_89, %c0_90] : memref<1x16x16x128xf32, #tpu.memory_space<vmem>>, vector<1x16x16x128xf32>
    %129 = vector.shape_cast %128 : vector<1x16x16x128xf32> to vector<16x16x128xf32>
    %130 = vector.shape_cast %127 : vector<16x16x128xf32> to vector<1x16x16x128xf32>
    tpu.vector_store %arg5[%c0_87, %c0_88, %c0_89, %c0_90], %130 {strides = array<i32>} : memref<1x16x16x128xf32, #tpu.memory_space<vmem>>, vector<1x16x16x128xf32>,
    %cst_91 = arith.constant dense<0.000000e+00> : vector<128xf32>
    %131 = vector.multi_reduction <add>, %126, %cst_91 [0] : vector<256x128xf32> to vector<128xf32>
    %132 = vector.shape_cast %131 : vector<128xf32> to vector<1x128xf32>
    %133 = arith.mulf %126, %126 : vector<256x128xf32>
    %cst_92 = arith.constant dense<0.000000e+00> : vector<128xf32>
    %134 = vector.multi_reduction <add>, %133, %cst_92 [0] : vector<256x128xf32> to vector<128xf32>
    %135 = vector.shape_cast %134 : vector<128xf32> to vector<1x128xf32>
    %136 = tpu.concatenate %132, %135 in 0 : vector<1x128xf32>, vector<1x128xf32> -> vector<2x128xf32>
    %c0_93 = arith.constant 0 : index
    %c0_94 = arith.constant 0 : index
    %c0_95 = arith.constant 0 : index
    %c0_96 = arith.constant 0 : index
    %137 = vector.load %arg6[%c0_93, %c0_94, %c0_95, %c0_96] : memref<1x1x2x128xf32, #tpu.memory_space<vmem>>, vector<1x1x2x128xf32>
    %138 = vector.shape_cast %137 : vector<1x1x2x128xf32> to vector<2x128xf32>
    %139 = vector.shape_cast %136 : vector<2x128xf32> to vector<1x1x2x128xf32>
    tpu.vector_store %arg6[%c0_93, %c0_94, %c0_95, %c0_96], %139 {strides = array<i32>} : memref<1x1x2x128xf32, #tpu.memory_space<vmem>>, vector<1x1x2x128xf32>,
    return
  }
  func.func @transform_1(%arg0: i32, %arg1: i32) -> (i32, i32) {
    %c0_i32 = arith.constant 0 : i32
    %c0_i32_0 = arith.constant 0 : i32
    %c0_i32_1 = arith.constant 0 : i32
    return %c0_i32, %c0_i32_0 : i32, i32
  }
  func.func @transform_2(%arg0: i32, %arg1: i32) -> (i32, i32) {
    %c0_i32 = arith.constant 0 : i32
    %c0_i32_0 = arith.constant 0 : i32
    %c0_i32_1 = arith.constant 0 : i32
    return %c0_i32, %c0_i32_0 : i32, i32
  }
  func.func @transform_3(%arg0: i32, %arg1: i32) -> (i32, i32, i32, i32) {
    %c0_i32 = arith.constant 0 : i32
    %c0_i32_0 = arith.constant 0 : i32
    %c0_i32_1 = arith.constant 0 : i32
    return %arg0, %arg1, %c0_i32, %c0_i32_0 : i32, i32, i32, i32
  }
  func.func @transform_4(%arg0: i32, %arg1: i32) -> (i32, i32, i32, i32) {
    %c0_i32 = arith.constant 0 : i32
    %c0_i32_0 = arith.constant 0 : i32
    %c0_i32_1 = arith.constant 0 : i32
    return %arg0, %arg1, %c0_i32, %c0_i32_0 : i32, i32, i32, i32
  }
}

module attributes {stable_mosaic.version = 11 : i64} {
  func.func @_conv3x3_stats_kernel(%arg0: i32, %arg1: i32, %arg2: memref<2x16x16x128xf32, #tpu.memory_space<any>>, %arg3: memref<1152x128xf32, #tpu.memory_space<vmem>>, %arg4: memref<2x128xf32, #tpu.memory_space<vmem>>, %arg5: memref<1x16x16x128xf32, #tpu.memory_space<vmem>>, %arg6: memref<1x1x2x128xf32, #tpu.memory_space<vmem>>, %arg7: memref<2x18x18x128xf32, #tpu.memory_space<vmem>>, %arg8: memref<2x3x!tpu.dma_semaphore, #tpu.memory_space<semaphore_mem>>) attributes {dimension_semantics = [#tpu.dimension_semantics<parallel>, #tpu.dimension_semantics<arbitrary>], iteration_bounds = array<i64: 2, 1>, scalar_prefetch = 0 : i64, scratch_operands = 2 : i64, tpu.core_type = #tpu.core_type<tc>, window_params = [{}, {pipeline_mode = #tpu.pipeline_mode<synchronous>, transform_indices = @transform_1, window_bounds = array<i64: 1152, 128>}, {pipeline_mode = #tpu.pipeline_mode<synchronous>, transform_indices = @transform_2, window_bounds = array<i64: 2, 128>}, {transform_indices = @transform_3, window_bounds = array<i64: 1, 16, 16, 128>}, {transform_indices = @transform_4, window_bounds = array<i64: 1, 1, 2, 128>}]} {
    %c1_i32 = arith.constant 1 : i32
    %0 = arith.andi %arg1, %c1_i32 : i32
    %c0_i32 = arith.constant 0 : i32
    %1 = arith.cmpi eq, %arg1, %c0_i32 : i32
    %2 = arith.extui %1 : i1 to i32
    %c0_i32_0 = arith.constant 0 : i32
    %3 = arith.cmpi ne, %2, %c0_i32_0 : i32
    scf.if %3 {
      %c-1_i32 = arith.constant -1 : i32
      %c0_i32_86 = arith.constant 0 : i32
      %123 = arith.maxsi %c-1_i32, %c0_i32_86 : i32
      %c16_i32_87 = arith.constant 16 : i32
      %c15_i32_88 = arith.constant 15 : i32
      %124 = arith.minsi %c16_i32_87, %c15_i32_88 : i32
      %c0_i32_89 = arith.constant 0 : i32
      %c0_i32_90 = arith.constant 0 : i32
      %c0_i32_91 = arith.constant 0 : i32
      %c0_i32_92 = arith.constant 0 : i32
      %c0_i32_93 = arith.constant 0 : i32
      %125 = tpu.memref_slice %arg2[%arg0, %123, %c0_i32_92, %c0_i32_93] : memref<2x16x16x128xf32, #tpu.memory_space<any>> -> memref<1x1x16x128xf32, #tpu.memory_space<any>>
      %126 = tpu.memref_squeeze %125 : memref<1x1x16x128xf32, #tpu.memory_space<any>> -> memref<1x16x128xf32, #tpu.memory_space<any>>
      %c0_i32_94 = arith.constant 0 : i32
      %c1_i32_95 = arith.constant 1 : i32
      %c0_i32_96 = arith.constant 0 : i32
      %127 = tpu.memref_slice %arg7[%c0_i32_89, %c0_i32_94, %c1_i32_95, %c0_i32_96] : memref<2x18x18x128xf32, #tpu.memory_space<vmem>> -> memref<1x1x16x128xf32, #tpu.memory_space<vmem>>
      %128 = tpu.memref_squeeze %127 : memref<1x1x16x128xf32, #tpu.memory_space<vmem>> -> memref<1x16x128xf32, #tpu.memory_space<vmem>>
      %129 = tpu.memref_slice %arg8[%c0_i32_90, %c0_i32_91] : memref<2x3x!tpu.dma_semaphore, #tpu.memory_space<semaphore_mem>> -> memref<1x1x!tpu.dma_semaphore, #tpu.memory_space<semaphore_mem>>
      %130 = tpu.memref_squeeze %129 : memref<1x1x!tpu.dma_semaphore, #tpu.memory_space<semaphore_mem>> -> memref<!tpu.dma_semaphore, #tpu.memory_space<semaphore_mem>>
      tpu.enqueue_dma source(%126 : memref<1x16x128xf32, #tpu.memory_space<any>>) target(%128 : memref<1x16x128xf32, #tpu.memory_space<vmem>>) target_semaphore(%130 : memref<!tpu.dma_semaphore, #tpu.memory_space<semaphore_mem>>)
      %c0_i32_97 = arith.constant 0 : i32
      %c0_i32_98 = arith.constant 0 : i32
      %c1_i32_99 = arith.constant 1 : i32
      %c0_i32_100 = arith.constant 0 : i32
      %c0_i32_101 = arith.constant 0 : i32
      %c0_i32_102 = arith.constant 0 : i32
      %131 = tpu.memref_slice %arg2[%arg0, %c0_i32_100, %c0_i32_101, %c0_i32_102] : memref<2x16x16x128xf32, #tpu.memory_space<any>> -> memref<1x16x16x128xf32, #tpu.memory_space<any>>
      %132 = tpu.memref_squeeze %131 : memref<1x16x16x128xf32, #tpu.memory_space<any>> -> memref<16x16x128xf32, #tpu.memory_space<any>>
      %c1_i32_103 = arith.constant 1 : i32
      %c1_i32_104 = arith.constant 1 : i32
      %c0_i32_105 = arith.constant 0 : i32
      %133 = tpu.memref_slice %arg7[%c0_i32_97, %c1_i32_103, %c1_i32_104, %c0_i32_105] : memref<2x18x18x128xf32, #tpu.memory_space<vmem>> -> memref<1x16x16x128xf32, #tpu.memory_space<vmem>>
      %134 = tpu.memref_squeeze %133 : memref<1x16x16x128xf32, #tpu.memory_space<vmem>> -> memref<16x16x128xf32, #tpu.memory_space<vmem>>
      %135 = tpu.memref_slice %arg8[%c0_i32_98, %c1_i32_99] : memref<2x3x!tpu.dma_semaphore, #tpu.memory_space<semaphore_mem>> -> memref<1x1x!tpu.dma_semaphore, #tpu.memory_space<semaphore_mem>>
      %136 = tpu.memref_squeeze %135 : memref<1x1x!tpu.dma_semaphore, #tpu.memory_space<semaphore_mem>> -> memref<!tpu.dma_semaphore, #tpu.memory_space<semaphore_mem>>
      tpu.enqueue_dma source(%132 : memref<16x16x128xf32, #tpu.memory_space<any>>) target(%134 : memref<16x16x128xf32, #tpu.memory_space<vmem>>) target_semaphore(%136 : memref<!tpu.dma_semaphore, #tpu.memory_space<semaphore_mem>>)
      %c0_i32_106 = arith.constant 0 : i32
      %c0_i32_107 = arith.constant 0 : i32
      %c2_i32_108 = arith.constant 2 : i32
      %c0_i32_109 = arith.constant 0 : i32
      %c0_i32_110 = arith.constant 0 : i32
      %137 = tpu.memref_slice %arg2[%arg0, %124, %c0_i32_109, %c0_i32_110] : memref<2x16x16x128xf32, #tpu.memory_space<any>> -> memref<1x1x16x128xf32, #tpu.memory_space<any>>
      %138 = tpu.memref_squeeze %137 : memref<1x1x16x128xf32, #tpu.memory_space<any>> -> memref<1x16x128xf32, #tpu.memory_space<any>>
      %c17_i32_111 = arith.constant 17 : i32
      %c1_i32_112 = arith.constant 1 : i32
      %c0_i32_113 = arith.constant 0 : i32
      %139 = tpu.memref_slice %arg7[%c0_i32_106, %c17_i32_111, %c1_i32_112, %c0_i32_113] : memref<2x18x18x128xf32, #tpu.memory_space<vmem>> -> memref<1x1x16x128xf32, #tpu.memory_space<vmem>>
      %140 = tpu.memref_squeeze %139 : memref<1x1x16x128xf32, #tpu.memory_space<vmem>> -> memref<1x16x128xf32, #tpu.memory_space<vmem>>
      %141 = tpu.memref_slice %arg8[%c0_i32_107, %c2_i32_108] : memref<2x3x!tpu.dma_semaphore, #tpu.memory_space<semaphore_mem>> -> memref<1x1x!tpu.dma_semaphore, #tpu.memory_space<semaphore_mem>>
      %142 = tpu.memref_squeeze %141 : memref<1x1x!tpu.dma_semaphore, #tpu.memory_space<semaphore_mem>> -> memref<!tpu.dma_semaphore, #tpu.memory_space<semaphore_mem>>
      tpu.enqueue_dma source(%138 : memref<1x16x128xf32, #tpu.memory_space<any>>) target(%140 : memref<1x16x128xf32, #tpu.memory_space<vmem>>) target_semaphore(%142 : memref<!tpu.dma_semaphore, #tpu.memory_space<semaphore_mem>>)
    } else {
    }
    %c1_i32_1 = arith.constant 1 : i32
    %4 = arith.addi %arg1, %c1_i32_1 : i32
    %c1_i32_2 = arith.constant 1 : i32
    %5 = arith.cmpi slt, %4, %c1_i32_2 : i32
    %6 = arith.extui %5 : i1 to i32
    %c0_i32_3 = arith.constant 0 : i32
    %7 = arith.cmpi ne, %6, %c0_i32_3 : i32
    scf.if %7 {
      %c1_i32_86 = arith.constant 1 : i32
      %123 = arith.addi %arg1, %c1_i32_86 : i32
      %c1_i32_87 = arith.constant 1 : i32
      %124 = arith.subi %c1_i32_87, %0 : i32
      %c16_i32_88 = arith.constant 16 : i32
      %125 = arith.muli %123, %c16_i32_88 : i32
      %c1_i32_89 = arith.constant 1 : i32
      %126 = arith.subi %125, %c1_i32_89 : i32
      %c0_i32_90 = arith.constant 0 : i32
      %127 = arith.maxsi %126, %c0_i32_90 : i32
      %c16_i32_91 = arith.constant 16 : i32
      %128 = arith.addi %125, %c16_i32_91 : i32
      %c15_i32_92 = arith.constant 15 : i32
      %129 = arith.minsi %128, %c15_i32_92 : i32
      %c0_i32_93 = arith.constant 0 : i32
      %c0_i32_94 = arith.constant 0 : i32
      %c0_i32_95 = arith.constant 0 : i32
      %130 = tpu.memref_slice %arg2[%arg0, %127, %c0_i32_94, %c0_i32_95] : memref<2x16x16x128xf32, #tpu.memory_space<any>> -> memref<1x1x16x128xf32, #tpu.memory_space<any>>
      %131 = tpu.memref_squeeze %130 : memref<1x1x16x128xf32, #tpu.memory_space<any>> -> memref<1x16x128xf32, #tpu.memory_space<any>>
      %c0_i32_96 = arith.constant 0 : i32
      %c1_i32_97 = arith.constant 1 : i32
      %c0_i32_98 = arith.constant 0 : i32
      %132 = tpu.memref_slice %arg7[%124, %c0_i32_96, %c1_i32_97, %c0_i32_98] : memref<2x18x18x128xf32, #tpu.memory_space<vmem>> -> memref<1x1x16x128xf32, #tpu.memory_space<vmem>>
      %133 = tpu.memref_squeeze %132 : memref<1x1x16x128xf32, #tpu.memory_space<vmem>> -> memref<1x16x128xf32, #tpu.memory_space<vmem>>
      %134 = tpu.memref_slice %arg8[%124, %c0_i32_93] : memref<2x3x!tpu.dma_semaphore, #tpu.memory_space<semaphore_mem>> -> memref<1x1x!tpu.dma_semaphore, #tpu.memory_space<semaphore_mem>>
      %135 = tpu.memref_squeeze %134 : memref<1x1x!tpu.dma_semaphore, #tpu.memory_space<semaphore_mem>> -> memref<!tpu.dma_semaphore, #tpu.memory_space<semaphore_mem>>
      tpu.enqueue_dma source(%131 : memref<1x16x128xf32, #tpu.memory_space<any>>) target(%133 : memref<1x16x128xf32, #tpu.memory_space<vmem>>) target_semaphore(%135 : memref<!tpu.dma_semaphore, #tpu.memory_space<semaphore_mem>>)
      %c1_i32_99 = arith.constant 1 : i32
      %c0_i32_100 = arith.constant 0 : i32
      %c0_i32_101 = arith.constant 0 : i32
      %136 = tpu.memref_slice %arg2[%arg0, %125, %c0_i32_100, %c0_i32_101] : memref<2x16x16x128xf32, #tpu.memory_space<any>> -> memref<1x16x16x128xf32, #tpu.memory_space<any>>
      %137 = tpu.memref_squeeze %136 : memref<1x16x16x128xf32, #tpu.memory_space<any>> -> memref<16x16x128xf32, #tpu.memory_space<any>>
      %c1_i32_102 = arith.constant 1 : i32
      %c1_i32_103 = arith.constant 1 : i32
      %c0_i32_104 = arith.constant 0 : i32
      %138 = tpu.memref_slice %arg7[%124, %c1_i32_102, %c1_i32_103, %c0_i32_104] : memref<2x18x18x128xf32, #tpu.memory_space<vmem>> -> memref<1x16x16x128xf32, #tpu.memory_space<vmem>>
      %139 = tpu.memref_squeeze %138 : memref<1x16x16x128xf32, #tpu.memory_space<vmem>> -> memref<16x16x128xf32, #tpu.memory_space<vmem>>
      %140 = tpu.memref_slice %arg8[%124, %c1_i32_99] : memref<2x3x!tpu.dma_semaphore, #tpu.memory_space<semaphore_mem>> -> memref<1x1x!tpu.dma_semaphore, #tpu.memory_space<semaphore_mem>>
      %141 = tpu.memref_squeeze %140 : memref<1x1x!tpu.dma_semaphore, #tpu.memory_space<semaphore_mem>> -> memref<!tpu.dma_semaphore, #tpu.memory_space<semaphore_mem>>
      tpu.enqueue_dma source(%137 : memref<16x16x128xf32, #tpu.memory_space<any>>) target(%139 : memref<16x16x128xf32, #tpu.memory_space<vmem>>) target_semaphore(%141 : memref<!tpu.dma_semaphore, #tpu.memory_space<semaphore_mem>>)
      %c2_i32_105 = arith.constant 2 : i32
      %c0_i32_106 = arith.constant 0 : i32
      %c0_i32_107 = arith.constant 0 : i32
      %142 = tpu.memref_slice %arg2[%arg0, %129, %c0_i32_106, %c0_i32_107] : memref<2x16x16x128xf32, #tpu.memory_space<any>> -> memref<1x1x16x128xf32, #tpu.memory_space<any>>
      %143 = tpu.memref_squeeze %142 : memref<1x1x16x128xf32, #tpu.memory_space<any>> -> memref<1x16x128xf32, #tpu.memory_space<any>>
      %c17_i32_108 = arith.constant 17 : i32
      %c1_i32_109 = arith.constant 1 : i32
      %c0_i32_110 = arith.constant 0 : i32
      %144 = tpu.memref_slice %arg7[%124, %c17_i32_108, %c1_i32_109, %c0_i32_110] : memref<2x18x18x128xf32, #tpu.memory_space<vmem>> -> memref<1x1x16x128xf32, #tpu.memory_space<vmem>>
      %145 = tpu.memref_squeeze %144 : memref<1x1x16x128xf32, #tpu.memory_space<vmem>> -> memref<1x16x128xf32, #tpu.memory_space<vmem>>
      %146 = tpu.memref_slice %arg8[%124, %c2_i32_105] : memref<2x3x!tpu.dma_semaphore, #tpu.memory_space<semaphore_mem>> -> memref<1x1x!tpu.dma_semaphore, #tpu.memory_space<semaphore_mem>>
      %147 = tpu.memref_squeeze %146 : memref<1x1x!tpu.dma_semaphore, #tpu.memory_space<semaphore_mem>> -> memref<!tpu.dma_semaphore, #tpu.memory_space<semaphore_mem>>
      tpu.enqueue_dma source(%143 : memref<1x16x128xf32, #tpu.memory_space<any>>) target(%145 : memref<1x16x128xf32, #tpu.memory_space<vmem>>) target_semaphore(%147 : memref<!tpu.dma_semaphore, #tpu.memory_space<semaphore_mem>>)
    } else {
    }
    %c16_i32 = arith.constant 16 : i32
    %8 = arith.muli %arg1, %c16_i32 : i32
    %c1_i32_4 = arith.constant 1 : i32
    %9 = arith.subi %8, %c1_i32_4 : i32
    %c0_i32_5 = arith.constant 0 : i32
    %10 = arith.maxsi %9, %c0_i32_5 : i32
    %c16_i32_6 = arith.constant 16 : i32
    %11 = arith.addi %8, %c16_i32_6 : i32
    %c15_i32 = arith.constant 15 : i32
    %12 = arith.minsi %11, %c15_i32 : i32
    %c0_i32_7 = arith.constant 0 : i32
    %c0_i32_8 = arith.constant 0 : i32
    %c0_i32_9 = arith.constant 0 : i32
    %13 = tpu.memref_slice %arg2[%arg0, %10, %c0_i32_8, %c0_i32_9] : memref<2x16x16x128xf32, #tpu.memory_space<any>> -> memref<1x1x16x128xf32, #tpu.memory_space<any>>
    %14 = tpu.memref_squeeze %13 : memref<1x1x16x128xf32, #tpu.memory_space<any>> -> memref<1x16x128xf32, #tpu.memory_space<any>>
    %c0_i32_10 = arith.constant 0 : i32
    %c1_i32_11 = arith.constant 1 : i32
    %c0_i32_12 = arith.constant 0 : i32
    %15 = tpu.memref_slice %arg7[%0, %c0_i32_10, %c1_i32_11, %c0_i32_12] : memref<2x18x18x128xf32, #tpu.memory_space<vmem>> -> memref<1x1x16x128xf32, #tpu.memory_space<vmem>>
    %16 = tpu.memref_squeeze %15 : memref<1x1x16x128xf32, #tpu.memory_space<vmem>> -> memref<1x16x128xf32, #tpu.memory_space<vmem>>
    %17 = tpu.memref_slice %arg8[%0, %c0_i32_7] : memref<2x3x!tpu.dma_semaphore, #tpu.memory_space<semaphore_mem>> -> memref<1x1x!tpu.dma_semaphore, #tpu.memory_space<semaphore_mem>>
    %18 = tpu.memref_squeeze %17 : memref<1x1x!tpu.dma_semaphore, #tpu.memory_space<semaphore_mem>> -> memref<!tpu.dma_semaphore, #tpu.memory_space<semaphore_mem>>
    tpu.wait_dma2 semaphore(%18 : memref<!tpu.dma_semaphore, #tpu.memory_space<semaphore_mem>>) src(%14 : memref<1x16x128xf32, #tpu.memory_space<any>>) dst(%16 : memref<1x16x128xf32, #tpu.memory_space<vmem>>)
    %c1_i32_13 = arith.constant 1 : i32
    %c0_i32_14 = arith.constant 0 : i32
    %c0_i32_15 = arith.constant 0 : i32
    %19 = tpu.memref_slice %arg2[%arg0, %8, %c0_i32_14, %c0_i32_15] : memref<2x16x16x128xf32, #tpu.memory_space<any>> -> memref<1x16x16x128xf32, #tpu.memory_space<any>>
    %20 = tpu.memref_squeeze %19 : memref<1x16x16x128xf32, #tpu.memory_space<any>> -> memref<16x16x128xf32, #tpu.memory_space<any>>
    %c1_i32_16 = arith.constant 1 : i32
    %c1_i32_17 = arith.constant 1 : i32
    %c0_i32_18 = arith.constant 0 : i32
    %21 = tpu.memref_slice %arg7[%0, %c1_i32_16, %c1_i32_17, %c0_i32_18] : memref<2x18x18x128xf32, #tpu.memory_space<vmem>> -> memref<1x16x16x128xf32, #tpu.memory_space<vmem>>
    %22 = tpu.memref_squeeze %21 : memref<1x16x16x128xf32, #tpu.memory_space<vmem>> -> memref<16x16x128xf32, #tpu.memory_space<vmem>>
    %23 = tpu.memref_slice %arg8[%0, %c1_i32_13] : memref<2x3x!tpu.dma_semaphore, #tpu.memory_space<semaphore_mem>> -> memref<1x1x!tpu.dma_semaphore, #tpu.memory_space<semaphore_mem>>
    %24 = tpu.memref_squeeze %23 : memref<1x1x!tpu.dma_semaphore, #tpu.memory_space<semaphore_mem>> -> memref<!tpu.dma_semaphore, #tpu.memory_space<semaphore_mem>>
    tpu.wait_dma2 semaphore(%24 : memref<!tpu.dma_semaphore, #tpu.memory_space<semaphore_mem>>) src(%20 : memref<16x16x128xf32, #tpu.memory_space<any>>) dst(%22 : memref<16x16x128xf32, #tpu.memory_space<vmem>>)
    %c2_i32 = arith.constant 2 : i32
    %c0_i32_19 = arith.constant 0 : i32
    %c0_i32_20 = arith.constant 0 : i32
    %25 = tpu.memref_slice %arg2[%arg0, %12, %c0_i32_19, %c0_i32_20] : memref<2x16x16x128xf32, #tpu.memory_space<any>> -> memref<1x1x16x128xf32, #tpu.memory_space<any>>
    %26 = tpu.memref_squeeze %25 : memref<1x1x16x128xf32, #tpu.memory_space<any>> -> memref<1x16x128xf32, #tpu.memory_space<any>>
    %c17_i32 = arith.constant 17 : i32
    %c1_i32_21 = arith.constant 1 : i32
    %c0_i32_22 = arith.constant 0 : i32
    %27 = tpu.memref_slice %arg7[%0, %c17_i32, %c1_i32_21, %c0_i32_22] : memref<2x18x18x128xf32, #tpu.memory_space<vmem>> -> memref<1x1x16x128xf32, #tpu.memory_space<vmem>>
    %28 = tpu.memref_squeeze %27 : memref<1x1x16x128xf32, #tpu.memory_space<vmem>> -> memref<1x16x128xf32, #tpu.memory_space<vmem>>
    %29 = tpu.memref_slice %arg8[%0, %c2_i32] : memref<2x3x!tpu.dma_semaphore, #tpu.memory_space<semaphore_mem>> -> memref<1x1x!tpu.dma_semaphore, #tpu.memory_space<semaphore_mem>>
    %30 = tpu.memref_squeeze %29 : memref<1x1x!tpu.dma_semaphore, #tpu.memory_space<semaphore_mem>> -> memref<!tpu.dma_semaphore, #tpu.memory_space<semaphore_mem>>
    tpu.wait_dma2 semaphore(%30 : memref<!tpu.dma_semaphore, #tpu.memory_space<semaphore_mem>>) src(%26 : memref<1x16x128xf32, #tpu.memory_space<any>>) dst(%28 : memref<1x16x128xf32, #tpu.memory_space<vmem>>)
    %cst = arith.constant 0.000000e+00 : f32
    %31 = vector.broadcast %cst : f32 to vector<18x1x128xf32>
    %32 = arith.index_cast %0 : i32 to index
    %c0 = arith.constant 0 : index
    %c0_23 = arith.constant 0 : index
    %c0_24 = arith.constant 0 : index
    %33 = vector.load %arg7[%32, %c0, %c0_23, %c0_24] : memref<2x18x18x128xf32, #tpu.memory_space<vmem>>, vector<1x18x1x128xf32>
    %34 = vector.shape_cast %33 : vector<1x18x1x128xf32> to vector<18x1x128xf32>
    %35 = vector.shape_cast %31 : vector<18x1x128xf32> to vector<1x18x1x128xf32>
    tpu.vector_store %arg7[%32, %c0, %c0_23, %c0_24], %35 {strides = array<i32>} : memref<2x18x18x128xf32, #tpu.memory_space<vmem>>, vector<1x18x1x128xf32>,
    %36 = arith.index_cast %0 : i32 to index
    %c0_25 = arith.constant 0 : index
    %c17 = arith.constant 17 : index
    %c0_26 = arith.constant 0 : index
    %37 = vector.load %arg7[%36, %c0_25, %c17, %c0_26] : memref<2x18x18x128xf32, #tpu.memory_space<vmem>>, vector<1x18x1x128xf32>
    %38 = vector.shape_cast %37 : vector<1x18x1x128xf32> to vector<18x1x128xf32>
    %39 = vector.shape_cast %31 : vector<18x1x128xf32> to vector<1x18x1x128xf32>
    tpu.vector_store %arg7[%36, %c0_25, %c17, %c0_26], %39 {strides = array<i32>} : memref<2x18x18x128xf32, #tpu.memory_space<vmem>>, vector<1x18x1x128xf32>,
    %c0_i32_27 = arith.constant 0 : i32
    %40 = arith.cmpi eq, %arg1, %c0_i32_27 : i32
    %41 = arith.extui %40 : i1 to i32
    %c0_i32_28 = arith.constant 0 : i32
    %42 = arith.cmpi ne, %41, %c0_i32_28 : i32
    scf.if %42 {
      %cst_86 = arith.constant 0.000000e+00 : f32
      %123 = vector.broadcast %cst_86 : f32 to vector<1x18x128xf32>
      %124 = arith.index_cast %0 : i32 to index
      %c0_87 = arith.constant 0 : index
      %c0_88 = arith.constant 0 : index
      %c0_89 = arith.constant 0 : index
      %125 = vector.load %arg7[%124, %c0_87, %c0_88, %c0_89] : memref<2x18x18x128xf32, #tpu.memory_space<vmem>>, vector<1x1x18x128xf32>
      %126 = vector.shape_cast %125 : vector<1x1x18x128xf32> to vector<1x18x128xf32>
      %127 = vector.shape_cast %123 : vector<1x18x128xf32> to vector<1x1x18x128xf32>
      tpu.vector_store %arg7[%124, %c0_87, %c0_88, %c0_89], %127 {strides = array<i32>} : memref<2x18x18x128xf32, #tpu.memory_space<vmem>>, vector<1x1x18x128xf32>,
    } else {
    }
    %c0_i32_29 = arith.constant 0 : i32
    %43 = arith.cmpi eq, %arg1, %c0_i32_29 : i32
    %44 = arith.extui %43 : i1 to i32
    %c0_i32_30 = arith.constant 0 : i32
    %45 = arith.cmpi ne, %44, %c0_i32_30 : i32
    scf.if %45 {
      %cst_86 = arith.constant 0.000000e+00 : f32
      %123 = vector.broadcast %cst_86 : f32 to vector<1x18x128xf32>
      %124 = arith.index_cast %0 : i32 to index
      %c17_87 = arith.constant 17 : index
      %c0_88 = arith.constant 0 : index
      %c0_89 = arith.constant 0 : index
      %125 = vector.load %arg7[%124, %c17_87, %c0_88, %c0_89] : memref<2x18x18x128xf32, #tpu.memory_space<vmem>>, vector<1x1x18x128xf32>
      %126 = vector.shape_cast %125 : vector<1x1x18x128xf32> to vector<1x18x128xf32>
      %127 = vector.shape_cast %123 : vector<1x18x128xf32> to vector<1x1x18x128xf32>
      tpu.vector_store %arg7[%124, %c17_87, %c0_88, %c0_89], %127 {strides = array<i32>} : memref<2x18x18x128xf32, #tpu.memory_space<vmem>>, vector<1x1x18x128xf32>,
    } else {
    }
    %cst_31 = arith.constant 0.000000e+00 : f32
    %46 = vector.broadcast %cst_31 : f32 to vector<256x128xf32>
    %47 = arith.index_cast %0 : i32 to index
    %c0_32 = arith.constant 0 : index
    %c0_33 = arith.constant 0 : index
    %c0_34 = arith.constant 0 : index
    %48 = vector.load %arg7[%47, %c0_32, %c0_33, %c0_34] : memref<2x18x18x128xf32, #tpu.memory_space<vmem>>, vector<1x16x16x128xf32>
    %49 = vector.shape_cast %48 : vector<1x16x16x128xf32> to vector<16x16x128xf32>
    %50 = vector.shape_cast %49 : vector<16x16x128xf32> to vector<256x128xf32>
    %c0_35 = arith.constant 0 : index
    %c0_36 = arith.constant 0 : index
    %51 = vector.load %arg3[%c0_35, %c0_36] : memref<1152x128xf32, #tpu.memory_space<vmem>>, vector<128x128xf32>
    %cst_37 = arith.constant dense<0.000000e+00> : vector<256x128xf32>
    %52 = tpu.matmul %50, %51, %cst_37 {dimension_numbers = #tpu.dot_dimension_numbers<[1], [0], [0], [1], [0, 0, 1, 1], [], []>} : vector<256x128xf32>, vector<128x128xf32>, vector<256x128xf32> -> vector<256x128xf32>
    %53 = arith.addf %46, %52 : vector<256x128xf32>
    %54 = arith.index_cast %0 : i32 to index
    %c0_38 = arith.constant 0 : index
    %c1 = arith.constant 1 : index
    %c0_39 = arith.constant 0 : index
    %55 = vector.load %arg7[%54, %c0_38, %c1, %c0_39] : memref<2x18x18x128xf32, #tpu.memory_space<vmem>>, vector<1x16x16x128xf32>
    %56 = vector.shape_cast %55 : vector<1x16x16x128xf32> to vector<16x16x128xf32>
    %57 = vector.shape_cast %56 : vector<16x16x128xf32> to vector<256x128xf32>
    %c128 = arith.constant 128 : index
    %c0_40 = arith.constant 0 : index
    %58 = vector.load %arg3[%c128, %c0_40] : memref<1152x128xf32, #tpu.memory_space<vmem>>, vector<128x128xf32>
    %cst_41 = arith.constant dense<0.000000e+00> : vector<256x128xf32>
    %59 = tpu.matmul %57, %58, %cst_41 {dimension_numbers = #tpu.dot_dimension_numbers<[1], [0], [0], [1], [0, 0, 1, 1], [], []>} : vector<256x128xf32>, vector<128x128xf32>, vector<256x128xf32> -> vector<256x128xf32>
    %60 = arith.addf %53, %59 : vector<256x128xf32>
    %61 = arith.index_cast %0 : i32 to index
    %c0_42 = arith.constant 0 : index
    %c2 = arith.constant 2 : index
    %c0_43 = arith.constant 0 : index
    %62 = vector.load %arg7[%61, %c0_42, %c2, %c0_43] : memref<2x18x18x128xf32, #tpu.memory_space<vmem>>, vector<1x16x16x128xf32>
    %63 = vector.shape_cast %62 : vector<1x16x16x128xf32> to vector<16x16x128xf32>
    %64 = vector.shape_cast %63 : vector<16x16x128xf32> to vector<256x128xf32>
    %c256 = arith.constant 256 : index
    %c0_44 = arith.constant 0 : index
    %65 = vector.load %arg3[%c256, %c0_44] : memref<1152x128xf32, #tpu.memory_space<vmem>>, vector<128x128xf32>
    %cst_45 = arith.constant dense<0.000000e+00> : vector<256x128xf32>
    %66 = tpu.matmul %64, %65, %cst_45 {dimension_numbers = #tpu.dot_dimension_numbers<[1], [0], [0], [1], [0, 0, 1, 1], [], []>} : vector<256x128xf32>, vector<128x128xf32>, vector<256x128xf32> -> vector<256x128xf32>
    %67 = arith.addf %60, %66 : vector<256x128xf32>
    %68 = arith.index_cast %0 : i32 to index
    %c1_46 = arith.constant 1 : index
    %c0_47 = arith.constant 0 : index
    %c0_48 = arith.constant 0 : index
    %69 = vector.load %arg7[%68, %c1_46, %c0_47, %c0_48] : memref<2x18x18x128xf32, #tpu.memory_space<vmem>>, vector<1x16x16x128xf32>
    %70 = vector.shape_cast %69 : vector<1x16x16x128xf32> to vector<16x16x128xf32>
    %71 = vector.shape_cast %70 : vector<16x16x128xf32> to vector<256x128xf32>
    %c384 = arith.constant 384 : index
    %c0_49 = arith.constant 0 : index
    %72 = vector.load %arg3[%c384, %c0_49] : memref<1152x128xf32, #tpu.memory_space<vmem>>, vector<128x128xf32>
    %cst_50 = arith.constant dense<0.000000e+00> : vector<256x128xf32>
    %73 = tpu.matmul %71, %72, %cst_50 {dimension_numbers = #tpu.dot_dimension_numbers<[1], [0], [0], [1], [0, 0, 1, 1], [], []>} : vector<256x128xf32>, vector<128x128xf32>, vector<256x128xf32> -> vector<256x128xf32>
    %74 = arith.addf %67, %73 : vector<256x128xf32>
    %75 = arith.index_cast %0 : i32 to index
    %c1_51 = arith.constant 1 : index
    %c1_52 = arith.constant 1 : index
    %c0_53 = arith.constant 0 : index
    %76 = vector.load %arg7[%75, %c1_51, %c1_52, %c0_53] : memref<2x18x18x128xf32, #tpu.memory_space<vmem>>, vector<1x16x16x128xf32>
    %77 = vector.shape_cast %76 : vector<1x16x16x128xf32> to vector<16x16x128xf32>
    %78 = vector.shape_cast %77 : vector<16x16x128xf32> to vector<256x128xf32>
    %c512 = arith.constant 512 : index
    %c0_54 = arith.constant 0 : index
    %79 = vector.load %arg3[%c512, %c0_54] : memref<1152x128xf32, #tpu.memory_space<vmem>>, vector<128x128xf32>
    %cst_55 = arith.constant dense<0.000000e+00> : vector<256x128xf32>
    %80 = tpu.matmul %78, %79, %cst_55 {dimension_numbers = #tpu.dot_dimension_numbers<[1], [0], [0], [1], [0, 0, 1, 1], [], []>} : vector<256x128xf32>, vector<128x128xf32>, vector<256x128xf32> -> vector<256x128xf32>
    %81 = arith.addf %74, %80 : vector<256x128xf32>
    %82 = arith.index_cast %0 : i32 to index
    %c1_56 = arith.constant 1 : index
    %c2_57 = arith.constant 2 : index
    %c0_58 = arith.constant 0 : index
    %83 = vector.load %arg7[%82, %c1_56, %c2_57, %c0_58] : memref<2x18x18x128xf32, #tpu.memory_space<vmem>>, vector<1x16x16x128xf32>
    %84 = vector.shape_cast %83 : vector<1x16x16x128xf32> to vector<16x16x128xf32>
    %85 = vector.shape_cast %84 : vector<16x16x128xf32> to vector<256x128xf32>
    %c640 = arith.constant 640 : index
    %c0_59 = arith.constant 0 : index
    %86 = vector.load %arg3[%c640, %c0_59] : memref<1152x128xf32, #tpu.memory_space<vmem>>, vector<128x128xf32>
    %cst_60 = arith.constant dense<0.000000e+00> : vector<256x128xf32>
    %87 = tpu.matmul %85, %86, %cst_60 {dimension_numbers = #tpu.dot_dimension_numbers<[1], [0], [0], [1], [0, 0, 1, 1], [], []>} : vector<256x128xf32>, vector<128x128xf32>, vector<256x128xf32> -> vector<256x128xf32>
    %88 = arith.addf %81, %87 : vector<256x128xf32>
    %89 = arith.index_cast %0 : i32 to index
    %c2_61 = arith.constant 2 : index
    %c0_62 = arith.constant 0 : index
    %c0_63 = arith.constant 0 : index
    %90 = vector.load %arg7[%89, %c2_61, %c0_62, %c0_63] : memref<2x18x18x128xf32, #tpu.memory_space<vmem>>, vector<1x16x16x128xf32>
    %91 = vector.shape_cast %90 : vector<1x16x16x128xf32> to vector<16x16x128xf32>
    %92 = vector.shape_cast %91 : vector<16x16x128xf32> to vector<256x128xf32>
    %c768 = arith.constant 768 : index
    %c0_64 = arith.constant 0 : index
    %93 = vector.load %arg3[%c768, %c0_64] : memref<1152x128xf32, #tpu.memory_space<vmem>>, vector<128x128xf32>
    %cst_65 = arith.constant dense<0.000000e+00> : vector<256x128xf32>
    %94 = tpu.matmul %92, %93, %cst_65 {dimension_numbers = #tpu.dot_dimension_numbers<[1], [0], [0], [1], [0, 0, 1, 1], [], []>} : vector<256x128xf32>, vector<128x128xf32>, vector<256x128xf32> -> vector<256x128xf32>
    %95 = arith.addf %88, %94 : vector<256x128xf32>
    %96 = arith.index_cast %0 : i32 to index
    %c2_66 = arith.constant 2 : index
    %c1_67 = arith.constant 1 : index
    %c0_68 = arith.constant 0 : index
    %97 = vector.load %arg7[%96, %c2_66, %c1_67, %c0_68] : memref<2x18x18x128xf32, #tpu.memory_space<vmem>>, vector<1x16x16x128xf32>
    %98 = vector.shape_cast %97 : vector<1x16x16x128xf32> to vector<16x16x128xf32>
    %99 = vector.shape_cast %98 : vector<16x16x128xf32> to vector<256x128xf32>
    %c896 = arith.constant 896 : index
    %c0_69 = arith.constant 0 : index
    %100 = vector.load %arg3[%c896, %c0_69] : memref<1152x128xf32, #tpu.memory_space<vmem>>, vector<128x128xf32>
    %cst_70 = arith.constant dense<0.000000e+00> : vector<256x128xf32>
    %101 = tpu.matmul %99, %100, %cst_70 {dimension_numbers = #tpu.dot_dimension_numbers<[1], [0], [0], [1], [0, 0, 1, 1], [], []>} : vector<256x128xf32>, vector<128x128xf32>, vector<256x128xf32> -> vector<256x128xf32>
    %102 = arith.addf %95, %101 : vector<256x128xf32>
    %103 = arith.index_cast %0 : i32 to index
    %c2_71 = arith.constant 2 : index
    %c2_72 = arith.constant 2 : index
    %c0_73 = arith.constant 0 : index
    %104 = vector.load %arg7[%103, %c2_71, %c2_72, %c0_73] : memref<2x18x18x128xf32, #tpu.memory_space<vmem>>, vector<1x16x16x128xf32>
    %105 = vector.shape_cast %104 : vector<1x16x16x128xf32> to vector<16x16x128xf32>
    %106 = vector.shape_cast %105 : vector<16x16x128xf32> to vector<256x128xf32>
    %c1024 = arith.constant 1024 : index
    %c0_74 = arith.constant 0 : index
    %107 = vector.load %arg3[%c1024, %c0_74] : memref<1152x128xf32, #tpu.memory_space<vmem>>, vector<128x128xf32>
    %cst_75 = arith.constant dense<0.000000e+00> : vector<256x128xf32>
    %108 = tpu.matmul %106, %107, %cst_75 {dimension_numbers = #tpu.dot_dimension_numbers<[1], [0], [0], [1], [0, 0, 1, 1], [], []>} : vector<256x128xf32>, vector<128x128xf32>, vector<256x128xf32> -> vector<256x128xf32>
    %109 = arith.addf %102, %108 : vector<256x128xf32>
    %110 = vector.shape_cast %109 : vector<256x128xf32> to vector<16x16x128xf32>
    %c0_76 = arith.constant 0 : index
    %c0_77 = arith.constant 0 : index
    %c0_78 = arith.constant 0 : index
    %c0_79 = arith.constant 0 : index
    %111 = vector.load %arg5[%c0_76, %c0_77, %c0_78, %c0_79] : memref<1x16x16x128xf32, #tpu.memory_space<vmem>>, vector<1x16x16x128xf32>
    %112 = vector.shape_cast %111 : vector<1x16x16x128xf32> to vector<16x16x128xf32>
    %113 = vector.shape_cast %110 : vector<16x16x128xf32> to vector<1x16x16x128xf32>
    tpu.vector_store %arg5[%c0_76, %c0_77, %c0_78, %c0_79], %113 {strides = array<i32>} : memref<1x16x16x128xf32, #tpu.memory_space<vmem>>, vector<1x16x16x128xf32>,
    %cst_80 = arith.constant dense<0.000000e+00> : vector<128xf32>
    %114 = vector.multi_reduction <add>, %109, %cst_80 [0] : vector<256x128xf32> to vector<128xf32>
    %115 = vector.shape_cast %114 : vector<128xf32> to vector<1x128xf32>
    %116 = arith.mulf %109, %109 : vector<256x128xf32>
    %cst_81 = arith.constant dense<0.000000e+00> : vector<128xf32>
    %117 = vector.multi_reduction <add>, %116, %cst_81 [0] : vector<256x128xf32> to vector<128xf32>
    %118 = vector.shape_cast %117 : vector<128xf32> to vector<1x128xf32>
    %119 = tpu.concatenate %115, %118 in 0 : vector<1x128xf32>, vector<1x128xf32> -> vector<2x128xf32>
    %c0_82 = arith.constant 0 : index
    %c0_83 = arith.constant 0 : index
    %c0_84 = arith.constant 0 : index
    %c0_85 = arith.constant 0 : index
    %120 = vector.load %arg6[%c0_82, %c0_83, %c0_84, %c0_85] : memref<1x1x2x128xf32, #tpu.memory_space<vmem>>, vector<1x1x2x128xf32>
    %121 = vector.shape_cast %120 : vector<1x1x2x128xf32> to vector<2x128xf32>
    %122 = vector.shape_cast %119 : vector<2x128xf32> to vector<1x1x2x128xf32>
    tpu.vector_store %arg6[%c0_82, %c0_83, %c0_84, %c0_85], %122 {strides = array<i32>} : memref<1x1x2x128xf32, #tpu.memory_space<vmem>>, vector<1x1x2x128xf32>,
    return
  }
  func.func @transform_1(%arg0: i32, %arg1: i32) -> (i32, i32) {
    %c0_i32 = arith.constant 0 : i32
    %c0_i32_0 = arith.constant 0 : i32
    %c0_i32_1 = arith.constant 0 : i32
    return %c0_i32, %c0_i32_0 : i32, i32
  }
  func.func @transform_2(%arg0: i32, %arg1: i32) -> (i32, i32) {
    %c0_i32 = arith.constant 0 : i32
    %c0_i32_0 = arith.constant 0 : i32
    %c0_i32_1 = arith.constant 0 : i32
    return %c0_i32, %c0_i32_0 : i32, i32
  }
  func.func @transform_3(%arg0: i32, %arg1: i32) -> (i32, i32, i32, i32) {
    %c0_i32 = arith.constant 0 : i32
    %c0_i32_0 = arith.constant 0 : i32
    %c0_i32_1 = arith.constant 0 : i32
    return %arg0, %arg1, %c0_i32, %c0_i32_0 : i32, i32, i32, i32
  }
  func.func @transform_4(%arg0: i32, %arg1: i32) -> (i32, i32, i32, i32) {
    %c0_i32 = arith.constant 0 : i32
    %c0_i32_0 = arith.constant 0 : i32
    %c0_i32_1 = arith.constant 0 : i32
    return %arg0, %arg1, %c0_i32, %c0_i32_0 : i32, i32, i32, i32
  }
}

</mosaic_0001>

<bundles_post_ra>
// kernel: double_conv.5
= control target key start
LH: loop header
LB: loop body
LE: loop exit
PB: predicated region body
PF: predicated region fallthrough
CT: control target
= control target key end

     0   :  { %s533_s9 = smov 0   ;;  %s535_s10 = smov 0   ;;  %s740_s0 = inlined_call_operand.vmem [shape: f32[2,16,16,128], index: 0, kind: input, shape index: {}]   ;;  %s741_s1 = inlined_call_operand.vmem [shape: f32[2,8], index: 1, kind: input, shape index: {}]   ;;  %s742_s2 = inlined_call_operand.vmem [shape: f32[2,16,16,8], index: 2, kind: output, shape index: {}]  }
   0x1   :  { %s537_s11 = smov 0  }
   0x2 LB: > { %s24_s12 = sadd.s32 1, %s512_s10  ;;  %p459_p0 = scmp.ge.s32.totalorder %s516_s11, 1  ;;  %s516_s11 = sphi %s537_s11, %s12_s11   ;;  %s512_s10 = sphi %s535_s10, %s744_s10   ;;  %s508_s9 = sphi %s533_s9, %s743_s9  }
   0x3   : > { %p26_p1 = scmp.ge.s32.totalorder %s24_s12, 2  ;;  %p134_p2 = scmp.lt.s32.totalorder %s516_s11, 3 }
   0x5   : > { %s746_s12 = smov (%p26_p1, %s24_s12), 0  ;;  %p135_p3 = pnand %p459_p0, %p134_p2 }
   0x6   : > { %p167_p4 = scmp.lt.s32.totalorder (!%p135_p3), %s508_s9, 1  ;;  %v554_v0 = vld [vmem:[%s741_s1] ss:$0 sm:$0xff] (!%p135_p3)  ;;  %v564_v1 = vld [vmem:[%s741_s1 + $0x1] ss:$0 sm:$0xff] (!%p135_p3)  ;;  %vm326_vm0 = vcmask (!%p135_p3), 64512  }
   0x7   : > { %138 = sbr.rel (%p135_p3) target bundleno = 47 (0x2f), region = 28 }
   0xe   : > { %s748_s9 = smov (!%p167_p4, %s508_s9), 1 }
   0xf   : > { %s468_s13 = sshll.u32 %s748_s9, 8 }
  0x10   : > { %s559_s18 = scalar_lea.vmem %s740_s0, %s468_s13  ;;  %s587_s23 = scalar_lea.vmem %s742_s2, %s468_s13 }
  0x11   : > { %v188_v2 = vld [vmem:[%s559_s18] sm:$0xff]  ;;  %v189_v3 = vld [vmem:[%s559_s18 + $0x8] sm:$0xff]  ;;  %v190_v4 = vld [vmem:[%s559_s18 + $0x10] sm:$0xff] }
  0x12   : > { %v225_v5 = vmul.f32 %v554_v0, %v188_v2  ;;  %v226_v6 = vmul.f32 %v554_v0, %v189_v3  ;;  %v227_v7 = vmul.f32 %v554_v0, %v190_v4  ;;  %v191_v8 = vld [vmem:[%s559_s18 + $0x18] sm:$0xff]  ;;  %v192_v9 = vld [vmem:[%s559_s18 + $0x20] sm:$0xff]  ;;  %v193_v10 = vld [vmem:[%s559_s18 + $0x28] sm:$0xff] }
  0x13   : > { %v228_v11 = vmul.f32 %v554_v0, %v191_v8  ;;  %v229_v12 = vmul.f32 %v554_v0, %v192_v9  ;;  %v230_v13 = vmul.f32 %v554_v0, %v193_v10  ;;  %v194_v14 = vld [vmem:[%s559_s18 + $0x30] sm:$0xff]  ;;  %v195_v15 = vld [vmem:[%s559_s18 + $0x38] sm:$0xff]  ;;  %v196_v24 = vld [vmem:[%s559_s18 + $0x40] sm:$0xff] }
  0x14   : > { %v262_v16 = vadd.f32 %v564_v1, %v225_v5  ;;  %v263_v17 = vadd.f32 %v564_v1, %v226_v6  ;;  %v264_v18 = vadd.f32 %v564_v1, %v227_v7  ;;  %v231_v19 = vmul.f32 %v554_v0, %v194_v14  ;;  %v197_v25 = vld [vmem:[%s559_s18 + $0x48] sm:$0xff]  ;;  %v198_v26 = vld [vmem:[%s559_s18 + $0x50] sm:$0xff]  ;;  %v199_v31 = vld [vmem:[%s559_s18 + $0x58] sm:$0xff] }
  0x15   : > { %v265_v20 = vadd.f32 %v564_v1, %v228_v11  ;;  %v266_v21 = vadd.f32 %v564_v1, %v229_v12  ;;  %v267_v22 = vadd.f32 %v564_v1, %v230_v13  ;;  %v232_v23 = vmul.f32 %v554_v0, %v195_v15  ;;  %v200_v32 = vld [vmem:[%s559_s18 + $0x60] sm:$0xff]  ;;  %v201_v33 = vld [vmem:[%s559_s18 + $0x68] sm:$0xff]  ;;  %v202_v38 = vld [vmem:[%s559_s18 + $0x70] sm:$0xff] }
  0x16   : > { %v294_v27 = vmax.f32 %v262_v16, 0.0  ;;  %v295_v28 = vmax.f32 %v263_v17, 0.0  ;;  %v296_v29 = vmax.f32 %v264_v18, 0.0  ;;  %v268_v30 = vadd.f32 %v564_v1, %v231_v19  ;;  %v203_v43 = vld [vmem:[%s559_s18 + $0x78] sm:$0xff]  ;;  %v204_v56 = vld [vmem:[%s559_s18 + $0x80] sm:$0xff]  ;;  %v205_v57 = vld [vmem:[%s559_s18 + $0x88] sm:$0xff] }
  0x17   : > { %v297_v34 = vmax.f32 %v265_v20, 0.0  ;;  %v298_v35 = vmax.f32 %v266_v21, 0.0  ;;  %v299_v36 = vmax.f32 %v267_v22, 0.0  ;;  %v269_v37 = vadd.f32 %v564_v1, %v232_v23  ;;  %v206_v58 = vld [vmem:[%s559_s18 + $0x90] sm:$0xff]  ;;  %v207_v63 = vld [vmem:[%s559_s18 + $0x98] sm:$0xff]  ;;  %v208_v2 = vld [vmem:[%s559_s18 + $0xa0] sm:$0xff] }
  0x18   : > { %327 = vst.msk [vmem:[%s587_s23] sm:$0xff] %vm326_vm0, %v294_v27  ;;  %328 = vst.msk [vmem:[%s587_s23 + $0x8] sm:$0xff] %vm326_vm0, %v295_v28  ;;  %v300_v39 = vmax.f32 %v268_v30, 0.0  ;;  %v233_v40 = vmul.f32 %v554_v0, %v196_v24  ;;  %v234_v41 = vmul.f32 %v554_v0, %v197_v25  ;;  %v235_v42 = vmul.f32 %v554_v0, %v198_v26  ;;  %v209_v3 = vld [vmem:[%s559_s18 + $0xa8] sm:$0xff]  ;;  %v210_v8 = vld [vmem:[%s559_s18 + $0xb0] sm:$0xff] }
  0x19   : > { %329 = vst.msk [vmem:[%s587_s23 + $0x10] sm:$0xff] %vm326_vm0, %v296_v29  ;;  %330 = vst.msk [vmem:[%s587_s23 + $0x18] sm:$0xff] %vm326_vm0, %v297_v34  ;;  %v301_v44 = vmax.f32 %v269_v37, 0.0  ;;  %v236_v45 = vmul.f32 %v554_v0, %v199_v31  ;;  %v237_v46 = vmul.f32 %v554_v0, %v200_v32  ;;  %v238_v47 = vmul.f32 %v554_v0, %v201_v33  ;;  %v211_v13 = vld [vmem:[%s559_s18 + $0xb8] sm:$0xff]  ;;  %v212_v26 = vld [vmem:[%s559_s18 + $0xc0] sm:$0xff] }
  0x1a   : > { %331 = vst.msk [vmem:[%s587_s23 + $0x20] sm:$0xff] %vm326_vm0, %v298_v35  ;;  %332 = vst.msk [vmem:[%s587_s23 + $0x28] sm:$0xff] %vm326_vm0, %v299_v36  ;;  %v270_v48 = vadd.f32 %v564_v1, %v233_v40  ;;  %v271_v49 = vadd.f32 %v564_v1, %v234_v41  ;;  %v272_v50 = vadd.f32 %v564_v1, %v235_v42  ;;  %v213_v27 = vld [vmem:[%s559_s18 + $0xc8] sm:$0xff]  ;;  %v214_v28 = vld [vmem:[%s559_s18 + $0xd0] sm:$0xff] }
  0x1b   : > { %333 = vst.msk [vmem:[%s587_s23 + $0x30] sm:$0xff] %vm326_vm0, %v300_v39  ;;  %v239_v51 = vmul.f32 %v554_v0, %v202_v38  ;;  %334 = vst.msk [vmem:[%s587_s23 + $0x38] sm:$0xff] %vm326_vm0, %v301_v44  ;;  %v273_v52 = vadd.f32 %v564_v1, %v236_v45  ;;  %v274_v53 = vadd.f32 %v564_v1, %v237_v46  ;;  %v215_v33 = vld [vmem:[%s559_s18 + $0xd8] sm:$0xff]  ;;  %v216_v34 = vld [vmem:[%s559_s18 + $0xe0] sm:$0xff] }
  0x1c   : > { %v275_v54 = vadd.f32 %v564_v1, %v238_v47  ;;  %v240_v55 = vmul.f32 %v554_v0, %v203_v43  ;;  %v302_v59 = vmax.f32 %v270_v48, 0.0  ;;  %v303_v60 = vmax.f32 %v271_v49, 0.0  ;;  %v217_v35 = vld [vmem:[%s559_s18 + $0xe8] sm:$0xff]  ;;  %v218_v40 = vld [vmem:[%s559_s18 + $0xf0] sm:$0xff]  ;;  %v219_v45 = vld [vmem:[%s559_s18 + $0xf8] sm:$0xff] }
  0x1d   : > { %v304_v61 = vmax.f32 %v272_v50, 0.0  ;;  %v276_v62 = vadd.f32 %v564_v1, %v239_v51  ;;  %v305_v4 = vmax.f32 %v273_v52, 0.0  ;;  %v306_v5 = vmax.f32 %v274_v53, 0.0 }
  0x1e   : > { %v307_v6 = vmax.f32 %v275_v54, 0.0  ;;  %v277_v7 = vadd.f32 %v564_v1, %v240_v55  ;;  %335 = vst.msk [vmem:[%s587_s23 + $0x40] sm:$0xff] %vm326_vm0, %v302_v59  ;;  %336 = vst.msk [vmem:[%s587_s23 + $0x48] sm:$0xff] %vm326_vm0, %v303_v60  ;;  %v241_v10 = vmul.f32 %v554_v0, %v204_v56  ;;  %v242_v11 = vmul.f32 %v554_v0, %v205_v57 }
  0x1f   : > { %337 = vst.msk [vmem:[%s587_s23 + $0x50] sm:$0xff] %vm326_vm0, %v304_v61  ;;  %v308_v9 = vmax.f32 %v276_v62, 0.0  ;;  %v243_v12 = vmul.f32 %v554_v0, %v206_v58  ;;  %338 = vst.msk [vmem:[%s587_s23 + $0x58] sm:$0xff] %vm326_vm0, %v305_v4  ;;  %v244_v15 = vmul.f32 %v554_v0, %v207_v63  ;;  %v245_v16 = vmul.f32 %v554_v0, %v208_v2 }
  0x20   : > { %339 = vst.msk [vmem:[%s587_s23 + $0x60] sm:$0xff] %vm326_vm0, %v306_v5  ;;  %340 = vst.msk [vmem:[%s587_s23 + $0x68] sm:$0xff] %vm326_vm0, %v307_v6  ;;  %v309_v14 = vmax.f32 %v277_v7, 0.0  ;;  %v246_v17 = vmul.f32 %v554_v0, %v209_v3  ;;  %v278_v18 = vadd.f32 %v564_v1, %v241_v10  ;;  %v279_v19 = vadd.f32 %v564_v1, %v242_v11 }
  0x21   : > { %341 = vst.msk [vmem:[%s587_s23 + $0x70] sm:$0xff] %vm326_vm0, %v308_v9  ;;  %v280_v20 = vadd.f32 %v564_v1, %v243_v12  ;;  %v247_v21 = vmul.f32 %v554_v0, %v210_v8  ;;  %v281_v22 = vadd.f32 %v564_v1, %v244_v15  ;;  %v282_v23 = vadd.f32 %v564_v1, %v245_v16 }
  0x22   : > { %342 = vst.msk [vmem:[%s587_s23 + $0x78] sm:$0xff] %vm326_vm0, %v309_v14  ;;  %v283_v24 = vadd.f32 %v564_v1, %v246_v17  ;;  %v248_v25 = vmul.f32 %v554_v0, %v211_v13  ;;  %v310_v29 = vmax.f32 %v278_v18, 0.0  ;;  %v311_v30 = vmax.f32 %v279_v19, 0.0 }
  0x23   : > { %v312_v31 = vmax.f32 %v280_v20, 0.0  ;;  %v284_v32 = vadd.f32 %v564_v1, %v247_v21  ;;  %v313_v36 = vmax.f32 %v281_v22, 0.0  ;;  %v314_v37 = vmax.f32 %v282_v23, 0.0 }
  0x24   : > { %v315_v38 = vmax.f32 %v283_v24, 0.0  ;;  %v285_v39 = vadd.f32 %v564_v1, %v248_v25  ;;  %343 = vst.msk [vmem:[%s587_s23 + $0x80] sm:$0xff] %vm326_vm0, %v310_v29  ;;  %344 = vst.msk [vmem:[%s587_s23 + $0x88] sm:$0xff] %vm326_vm0, %v311_v30  ;;  %v249_v42 = vmul.f32 %v554_v0, %v212_v26  ;;  %v250_v43 = vmul.f32 %v554_v0, %v213_v27 }
  0x25   : > { %345 = vst.msk [vmem:[%s587_s23 + $0x90] sm:$0xff] %vm326_vm0, %v312_v31  ;;  %v316_v41 = vmax.f32 %v284_v32, 0.0  ;;  %v251_v44 = vmul.f32 %v554_v0, %v214_v28  ;;  %346 = vst.msk [vmem:[%s587_s23 + $0x98] sm:$0xff] %vm326_vm0, %v313_v36  ;;  %v252_v47 = vmul.f32 %v554_v0, %v215_v33  ;;  %v253_v48 = vmul.f32 %v554_v0, %v216_v34 }
  0x26   : > { %347 = vst.msk [vmem:[%s587_s23 + $0xa0] sm:$0xff] %vm326_vm0, %v314_v37  ;;  %348 = vst.msk [vmem:[%s587_s23 + $0xa8] sm:$0xff] %vm326_vm0, %v315_v38  ;;  %v317_v46 = vmax.f32 %v285_v39, 0.0  ;;  %v254_v49 = vmul.f32 %v554_v0, %v217_v35  ;;  %v286_v50 = vadd.f32 %v564_v1, %v249_v42  ;;  %v287_v51 = vadd.f32 %v564_v1, %v250_v43 }
  0x27   : > { %349 = vst.msk [vmem:[%s587_s23 + $0xb0] sm:$0xff] %vm326_vm0, %v316_v41  ;;  %v288_v52 = vadd.f32 %v564_v1, %v251_v44  ;;  %v255_v53 = vmul.f32 %v554_v0, %v218_v40  ;;  %v289_v54 = vadd.f32 %v564_v1, %v252_v47  ;;  %v290_v55 = vadd.f32 %v564_v1, %v253_v48 }
  0x28   : > { %350 = vst.msk [vmem:[%s587_s23 + $0xb8] sm:$0xff] %vm326_vm0, %v317_v46  ;;  %v291_v56 = vadd.f32 %v564_v1, %v254_v49  ;;  %v256_v57 = vmul.f32 %v554_v0, %v219_v45  ;;  %v318_v58 = vmax.f32 %v286_v50, 0.0  ;;  %v319_v59 = vmax.f32 %v287_v51, 0.0 }
  0x29   : > { %v320_v60 = vmax.f32 %v288_v52, 0.0  ;;  %v292_v61 = vadd.f32 %v564_v1, %v255_v53  ;;  %v321_v62 = vmax.f32 %v289_v54, 0.0  ;;  %v322_v63 = vmax.f32 %v290_v55, 0.0 }
  0x2a   : > { %v323_v2 = vmax.f32 %v291_v56, 0.0  ;;  %v293_v3 = vadd.f32 %v564_v1, %v256_v57  ;;  %351 = vst.msk [vmem:[%s587_s23 + $0xc0] sm:$0xff] %vm326_vm0, %v318_v58  ;;  %352 = vst.msk [vmem:[%s587_s23 + $0xc8] sm:$0xff] %vm326_vm0, %v319_v59 }
  0x2b   : > { %353 = vst.msk [vmem:[%s587_s23 + $0xd0] sm:$0xff] %vm326_vm0, %v320_v60  ;;  %v324_v4 = vmax.f32 %v292_v61, 0.0  ;;  %354 = vst.msk [vmem:[%s587_s23 + $0xd8] sm:$0xff] %vm326_vm0, %v321_v62 }
  0x2c   : > { %355 = vst.msk [vmem:[%s587_s23 + $0xe0] sm:$0xff] %vm326_vm0, %v322_v63  ;;  %356 = vst.msk [vmem:[%s587_s23 + $0xe8] sm:$0xff] %vm326_vm0, %v323_v2  ;;  %v325_v0 = vmax.f32 %v293_v3, 0.0 }
  0x2d   : > { %357 = vst.msk [vmem:[%s587_s23 + $0xf0] sm:$0xff] %vm326_vm0, %v324_v4 }
  0x2e   : > { %358 = vst.msk [vmem:[%s587_s23 + $0xf8] sm:$0xff] %vm326_vm0, %v325_v0 }
  0x2f PF: > { %s12_s11 = sadd.s32 1, %s516_s11   ;;  %s743_s9 = smov %s512_s10 }
  0x30   : > { %p9_p5 = scmp.ge.s32.totalorder %s12_s11, 4   ;;  %s744_s10 = smov %s746_s12 }
  0x32   :  { %11 = sbr.rel (!%p9_p5) target bundleno = 2 (0x2), region = 58 }

// kernel: double_conv.3
= control target key start
LH: loop header
LB: loop body
LE: loop exit
PB: predicated region body
PF: predicated region fallthrough
CT: control target
= control target key end

     0   :  { %s5961_s15 = smov 0   ;;  %s5963_s16 = smov 0   ;;  %s6984_s0 = inlined_call_operand.vmem [shape: f32[2,16,16,128], index: 0, kind: input, shape index: {}]   ;;  %s6985_s1 = inlined_call_operand.vmem [shape: f32[1152,128], index: 1, kind: input, shape index: {}]   ;;  %s6986_s2 = inlined_call_operand.vmem [shape: f32[2,128], index: 2, kind: input, shape index: {}]   ;;  %s6987_s3 = inlined_call_operand.vmem [shape: f32[2,16,16,128], index: 3, kind: output, shape index: {0}]   ;;  %s6988_s4 = inlined_call_operand.vmem [shape: f32[2,1,2,128], index: 4, kind: output, shape index: {1}]  }
   0x1   :  { %s5965_s17 = smov 0  }
   0x2 LB: > { %s27_s2 = sadd.s32 1, %s5928_s16  ;;  %p3843_p0 = scmp.ge.s32.totalorder %s5932_s17, 1  ;;  %s5932_s17 = sphi %s5965_s17, %s15_s17   ;;  %s5928_s16 = sphi %s5963_s16, %s7090_s16   ;;  %s5924_s15 = sphi %s5961_s15, %s7089_s15  }
   0x3   : > { %p29_p1 = scmp.ge.s32.totalorder %s27_s2, 2  ;;  %p147_p2 = scmp.lt.s32.totalorder %s5932_s17, 3 }
   0x5   : > { %s7092_s2 = smov (%p29_p1, %s27_s2), 0  ;;  %p148_p3 = pnand %p3843_p0, %p147_p2 }
   0x7   : > { %151 = sbr.rel (%p148_p3) target bundleno = 600 (0x258), region = 28 }
   0xe   : > { %p179_p4 = scmp.lt.s32.totalorder %s5924_s15, 1  ;;  %s3847_s18 = sshll.u32 %s5924_s15, 8 }
   0xf   : > { %s5982_s21 = scalar_lea.vmem %s6984_s0, %s3847_s18 }
  0x10   : > { %s7094_s15 = smov (!%p179_p4, %s5924_s15), 1  ;;  %v236_v0 = vld [vmem:[%s5982_s21] sm:$0xff]  ;;  %v238_v1 = vld [vmem:[%s5982_s21 + $0x8] sm:$0xff] }
  0x11   : > { %237 = vst [vmem:[#allocation2 + $0x1] sm:$0xff] %v236_v0  ;;  %239 = vst [vmem:[#allocation2 + $0x9] sm:$0xff] %v238_v1  ;;  %s4164_s22 = sshll.u32 %s7094_s15, 8  ;;  %s3846_s23 = sshll.u32 %s7094_s15, 1 }
  0x12   : > { %s5989_s26 = scalar_lea.vmem %s6987_s3, %s4164_s22  ;;  %s5994_s29 = scalar_lea.vmem %s6988_s4, %s3846_s23 }
  0x13   : > { %247 = vsyncadd [#allocation3], 256  ;;  %v312_v2 = vld [vmem:[%s5982_s21] sm:$0xff]  ;;  %v314_v3 = vld [vmem:[%s5982_s21 + $0x8] sm:$0xff] }
  0x14   : > { %313 = vst [vmem:[#allocation2 + $0x19] sm:$0xff] %v312_v2  ;;  %315 = vst [vmem:[#allocation2 + $0x21] sm:$0xff] %v314_v3  ;;  %v316_v4 = vld [vmem:[%s5982_s21 + $0x10] sm:$0xff]  ;;  %v318_v5 = vld [vmem:[%s5982_s21 + $0x18] sm:$0xff] }
  0x15   : > { %v320_v6 = vld [vmem:[%s5982_s21 + $0x20] sm:$0xff]  ;;  %317 = vst [vmem:[#allocation2 + $0x31] sm:$0xff] %v316_v4  ;;  %319 = vst [vmem:[#allocation2 + $0x39] sm:$0xff] %v318_v5  ;;  %v322_v7 = vld [vmem:[%s5982_s21 + $0x28] sm:$0xff] }
  0x16   : > { %321 = vst [vmem:[#allocation2 + $0x49] sm:$0xff] %v320_v6  ;;  %v324_v8 = vld [vmem:[%s5982_s21 + $0x30] sm:$0xff]  ;;  %v326_v9 = vld [vmem:[%s5982_s21 + $0x38] sm:$0xff]  ;;  %323 = vst [vmem:[#allocation2 + $0x51] sm:$0xff] %v322_v7 }
  0x17   : > { %325 = vst [vmem:[#allocation2 + $0x61] sm:$0xff] %v324_v8  ;;  %327 = vst [vmem:[#allocation2 + $0x69] sm:$0xff] %v326_v9  ;;  %v328_v10 = vld [vmem:[%s5982_s21 + $0x40] sm:$0xff]  ;;  %v330_v11 = vld [vmem:[%s5982_s21 + $0x48] sm:$0xff] }
  0x18   : > { %v332_v12 = vld [vmem:[%s5982_s21 + $0x50] sm:$0xff]  ;;  %329 = vst [vmem:[#allocation2 + $0x79] sm:$0xff] %v328_v10  ;;  %331 = vst [vmem:[#allocation2 + $0x81] sm:$0xff] %v330_v11  ;;  %v334_v13 = vld [vmem:[%s5982_s21 + $0x58] sm:$0xff] }
  0x19   : > { %333 = vst [vmem:[#allocation2 + $0x91] sm:$0xff] %v332_v12  ;;  %v336_v14 = vld [vmem:[%s5982_s21 + $0x60] sm:$0xff]  ;;  %v338_v15 = vld [vmem:[%s5982_s21 + $0x68] sm:$0xff]  ;;  %335 = vst [vmem:[#allocation2 + $0x99] sm:$0xff] %v334_v13 }
  0x1a   : > { %337 = vst [vmem:[#allocation2 + $0xa9] sm:$0xff] %v336_v14  ;;  %339 = vst [vmem:[#allocation2 + $0xb1] sm:$0xff] %v338_v15  ;;  %v340_v16 = vld [vmem:[%s5982_s21 + $0x70] sm:$0xff]  ;;  %v342_v17 = vld [vmem:[%s5982_s21 + $0x78] sm:$0xff] }
  0x1b   : > { %v344_v18 = vld [vmem:[%s5982_s21 + $0x80] sm:$0xff]  ;;  %341 = vst [vmem:[#allocation2 + $0xc1] sm:$0xff] %v340_v16  ;;  %343 = vst [vmem:[#allocation2 + $0xc9] sm:$0xff] %v342_v17  ;;  %v346_v19 = vld [vmem:[%s5982_s21 + $0x88] sm:$0xff] }
  0x1c   : > { %345 = vst [vmem:[#allocation2 + $0xd9] sm:$0xff] %v344_v18  ;;  %v348_v20 = vld [vmem:[%s5982_s21 + $0x90] sm:$0xff]  ;;  %v350_v21 = vld [vmem:[%s5982_s21 + $0x98] sm:$0xff]  ;;  %347 = vst [vmem:[#allocation2 + $0xe1] sm:$0xff] %v346_v19 }
  0x1d   : > { %349 = vst [vmem:[#allocation2 + $0xf1] sm:$0xff] %v348_v20  ;;  %351 = vst [vmem:[#allocation2 + $0xf9] sm:$0xff] %v350_v21  ;;  %v352_v22 = vld [vmem:[%s5982_s21 + $0xa0] sm:$0xff]  ;;  %v354_v23 = vld [vmem:[%s5982_s21 + $0xa8] sm:$0xff] }
  0x1e   : > { %v356_v24 = vld [vmem:[%s5982_s21 + $0xb0] sm:$0xff]  ;;  %353 = vst [vmem:[#allocation2 + $0x109] sm:$0xff] %v352_v22  ;;  %355 = vst [vmem:[#allocation2 + $0x111] sm:$0xff] %v354_v23  ;;  %v358_v25 = vld [vmem:[%s5982_s21 + $0xb8] sm:$0xff] }
  0x1f   : > { %357 = vst [vmem:[#allocation2 + $0x121] sm:$0xff] %v356_v24  ;;  %v360_v26 = vld [vmem:[%s5982_s21 + $0xc0] sm:$0xff]  ;;  %v362_v27 = vld [vmem:[%s5982_s21 + $0xc8] sm:$0xff]  ;;  %359 = vst [vmem:[#allocation2 + $0x129] sm:$0xff] %v358_v25 }
  0x20   : > { %361 = vst [vmem:[#allocation2 + $0x139] sm:$0xff] %v360_v26  ;;  %363 = vst [vmem:[#allocation2 + $0x141] sm:$0xff] %v362_v27  ;;  %v364_v28 = vld [vmem:[%s5982_s21 + $0xd0] sm:$0xff]  ;;  %v366_v29 = vld [vmem:[%s5982_s21 + $0xd8] sm:$0xff] }
  0x21   : > { %v368_v30 = vld [vmem:[%s5982_s21 + $0xe0] sm:$0xff]  ;;  %365 = vst [vmem:[#allocation2 + $0x151] sm:$0xff] %v364_v28  ;;  %367 = vst [vmem:[#allocation2 + $0x159] sm:$0xff] %v366_v29  ;;  %v370_v31 = vld [vmem:[%s5982_s21 + $0xe8] sm:$0xff] }
  0x22   : > { %369 = vst [vmem:[#allocation2 + $0x169] sm:$0xff] %v368_v30  ;;  %v372_v32 = vld [vmem:[%s5982_s21 + $0xf0] sm:$0xff]  ;;  %v374_v33 = vld [vmem:[%s5982_s21 + $0xf8] sm:$0xff]  ;;  %371 = vst [vmem:[#allocation2 + $0x171] sm:$0xff] %v370_v31 }
  0x23   : > { %373 = vst [vmem:[#allocation2 + $0x181] sm:$0xff] %v372_v32  ;;  %375 = vst [vmem:[#allocation2 + $0x189] sm:$0xff] %v374_v33 }
  0x24   : > { %383 = vsyncadd [#allocation3 + $0x1], 4096  ;;  %v3849_v34 = vld [vmem:[%s5982_s21 + $0xf0] sm:$0xff]  ;;  %v3850_v35 = vld [vmem:[%s5982_s21 + $0xf8] sm:$0xff] }
  0x25   : > { %421 = vst [vmem:[#allocation2 + $0x199] sm:$0xff] %v3849_v34  ;;  %423 = vst [vmem:[#allocation2 + $0x1a1] sm:$0xff] %v3850_v35 }
  0x26   : > { %431 = vsyncadd [#allocation3 + $0x2], 256 }
  0x27   : > { %5916 = dma.done.wait [#allocation3], 256 }
  0x28   : > { %5917 = vsyncadd [#allocation3], 4294967040  ;;  %s5934_s30 = smov [#allocation3]  }
  0x29   : > { %s3729_s5 = scalar_lea.sflag %s5934_s30, 1 }
  0x2a   : > { %5918 = dma.done.wait %s3729_s5, 4096 }
  0x2b   : > { %5919 = vsyncadd %s3729_s5, 4294963200  ;;  %s3732_s6 = scalar_lea.sflag %s5934_s30, 2 }
  0x2c   : > { %5920 = dma.done.wait %s3732_s6, 256 }
  0x2d   : > { %5921 = vsyncadd %s3732_s6, 4294967040  ;;  %v5935_v36 = vmov 0.0   ;;  %v835_v37 = vld [vmem:[%s6985_s1 + $0x80] sm:$0xff]  ;;  %v836_v38 = vld [vmem:[%s6985_s1 + $0x88] sm:$0xff]  ;;  %vm3578_vm0 = vcmask 1040384  }
  0x2e   : > { %748 = vst [vmem:[#allocation2 + $0x8] sm:$0xff] %v5935_v36  ;;  %709 = vst [vmem:[#allocation2 + $0x18] sm:$0x1] %v5935_v36  ;;  %v1945_v39 = vld [vmem:[%s6985_s1 + $0x200] sm:$0xff]  ;;  %v5317_v40 = vpack.c.bf16 %v836_v38, %v835_v37  ;;  %v1946_v41 = vld [vmem:[%s6985_s1 + $0x208] sm:$0xff] }
  0x2f   : > { %710 = vst [vmem:[#allocation2 + $0x30] sm:$0x1] %v5935_v36  ;;  %711 = vst [vmem:[#allocation2 + $0x48] sm:$0x1] %v5935_v36  ;;  %v837_v42 = vld [vmem:[%s6985_s1 + $0x90] sm:$0xff]  ;;  %v838_v43 = vld [vmem:[%s6985_s1 + $0x98] sm:$0xff]  ;;  %v6088_v44 = vpack.c.bf16 %v1946_v41, %v1945_v39 }
  0x30   : > { %712 = vst [vmem:[#allocation2 + $0x60] sm:$0x1] %v5935_v36  ;;  %713 = vst [vmem:[#allocation2 + $0x78] sm:$0x1] %v5935_v36  ;;  %v5321_v45 = vpack.c.bf16 %v838_v43, %v837_v42  ;;  %v1947_v46 = vld [vmem:[%s6985_s1 + $0x210] sm:$0xff]  ;;  %v1948_v47 = vld [vmem:[%s6985_s1 + $0x218] sm:$0xff]  ;;  %5318 = vmatprep.subr.bf16.mxu1 %v5317_v40 }
  0x31   : > { %714 = vst [vmem:[#allocation2 + $0x90] sm:$0x1] %v5935_v36  ;;  %715 = vst [vmem:[#allocation2 + $0xa8] sm:$0x1] %v5935_v36  ;;  %v839_v48 = vld [vmem:[%s6985_s1 + $0xa0] sm:$0xff]  ;;  %v6099_v49 = vpack.c.bf16 %v1948_v47, %v1947_v46  ;;  %v840_v50 = vld [vmem:[%s6985_s1 + $0xa8] sm:$0xff]  ;;  %5446 = vmatprep.subr.bf16.mxu0 %v6088_v44  ;;  %5320 = vmatpush3.bf16.msra.mxu1 %v5317_v40 }
  0x32   : > { %716 = vst [vmem:[#allocation2 + $0xc0] sm:$0x1] %v5935_v36  ;;  %717 = vst [vmem:[#allocation2 + $0xd8] sm:$0x1] %v5935_v36  ;;  %v1949_v51 = vld [vmem:[%s6985_s1 + $0x220] sm:$0xff]  ;;  %v1950_v52 = vld [vmem:[%s6985_s1 + $0x228] sm:$0xff]  ;;  %5448 = vmatpush3.bf16.msra.mxu0 %v6088_v44  ;;  %5322 = vmatprep.subr.bf16.mxu1 %v5321_v45  ;;  %v5325_v53 = vpack.c.bf16 %v840_v50, %v839_v48 }
  0x33   : > { %718 = vst [vmem:[#allocation2 + $0xf0] sm:$0x1] %v5935_v36  ;;  %719 = vst [vmem:[#allocation2 + $0x108] sm:$0x1] %v5935_v36  ;;  %5450 = vmatprep.subr.bf16.mxu0 %v6099_v49  ;;  %v6113_v54 = vpack.c.bf16 %v1950_v52, %v1949_v51  ;;  %v841_v55 = vld [vmem:[%s6985_s1 + $0xb0] sm:$0xff]  ;;  %v842_v56 = vld [vmem:[%s6985_s1 + $0xb8] sm:$0xff] }
  0x34   : > { %720 = vst [vmem:[#allocation2 + $0x120] sm:$0x1] %v5935_v36  ;;  %721 = vst [vmem:[#allocation2 + $0x138] sm:$0x1] %v5935_v36  ;;  %v1951_v57 = vld [vmem:[%s6985_s1 + $0x230] sm:$0xff]  ;;  %v1952_v58 = vld [vmem:[%s6985_s1 + $0x238] sm:$0xff]  ;;  %v5329_v59 = vpack.c.bf16 %v842_v56, %v841_v55 }
  0x35   : > { %722 = vst [vmem:[#allocation2 + $0x150] sm:$0x1] %v5935_v36  ;;  %723 = vst [vmem:[#allocation2 + $0x168] sm:$0x1] %v5935_v36  ;;  %5324 = vmatpush3.bf16.msra.mxu1 %v5321_v45  ;;  %v6129_v60 = vpack.c.bf16 %v1952_v58, %v1951_v57  ;;  %v843_v61 = vld [vmem:[%s6985_s1 + $0xc0] sm:$0xff]  ;;  %v844_v62 = vld [vmem:[%s6985_s1 + $0xc8] sm:$0xff] }
  0x36   : > { %724 = vst [vmem:[#allocation2 + $0x180] sm:$0x1] %v5935_v36  ;;  %726 = vst [vmem:[#allocation2 + $0x11] sm:$0x1] %v5935_v36  ;;  %5452 = vmatpush3.bf16.msra.mxu0 %v6099_v49  ;;  %5326 = vmatprep.subr.bf16.mxu1 %v5325_v53  ;;  %v1953_v0 = vld [vmem:[%s6985_s1 + $0x240] sm:$0xff]  ;;  %v1954_v1 = vld [vmem:[%s6985_s1 + $0x248] sm:$0xff]  ;;  %v5333_v3 = vpack.c.bf16 %v844_v62, %v843_v61 }
  0x37   : > { %727 = vst [vmem:[#allocation2 + $0x29] sm:$0x1] %v5935_v36  ;;  %728 = vst [vmem:[#allocation2 + $0x41] sm:$0x1] %v5935_v36  ;;  %5454 = vmatprep.subr.bf16.mxu0 %v6113_v54  ;;  %v6143_v2 = vld [vmem:[#allocation2 + $0x19] sm:$0xff]  ;;  %v6148_v4 = vpack.c.bf16 %v1954_v1, %v1953_v0  ;;  %v845_v5 = vld [vmem:[%s6985_s1 + $0xd0] sm:$0xff] }
  0x38   : > { %729 = vst [vmem:[#allocation2 + $0x59] sm:$0x1] %v5935_v36  ;;  %730 = vst [vmem:[#allocation2 + $0x71] sm:$0x1] %v5935_v36  ;;  %4949 = vmatprep.mubr.f32.mxu0 %v6143_v2  ;;  %v846_v6 = vld [vmem:[%s6985_s1 + $0xd8] sm:$0xff]  ;;  %v1955_v7 = vld [vmem:[%s6985_s1 + $0x250] sm:$0xff] }
  0x39   : > { %731 = vst [vmem:[#allocation2 + $0x89] sm:$0x1] %v5935_v36  ;;  %732 = vst [vmem:[#allocation2 + $0xa1] sm:$0x1] %v5935_v36  ;;  %5328 = vmatpush3.bf16.msra.mxu1 %v5325_v53  ;;  %v1956_v8 = vld [vmem:[%s6985_s1 + $0x258] sm:$0xff]  ;;  %v5337_v9 = vpack.c.bf16 %v846_v6, %v845_v5  ;;  %v847_v11 = vld [vmem:[%s6985_s1 + $0xe0] sm:$0xff] }
  0x3a   : > { %733 = vst [vmem:[#allocation2 + $0xb9] sm:$0x1] %v5935_v36  ;;  %734 = vst [vmem:[#allocation2 + $0xd1] sm:$0x1] %v5935_v36  ;;  %5456 = vmatpush3.bf16.msra.mxu0 %v6113_v54  ;;  %5330 = vmatprep.subr.bf16.mxu1 %v5329_v59  ;;  %v6164_v10 = vpack.c.bf16 %v1956_v8, %v1955_v7  ;;  %v848_v12 = vld [vmem:[%s6985_s1 + $0xe8] sm:$0xff]  ;;  %v1957_v13 = vld [vmem:[%s6985_s1 + $0x260] sm:$0xff] }
  0x3b   : > { %735 = vst [vmem:[#allocation2 + $0xe9] sm:$0x1] %v5935_v36  ;;  %736 = vst [vmem:[#allocation2 + $0x101] sm:$0x1] %v5935_v36  ;;  %5458 = vmatprep.subr.bf16.mxu0 %v6129_v60  ;;  %v1958_v14 = vld [vmem:[%s6985_s1 + $0x268] sm:$0xff]  ;;  %v5341_v15 = vpack.c.bf16 %v848_v12, %v847_v11  ;;  %v849_v17 = vld [vmem:[%s6985_s1 + $0xf0] sm:$0xff] }
  0x3c   : > { %737 = vst [vmem:[#allocation2 + $0x119] sm:$0x1] %v5935_v36  ;;  %738 = vst [vmem:[#allocation2 + $0x131] sm:$0x1] %v5935_v36  ;;  %v6180_v16 = vpack.c.bf16 %v1958_v14, %v1957_v13  ;;  %v850_v18 = vld [vmem:[%s6985_s1 + $0xf8] sm:$0xff]  ;;  %v1959_v19 = vld [vmem:[%s6985_s1 + $0x270] sm:$0xff] }
  0x3d   : > { %739 = vst [vmem:[#allocation2 + $0x149] sm:$0x1] %v5935_v36  ;;  %740 = vst [vmem:[#allocation2 + $0x161] sm:$0x1] %v5935_v36  ;;  %5332 = vmatpush3.bf16.msra.mxu1 %v5329_v59  ;;  %v1960_v20 = vld [vmem:[%s6985_s1 + $0x278] sm:$0xff]  ;;  %v5345_v21 = vpack.c.bf16 %v850_v18, %v849_v17  ;;  %v787_v23 = vld [vmem:[%s6985_s1] sm:$0xff] }
  0x3e   : > { %741 = vst [vmem:[#allocation2 + $0x179] sm:$0x1] %v5935_v36  ;;  %742 = vst [vmem:[#allocation2 + $0x191] sm:$0x1] %v5935_v36  ;;  %5460 = vmatpush3.bf16.msra.mxu0 %v6129_v60  ;;  %5334 = vmatprep.subr.bf16.mxu1 %v5333_v3  ;;  %v6196_v22 = vpack.c.bf16 %v1960_v20, %v1959_v19  ;;  %v788_v24 = vld [vmem:[%s6985_s1 + $0x8] sm:$0xff]  ;;  %v2250_v25 = vld [vmem:[%s6985_s1 + $0x280] sm:$0xff] }
  0x3f   : > { %743 = vst [vmem:[#allocation2 + $0x1a9] sm:$0x1] %v5935_v36  ;;  %3962 = vst [vmem:[#allocation2 + $0x1a0] sm:$0xff] %v5935_v36  ;;  %5462 = vmatprep.subr.bf16.mxu0 %v6148_v4  ;;  %v2251_v26 = vld [vmem:[%s6985_s1 + $0x288] sm:$0xff]  ;;  %v5349_v27 = vpack.c.bf16 %v788_v24, %v787_v23  ;;  %v2252_v29 = vld [vmem:[%s6985_s1 + $0x290] sm:$0xff] }
  0x40   : > { %747 = vst [vmem:[#allocation2] sm:$0xff] %v5935_v36  ;;  %749 = vst [vmem:[#allocation2 + $0x10] sm:$0x3] %v5935_v36  ;;  %v5477_v28 = vpack.c.bf16 %v2251_v26, %v2250_v25  ;;  %v2253_v30 = vld [vmem:[%s6985_s1 + $0x298] sm:$0xff]  ;;  %v789_v32 = vld [vmem:[%s6985_s1 + $0x10] sm:$0xff] }
  0x41   : > { %3961 = vst [vmem:[#allocation2 + $0x198] sm:$0xff] %v5935_v36  ;;  %3963 = vst [vmem:[#allocation2 + $0x1a8] sm:$0x3] %v5935_v36  ;;  %5336 = vmatpush3.bf16.msra.mxu1 %v5333_v3  ;;  %v790_v33 = vld [vmem:[%s6985_s1 + $0x18] sm:$0xff]  ;;  %v3997_v34 = vld [vmem:[#allocation2 + $0x21] sm:$0xff]  ;;  %v5481_v35 = vpack.c.bf16 %v2253_v30, %v2252_v29 }
  0x42   : > { %7027 = vst [vmem:[#allocation13_spill] sm:$0xff] %v6099_v49  ;;  %7028 = vst [vmem:[#allocation14_spill] sm:$0xff] %v6113_v54  ;;  %5464 = vmatpush3.bf16.msra.mxu0 %v6148_v4  ;;  %5338 = vmatprep.subr.bf16.mxu1 %v5337_v9  ;;  %v3998_v37 = vld [vmem:[#allocation2 + $0x31] sm:$0xff]  ;;  %v5353_v38 = vpack.c.bf16 %v790_v33, %v789_v32  ;;  %v2254_v39 = vld [vmem:[%s6985_s1 + $0x2a0] sm:$0xff] }
  0x43   : > { %7029 = vst [vmem:[#allocation15_spill] sm:$0xff] %v6129_v60  ;;  %7030 = vst [vmem:[#allocation16_spill] sm:$0xff] %v6148_v4  ;;  %5466 = vmatprep.subr.bf16.mxu0 %v6164_v10  ;;  %v2255_v40 = vld [vmem:[%s6985_s1 + $0x2a8] sm:$0xff]  ;;  %v791_v41 = vld [vmem:[%s6985_s1 + $0x20] sm:$0xff] }
  0x44   : > { %7031 = vst [vmem:[#allocation17_spill] sm:$0xff] %v6164_v10  ;;  %7032 = vst [vmem:[#allocation18_spill] sm:$0xff] %v6180_v16  ;;  %v792_v42 = vld [vmem:[%s6985_s1 + $0x28] sm:$0xff]  ;;  %v3999_v43 = vld [vmem:[#allocation2 + $0x39] sm:$0xff]  ;;  %v5485_v46 = vpack.c.bf16 %v2255_v40, %v2254_v39 }
  0x45   : > { %5340 = vmatpush3.bf16.msra.mxu1 %v5337_v9  ;;  %7033 = vst [vmem:[#allocation19_spill] sm:$0xff] %v6196_v22  ;;  %v4000_v45 = vld [vmem:[#allocation2 + $0x49] sm:$0xff]  ;;  %v2257_v48 = vld [vmem:[%s6985_s1 + $0x2b8] sm:$0xff]  ;;  %v5357_v50 = vpack.c.bf16 %v792_v42, %v791_v41  ;;  %v4002_v55 = vld [vmem:[#allocation2 + $0x61] sm:$0xff] }
  0x46   : > { %5468 = vmatpush3.bf16.msra.mxu0 %v6164_v10  ;;  %5342 = vmatprep.subr.bf16.mxu1 %v5341_v15  ;;  %v2256_v47 = vld [vmem:[%s6985_s1 + $0x2b0] sm:$0xff]  ;;  %v794_v52 = vld [vmem:[%s6985_s1 + $0x38] sm:$0xff]  ;;  %v2258_v57 = vld [vmem:[%s6985_s1 + $0x2c0] sm:$0xff] }
  0x47   : > { %v803_v63 = vld [vmem:[#allocation2 + $0x1] sm:$0xff]  ;;  %5470 = vmatprep.subr.bf16.mxu0 %v6180_v16  ;;  %v804_v31 = vld [vmem:[#allocation2 + $0x9] sm:$0xff]  ;;  %v4001_v53 = vld [vmem:[#allocation2 + $0x51] sm:$0xff]  ;;  %v5489_v56 = vpack.c.bf16 %v2257_v48, %v2256_v47 }
  0x48   : > { %4629 = vmatprep.mubr.f32.mxu1 %v803_v63  ;;  %v793_v51 = vld [vmem:[%s6985_s1 + $0x30] sm:$0xff]  ;;  %v2259_v58 = vld [vmem:[%s6985_s1 + $0x2c8] sm:$0xff]  ;;  %v795_v61 = vld [vmem:[%s6985_s1 + $0x40] sm:$0xff] }
  0x49   : > { %5344 = vmatpush3.bf16.msra.mxu1 %v5341_v15  ;;  %v5361_v59 = vpack.c.bf16 %v794_v52, %v793_v51  ;;  %v796_v62 = vld [vmem:[%s6985_s1 + $0x48] sm:$0xff]  ;;  %v4004_v0 = vld [vmem:[#allocation2 + $0x79] sm:$0xff]  ;;  %v5493_v1 = vpack.c.bf16 %v2259_v58, %v2258_v57  ;;  %v797_v6 = vld [vmem:[%s6985_s1 + $0x50] sm:$0xff] }
  0x4a   : > { %5472 = vmatpush3.bf16.msra.mxu0 %v6180_v16  ;;  %5346 = vmatprep.subr.bf16.mxu1 %v5345_v21  ;;  %v4003_v63 = vld [vmem:[#allocation2 + $0x69] sm:$0xff]  ;;  %v2261_v3 = vld [vmem:[%s6985_s1 + $0x2d8] sm:$0xff]  ;;  %v5365_v5 = vpack.c.bf16 %v796_v62, %v795_v61  ;;  %v4005_v8 = vld [vmem:[#allocation2 + $0x81] sm:$0xff] }
  0x4b   : > { %5474 = vmatprep.subr.bf16.mxu0 %v6196_v22  ;;  %v798_v7 = vld [vmem:[%s6985_s1 + $0x58] sm:$0xff]  ;;  %v2262_v12 = vld [vmem:[%s6985_s1 + $0x2e0] sm:$0xff]  ;;  %v2263_v13 = vld [vmem:[%s6985_s1 + $0x2e8] sm:$0xff] }
  0x4c   : > { %v6274_v9 = vld [vmem:[#allocation2 + $0x91] sm:$0xff]  ;;  %v5369_v14 = vpack.c.bf16 %v798_v7, %v797_v6  ;;  %v799_v15 = vld [vmem:[%s6985_s1 + $0x60] sm:$0xff]  ;;  %v800_v17 = vld [vmem:[%s6985_s1 + $0x68] sm:$0xff]  ;;  %v5501_v20 = vpack.c.bf16 %v2263_v13, %v2262_v12 }
  0x4d   : > { %5348 = vmatpush3.bf16.msra.mxu1 %v5345_v21  ;;  %v4007_v18 = vld [vmem:[#allocation2 + $0x99] sm:$0xff]  ;;  %v4008_v19 = vld [vmem:[#allocation2 + $0xa9] sm:$0xff]  ;;  %v5373_v24 = vpack.c.bf16 %v800_v17, %v799_v15  ;;  %v6353_v52 = vld [vmem:[#allocation2 + $0xf1] sm:$0xff] }
  0x4e   : > { %5476 = vmatpush3.bf16.msra.mxu0 %v6196_v22  ;;  %5350 = vmatprep.subr.bf16.mxu1 %v5349_v27  ;;  %v2264_v21 = vld [vmem:[%s6985_s1 + $0x2f0] sm:$0xff]  ;;  %v2265_v23 = vld [vmem:[%s6985_s1 + $0x2f8] sm:$0xff]  ;;  %v2557_v30 = vld [vmem:[%s6985_s1 + $0x300] sm:$0xff] }
  0x4f   : > { %5478 = vmatprep.subr.bf16.mxu0 %v5477_v28  ;;  %v801_v25 = vld [vmem:[%s6985_s1 + $0x70] sm:$0xff]  ;;  %v802_v26 = vld [vmem:[%s6985_s1 + $0x78] sm:$0xff]  ;;  %v5505_v29 = vpack.c.bf16 %v2265_v23, %v2264_v21  ;;  %v1333_v33 = vld [vmem:[%s6985_s1 + $0x100] sm:$0xff] }
  0x50   : > { %4630 = vmatmul.mubr.f32.vlgmr.msra.gmra.mrb[0].mxu1 %v804_v31  ;;  %v2558_v31 = vld [vmem:[%s6985_s1 + $0x308] sm:$0xff]  ;;  %v5377_v32 = vpack.c.bf16 %v802_v26, %v801_v25  ;;  %v2559_v39 = vld [vmem:[%s6985_s1 + $0x310] sm:$0xff]  ;;  %v2560_v40 = vld [vmem:[%s6985_s1 + $0x318] sm:$0xff] }
  0x51   : > { %4950 = vmatmul.mubr.f32.vlgmr.msra.gmra.mrb[0].mxu0 %v3997_v34  ;;  %5352 = vmatpush3.bf16.msra.mxu1 %v5349_v27  ;;  %v4009_v27 = vld [vmem:[#allocation2 + $0xb1] sm:$0xff]  ;;  %v6332_v42 = vld [vmem:[#allocation2 + $0x22] sm:$0xff]  ;;  %v6351_v51 = vld [vmem:[#allocation2 + $0x3a] sm:$0xff] }
  0x52   : > { %5480 = vmatpush3.bf16.msra.mxu0 %v5477_v28  ;;  %4632 = vmatprep.mubr.f32.mxu1 %v6143_v2  ;;  %v2260_v2 = vld [vmem:[%s6985_s1 + $0x2d0] sm:$0xff]  ;;  %v6302_v28 = vld [vmem:[#allocation2 + $0xc1] sm:$0xff]  ;;  %v2564_v57 = vld [vmem:[%s6985_s1 + $0x338] sm:$0xff] }
  0x53   : > { %4952 = vmatprep.mubr.f32.mxu0 %v3998_v37  ;;  %5482 = vmatprep.subr.bf16.mxu0 %v5481_v35  ;;  %v5497_v11 = vpack.c.bf16 %v2261_v3, %v2260_v2  ;;  %v2561_v47 = vld [vmem:[%s6985_s1 + $0x320] sm:$0xff]  ;;  %v2562_v48 = vld [vmem:[%s6985_s1 + $0x328] sm:$0xff]  ;;  %v6384_v2 = vld [vmem:[#allocation2 + $0x111] sm:$0xff] }
  0x54   : > { %4633 = vmatmul.mubr.f32.gmra.mrb[2].mxu1 %v3997_v34  ;;  %5354 = vmatprep.subr.bf16.mxu1 %v5353_v38  ;;  %v1334_v34 = vld [vmem:[%s6985_s1 + $0x108] sm:$0xff]  ;;  %v6366_v58 = vld [vmem:[#allocation2 + $0xf9] sm:$0xff]  ;;  %7035 = vst [vmem:[#allocation21_spill] sm:$0xff] %v6384_v2  ;;  %v6425_v23 = vld [vmem:[#allocation2 + $0x151] sm:$0xff] }
  0x55   : > { %4953 = vmatmul.mubr.f32.gmra.mrb[2].mxu0 %v3999_v43  ;;  %4635 = vmatprep.mubr.f32.mxu1 %v3998_v37  ;;  %v6319_v37 = vld [vmem:[#allocation2 + $0x1a] sm:$0xff]  ;;  %v6327_v41 = vpack.c.bf16 %v1334_v34, %v1333_v33  ;;  %v6371_v61 = vld [vmem:[#allocation2 + $0x109] sm:$0xff]  ;;  %v6409_v15 = vld [vmem:[#allocation2 + $0x92] sm:$0xff]  ;;  %7040 = vst [vmem:[#allocation26_spill] sm:$0xff] %v6425_v23 }
  0x56   : > { %5484 = vmatpush3.bf16.msra.mxu0 %v5481_v35  ;;  %4955 = vmatprep.mubr.f32.mxu0 %v4000_v45  ;;  %v6317_v35 = vld [vmem:[#allocation2 + $0xc9] sm:$0xff]  ;;  %7034 = vst [vmem:[#allocation20_spill] sm:$0xff] %v6371_v61  ;;  %v6391_v6 = vld [vmem:[#allocation2 + $0x7a] sm:$0xff] }
  0x57   : > { %5486 = vmatprep.subr.bf16.mxu0 %v5485_v46  ;;  %5356 = vmatpush3.bf16.msra.mxu1 %v5353_v38  ;;  %v5509_v38 = vpack.c.bf16 %v2558_v31, %v2557_v30  ;;  %v6373_v62 = vld [vmem:[#allocation2 + $0x62] sm:$0xff]  ;;  %v6387_v3 = vld [vmem:[#allocation2 + $0x6a] sm:$0xff]  ;;  %v6423_v21 = vld [vmem:[#allocation2 + $0x9a] sm:$0xff] }
  0x58   : > { %4636 = vmatmul.mubr.f32.gmra.mrb[4].mxu1 %v3999_v43  ;;  %5358 = vmatprep.subr.bf16.mxu1 %v5357_v50  ;;  %v6334_v43 = vld [vmem:[#allocation2 + $0xd9] sm:$0xff]  ;;  %v6402_v12 = vld [vmem:[#allocation2 + $0x129] sm:$0xff] }
  0x59   : > { %4956 = vmatmul.mubr.f32.gmra.mrb[4].mxu0 %v4001_v53  ;;  %4638 = vmatprep.mubr.f32.mxu1 %v4000_v45  ;;  %v6336_v45 = vld [vmem:[#allocation2 + $0x32] sm:$0xff]  ;;  %7037 = vst [vmem:[#allocation23_spill] sm:$0xff] %v6402_v12  ;;  %v6405_v13 = vld [vmem:[#allocation2 + $0x82] sm:$0xff] }
  0x5a   : > { %5488 = vmatpush3.bf16.msra.mxu0 %v5485_v46  ;;  %4958 = vmatprep.mubr.f32.mxu0 %v4002_v55  ;;  %v5513_v46 = vpack.c.bf16 %v2560_v40, %v2559_v39  ;;  %v2571_v26 = vld [vmem:[%s6985_s1 + $0x370] sm:$0xff]  ;;  %v2862_v34 = vld [vmem:[%s6985_s1 + $0x380] sm:$0xff]  ;;  %v1344_v22 = vld [vmem:[%s6985_s1 + $0x158] sm:$0xff] }
  0x5b   : > { %5490 = vmatprep.subr.bf16.mxu0 %v5489_v56  ;;  %5360 = vmatpush3.bf16.msra.mxu1 %v5357_v50  ;;  %v6348_v50 = vld [vmem:[#allocation2 + $0xe1] sm:$0xff]  ;;  %v6441_v30 = vld [vmem:[#allocation2 + $0xb2] sm:$0xff]  ;;  %v6443_v31 = vld [vmem:[#allocation2 + $0x169] sm:$0xff] }
  0x5c   : > { %4639 = vmatmul.mubr.f32.gmra.mrb[6].mxu1 %v4001_v53  ;;  %5362 = vmatprep.subr.bf16.mxu1 %v5361_v59  ;;  %v6355_v53 = vld [vmem:[#allocation2 + $0x4a] sm:$0xff]  ;;  %7042 = vst [vmem:[#allocation28_spill] sm:$0xff] %v6443_v31  ;;  %v1345_v10 = vld [vmem:[%s6985_s1 + $0x160] sm:$0xff]  ;;  %v6582_v60 = vld [vmem:[#allocation2 + $0x98] sm:$0xff] }
  0x5d   : > { %4959 = vmatmul.mubr.f32.gmra.mrb[6].mxu0 %v4003_v63  ;;  %4641 = vmatprep.mubr.f32.mxu1 %v4002_v55  ;;  %v5517_v55 = vpack.c.bf16 %v2562_v48, %v2561_v47  ;;  %v6456_v39 = vld [vmem:[#allocation2 + $0x171] sm:$0xff]  ;;  %v6546_v16 = vld [vmem:[#allocation2 + $0x68] sm:$0xff]  ;;  %7053 = vst [vmem:[#allocation39_spill] sm:$0xff] %v6582_v60 }
  0x5e   : > { %5492 = vmatpush3.bf16.msra.mxu0 %v5489_v56  ;;  %4961 = vmatprep.mubr.f32.mxu0 %v4004_v0  ;;  %v2563_v56 = vld [vmem:[%s6985_s1 + $0x330] sm:$0xff]  ;;  %7043 = vst [vmem:[#allocation29_spill] sm:$0xff] %v6456_v39  ;;  %7049 = vst [vmem:[#allocation35_spill] sm:$0xff] %v6546_v16  ;;  %v1641_v54 = vld [vmem:[%s6985_s1 + $0x188] sm:$0xff] }
  0x5f   : > { %5494 = vmatprep.subr.bf16.mxu0 %v5493_v1  ;;  %5364 = vmatpush3.bf16.msra.mxu1 %v5361_v59  ;;  %v6369_v59 = vld [vmem:[#allocation2 + $0x52] sm:$0xff]  ;;  %v6459_v40 = vld [vmem:[#allocation2 + $0xca] sm:$0xff] }
  0x60   : > { %4642 = vmatmul.mubr.f32.gmra.mrb[8].mxu1 %v4003_v63  ;;  %5366 = vmatprep.subr.bf16.mxu1 %v5365_v5  ;;  %v5521_v63 = vpack.c.bf16 %v2564_v57, %v2563_v56  ;;  %v1335_v48 = vld [vmem:[%s6985_s1 + $0x110] sm:$0xff]  ;;  %v6475_v56 = vld [vmem:[#allocation2 + $0xe2] sm:$0xff]  ;;  %v6477_v57 = vld [vmem:[#allocation2 + $0x18] sm:$0xff] }
  0x61   : > { %4962 = vmatmul.mubr.f32.gmra.mrb[8].mxu0 %v4005_v8  ;;  %4644 = vmatprep.mubr.f32.mxu1 %v4004_v0  ;;  %v2565_v0 = vld [vmem:[%s6985_s1 + $0x340] sm:$0xff]  ;;  %v2865_v49 = vld [vmem:[%s6985_s1 + $0x398] sm:$0xff] }
  0x62   : > { %5496 = vmatpush3.bf16.msra.mxu0 %v5493_v1  ;;  %4964 = vmatprep.mubr.f32.mxu0 %v6274_v9  ;;  %v2566_v1 = vld [vmem:[%s6985_s1 + $0x348] sm:$0xff] }
  0x63   : > { %5498 = vmatprep.subr.bf16.mxu0 %v5497_v11  ;;  %5368 = vmatpush3.bf16.msra.mxu1 %v5365_v5  ;;  %v6389_v5 = vld [vmem:[#allocation2 + $0x121] sm:$0xff]  ;;  %v5525_v7 = vpack.c.bf16 %v2566_v1, %v2565_v0 }
  0x64   : > { %4645 = vmatmul.mubr.f32.gmra.mrb[10].mxu1 %v4005_v8  ;;  %5370 = vmatprep.subr.bf16.mxu1 %v5369_v14  ;;  %7036 = vst [vmem:[#allocation22_spill] sm:$0xff] %v6389_v5  ;;  %v2567_v8 = vld [vmem:[%s6985_s1 + $0x350] sm:$0xff]  ;;  %v1337_v1 = vld [vmem:[%s6985_s1 + $0x120] sm:$0xff] }
  0x65   : > { %4965 = vmatmul.mubr.f32.gmra.mrb[10].mxu0 %v4007_v18  ;;  %4647 = vmatprep.mubr.f32.mxu1 %v6274_v9 }
  0x66   : > { %5500 = vmatpush3.bf16.msra.mxu0 %v5497_v11  ;;  %4967 = vmatprep.mubr.f32.mxu0 %v4008_v19  ;;  %v2568_v11 = vld [vmem:[%s6985_s1 + $0x358] sm:$0xff] }
  0x67   : > { %5502 = vmatprep.subr.bf16.mxu0 %v5501_v20  ;;  %5372 = vmatpush3.bf16.msra.mxu1 %v5369_v14  ;;  %v6407_v14 = vld [vmem:[#allocation2 + $0x139] sm:$0xff]  ;;  %v5529_v17 = vpack.c.bf16 %v2568_v11, %v2567_v8 }
  0x68   : > { %4648 = vmatmul.mubr.f32.gmra.mrb[12].mxu1 %v4007_v18  ;;  %5374 = vmatprep.subr.bf16.mxu1 %v5373_v24  ;;  %7038 = vst [vmem:[#allocation24_spill] sm:$0xff] %v6407_v14  ;;  %v2569_v18 = vld [vmem:[%s6985_s1 + $0x360] sm:$0xff] }
  0x69   : > { %4968 = vmatmul.mubr.f32.gmra.mrb[12].mxu0 %v4009_v27  ;;  %4650 = vmatprep.mubr.f32.mxu1 %v4008_v19  ;;  %v2570_v19 = vld [vmem:[%s6985_s1 + $0x368] sm:$0xff]  ;;  %v6491_v8 = vld [vmem:[#allocation2 + $0x20] sm:$0xff] }
  0x6a   : > { %5504 = vmatpush3.bf16.msra.mxu0 %v5501_v20  ;;  %4970 = vmatprep.mubr.f32.mxu0 %v6302_v28  ;;  %v6420_v20 = vld [vmem:[#allocation2 + $0x141] sm:$0xff]  ;;  %v5533_v25 = vpack.c.bf16 %v2570_v19, %v2569_v18  ;;  %v1340_v19 = vld [vmem:[%s6985_s1 + $0x138] sm:$0xff] }
  0x6b   : > { %5506 = vmatprep.subr.bf16.mxu0 %v5505_v29  ;;  %5376 = vmatpush3.bf16.msra.mxu1 %v5373_v24  ;;  %7039 = vst [vmem:[#allocation25_spill] sm:$0xff] %v6420_v20  ;;  %v6427_v24 = vld [vmem:[#allocation2 + $0xaa] sm:$0xff]  ;;  %v6495_v11 = vld [vmem:[#allocation2 + $0xfa] sm:$0xff] }
  0x6c   : > { %4651 = vmatmul.mubr.f32.gmra.mrb[14].mxu1 %v4009_v27  ;;  %5378 = vmatprep.subr.bf16.mxu1 %v5377_v32  ;;  %v2572_v27 = vld [vmem:[%s6985_s1 + $0x378] sm:$0xff] }
  0x6d   : > { %4971 = vmatmul.mubr.f32.gmra.mrb[14].mxu0 %v6317_v35  ;;  %4653 = vmatprep.mubr.f32.mxu1 %v6302_v28  ;;  %v5537_v33 = vpack.c.bf16 %v2572_v27, %v2571_v26  ;;  %v6513_v26 = vld [vmem:[#allocation2 + $0x112] sm:$0xff]  ;;  %v6515_v27 = vld [vmem:[#allocation2 + $0x48] sm:$0xff] }
  0x6e   : > { %5508 = vmatpush3.bf16.msra.mxu0 %v5505_v29  ;;  %5029 = vmatprep.mubr.f32.mxu0 %v6319_v37  ;;  %v6438_v29 = vld [vmem:[#allocation2 + $0x159] sm:$0xff]  ;;  %7046 = vst [vmem:[#allocation32_spill] sm:$0xff] %v6515_v27 }
  0x6f   : > { %5510 = vmatprep.subr.bf16.mxu0 %v5509_v38  ;;  %5380 = vmatpush3.bf16.msra.mxu1 %v5377_v32  ;;  %7041 = vst [vmem:[#allocation27_spill] sm:$0xff] %v6438_v29  ;;  %v6445_v32 = vld [vmem:[#allocation2 + $0xc2] sm:$0xff] }
  0x70   : > { %4654 = vmatmul.mubr.f32.gmra.mrb[16].mxu1 %v6317_v35  ;;  %5382 = vmatprep.subr.bf16.mxu1 %v6327_v41 }
  0x71   : > { %5030 = vmatmul.mubr.f32.vlgmr.msra.gmra.mrb[0].mxu0 %v6332_v42  ;;  %4656 = vmatprep.mubr.f32.mxu1 %v6334_v43 }
  0x72   : > { %5512 = vmatpush3.bf16.msra.mxu0 %v5509_v38  ;;  %5032 = vmatprep.mubr.f32.mxu0 %v6336_v45  ;;  %v2863_v38 = vld [vmem:[%s6985_s1 + $0x388] sm:$0xff] }
  0x73   : > { %5514 = vmatprep.subr.bf16.mxu0 %v5513_v46  ;;  %v6463_v47 = vpack.c.bf16 %v2863_v38, %v2862_v34  ;;  %v1341_v38 = vld [vmem:[%s6985_s1 + $0x140] sm:$0xff] }
  0x74   : > { %4657 = vmatmul.mubr.f32.gmra.mrb[18].mxu1 %v6348_v50 }
  0x75   : > { %5033 = vmatmul.mubr.f32.gmra.mrb[2].mxu0 %v6351_v51  ;;  %4659 = vmatprep.mubr.f32.mxu1 %v6353_v52 }
  0x76   : > { %5035 = vmatprep.mubr.f32.mxu0 %v6355_v53  ;;  %5516 = vmatpush3.bf16.msra.mxu0 %v5513_v46  ;;  %v6461_v46 = vld [vmem:[#allocation2 + $0xda] sm:$0xff] }
  0x77   : > { %5518 = vmatprep.subr.bf16.mxu0 %v5517_v55 }
  0x78   : > { %4660 = vmatmul.mubr.f32.gmra.mrb[20].mxu1 %v6366_v58 }
  0x79   : > { %5036 = vmatmul.mubr.f32.gmra.mrb[4].mxu0 %v6369_v59  ;;  %4662 = vmatprep.mubr.f32.mxu1 %v6371_v61  ;;  %v6627_v61 = vld [vmem:[#allocation2 + $0xe0] sm:$0xff] }
  0x7a   : > { %5038 = vmatprep.mubr.f32.mxu0 %v6373_v62  ;;  %5520 = vmatpush3.bf16.msra.mxu0 %v5517_v55  ;;  %v1336_v55 = vld [vmem:[%s6985_s1 + $0x118] sm:$0xff] }
  0x7b   : > { %5522 = vmatprep.subr.bf16.mxu0 %v5521_v63  ;;  %v5385_v0 = vpack.c.bf16 %v1336_v55, %v1335_v48  ;;  %v1342_v48 = vld [vmem:[%s6985_s1 + $0x148] sm:$0xff]  ;;  %v6528_v55 = vld [vmem:[#allocation2 + $0x50] sm:$0xff] }
  0x7c   : > { %4663 = vmatmul.mubr.f32.gmra.mrb[22].mxu1 %v6384_v2  ;;  %7047 = vst [vmem:[#allocation33_spill] sm:$0xff] %v6528_v55  ;;  %v6600_v2 = vld [vmem:[#allocation2 + $0xc0] sm:$0xff] }
  0x7d   : > { %5039 = vmatmul.mubr.f32.gmra.mrb[6].mxu0 %v6387_v3  ;;  %4665 = vmatprep.mubr.f32.mxu1 %v6389_v5  ;;  %v6598_v5 = vld [vmem:[#allocation2 + $0xb0] sm:$0xff]  ;;  %7056 = vst [vmem:[#allocation42_spill] sm:$0xff] %v6600_v2 }
  0x7e   : > { %5041 = vmatprep.mubr.f32.mxu0 %v6391_v6  ;;  %5524 = vmatpush3.bf16.msra.mxu0 %v5521_v63  ;;  %v6479_v63 = vld [vmem:[#allocation2 + $0xf2] sm:$0xff]  ;;  %7055 = vst [vmem:[#allocation41_spill] sm:$0xff] %v6598_v5 }
  0x7f   : > { %5526 = vmatprep.subr.bf16.mxu0 %v5525_v7 }
  0x80   : > { %4666 = vmatmul.mubr.f32.gmra.mrb[24].mxu1 %v6402_v12  ;;  %v1640_v12 = vld [vmem:[%s6985_s1 + $0x180] sm:$0xff] }
  0x81   : > { %5042 = vmatmul.mubr.f32.gmra.mrb[8].mxu0 %v6405_v13  ;;  %4668 = vmatprep.mubr.f32.mxu1 %v6407_v14 }
  0x82   : > { %5044 = vmatprep.mubr.f32.mxu0 %v6409_v15  ;;  %5528 = vmatpush3.bf16.msra.mxu0 %v5525_v7  ;;  %v1338_v7 = vld [vmem:[%s6985_s1 + $0x128] sm:$0xff] }
  0x83   : > { %5530 = vmatprep.subr.bf16.mxu0 %v5529_v17  ;;  %v5389_v18 = vpack.c.bf16 %v1338_v7, %v1337_v1  ;;  %v6533_v1 = vld [vmem:[#allocation2 + $0x60] sm:$0xff] }
  0x84   : > { %4669 = vmatmul.mubr.f32.gmra.mrb[26].mxu1 %v6420_v20  ;;  %7048 = vst [vmem:[#allocation34_spill] sm:$0xff] %v6533_v1  ;;  %v6535_v7 = vld [vmem:[#allocation2 + $0x13a] sm:$0xff] }
  0x85   : > { %5045 = vmatmul.mubr.f32.gmra.mrb[10].mxu0 %v6423_v21  ;;  %4671 = vmatprep.mubr.f32.mxu1 %v6425_v23  ;;  %v1347_v23 = vld [vmem:[%s6985_s1 + $0x170] sm:$0xff]  ;;  %v1348_v20 = vld [vmem:[%s6985_s1 + $0x178] sm:$0xff] }
  0x86   : > { %5047 = vmatprep.mubr.f32.mxu0 %v6427_v24  ;;  %5532 = vmatpush3.bf16.msra.mxu0 %v5529_v17  ;;  %v6499_v17 = vld [vmem:[#allocation2 + $0x10a] sm:$0xff]  ;;  %v5409_v14 = vpack.c.bf16 %v1348_v20, %v1347_v23  ;;  %v6602_v20 = vpack.c.bf16 %v1641_v54, %v1640_v12  ;;  %v2866_v12 = vld [vmem:[%s6985_s1 + $0x3a0] sm:$0xff] }
  0x87   : > { %5534 = vmatprep.subr.bf16.mxu0 %v5533_v25  ;;  %v2864_v23 = vld [vmem:[%s6985_s1 + $0x390] sm:$0xff] }
  0x88   : > { %4672 = vmatmul.mubr.f32.gmra.mrb[28].mxu1 %v6438_v29  ;;  %v6564_v29 = vld [vmem:[#allocation2 + $0x80] sm:$0xff]  ;;  %v5545_v54 = vpack.c.bf16 %v2865_v49, %v2864_v23  ;;  %v6631_v49 = vld [vmem:[#allocation2 + $0xf0] sm:$0xff] }
  0x89   : > { %5048 = vmatmul.mubr.f32.gmra.mrb[12].mxu0 %v6441_v30  ;;  %4674 = vmatprep.mubr.f32.mxu1 %v6443_v31  ;;  %v1346_v31 = vld [vmem:[%s6985_s1 + $0x168] sm:$0xff]  ;;  %7051 = vst [vmem:[#allocation37_spill] sm:$0xff] %v6564_v29  ;;  %v2868_v23 = vld [vmem:[%s6985_s1 + $0x3b0] sm:$0xff] }
  0x8a   : > { %5050 = vmatprep.mubr.f32.mxu0 %v6445_v32  ;;  %5536 = vmatpush3.bf16.msra.mxu0 %v5533_v25  ;;  %v6510_v25 = vld [vmem:[#allocation2 + $0x38] sm:$0xff]  ;;  %v5405_v4 = vpack.c.bf16 %v1346_v31, %v1345_v10  ;;  %v6587_v10 = vld [vmem:[#allocation2 + $0xa8] sm:$0xff] }
  0x8b   : > { %5538 = vmatprep.subr.bf16.mxu0 %v5537_v33  ;;  %7045 = vst [vmem:[#allocation31_spill] sm:$0xff] %v6510_v25  ;;  %7054 = vst [vmem:[#allocation40_spill] sm:$0xff] %v6587_v10  ;;  %v4058_v31 = vld [vmem:[#allocation2 + $0x182] sm:$0xff] }
  0x8c   : > { %4675 = vmatmul.mubr.f32.gmra.mrb[30].mxu1 %v6456_v39 }
  0x8d   : > { %5051 = vmatmul.mubr.f32.gmra.mrb[14].mxu0 %v6459_v40  ;;  %4709 = vmatprep.mubr.f32.mxu1 %v5935_v36 }
  0x8e   : > { %5053 = vmatprep.mubr.f32.mxu0 %v6461_v46  ;;  %5540 = vmatpush3.bf16.msra.mxu0 %v5537_v33  ;;  %v6517_v33 = vld [vmem:[#allocation2 + $0x122] sm:$0xff] }
  0x8f   : > { %5542 = vmatprep.subr.bf16.mxu0 %v6463_v47 }
  0x90   : > { %4710 = vmatmul.mubr.f32.vlgmr.msra.gmra.mrb[0].mxu1 %v5935_v36  ;;  %v6497_v36 = vld [vmem:[#allocation2 + $0x30] sm:$0xff] }
  0x91   : > { %5054 = vmatmul.mubr.f32.gmra.mrb[16].mxu0 %v6475_v56  ;;  %5384 = vmatpush3.bf16.msra.mxu1 %v6327_v41  ;;  %7044 = vst [vmem:[#allocation30_spill] sm:$0xff] %v6497_v36  ;;  %v1339_v41 = vld [vmem:[%s6985_s1 + $0x130] sm:$0xff] }
  0x92   : > { %4712 = vmatprep.mubr.f32.mxu1 %v6477_v57  ;;  %5056 = vmatprep.mubr.f32.mxu0 %v6479_v63  ;;  %v5393_v34 = vpack.c.bf16 %v1340_v19, %v1339_v41  ;;  %v5397_v41 = vpack.c.bf16 %v1342_v48, %v1341_v38  ;;  %v1343_v19 = vld [vmem:[%s6985_s1 + $0x150] sm:$0xff]  ;;  %v6551_v38 = vld [vmem:[#allocation2 + $0x78] sm:$0xff] }
  0x93   : > { %5386 = vmatprep.subr.bf16.mxu1 %v5385_v0  ;;  %7050 = vst [vmem:[#allocation36_spill] sm:$0xff] %v6551_v38  ;;  %v6553_v48 = vld [vmem:[#allocation2 + $0x152] sm:$0xff]  ;;  %v5401_v39 = vpack.c.bf16 %v1344_v22, %v1343_v19  ;;  %v6571_v19 = vld [vmem:[#allocation2 + $0x16a] sm:$0xff] }
  0x94   : > { %4713 = vmatmul.mubr.f32.gmra.mrb[2].mxu1 %v6491_v8  ;;  %v6569_v22 = vld [vmem:[#allocation2 + $0x90] sm:$0xff] }
  0x95   : > { %5057 = vmatmul.mubr.f32.gmra.mrb[18].mxu0 %v6495_v11  ;;  %4715 = vmatprep.mubr.f32.mxu1 %v6497_v36  ;;  %7052 = vst [vmem:[#allocation38_spill] sm:$0xff] %v6569_v22 }
  0x96   : > { %5059 = vmatprep.mubr.f32.mxu0 %v6499_v17  ;;  %5388 = vmatpush3.bf16.msra.mxu1 %v5385_v0  ;;  %v6531_v0 = vld [vmem:[#allocation2 + $0x12a] sm:$0xff] }
  0x97   : > { %5390 = vmatprep.subr.bf16.mxu1 %v5389_v18 }
  0x98   : > { %4716 = vmatmul.mubr.f32.gmra.mrb[4].mxu1 %v6510_v25 }
  0x99   : > { %5060 = vmatmul.mubr.f32.gmra.mrb[20].mxu0 %v6513_v26  ;;  %4718 = vmatprep.mubr.f32.mxu1 %v6515_v27 }
  0x9a   : > { %5062 = vmatprep.mubr.f32.mxu0 %v6517_v33  ;;  %5392 = vmatpush3.bf16.msra.mxu1 %v5389_v18  ;;  %v6549_v18 = vld [vmem:[#allocation2 + $0x142] sm:$0xff] }
  0x9b   : > { %5394 = vmatprep.subr.bf16.mxu1 %v5393_v34 }
  0x9c   : > { %4719 = vmatmul.mubr.f32.gmra.mrb[6].mxu1 %v6528_v55 }
  0x9d   : > { %5063 = vmatmul.mubr.f32.gmra.mrb[22].mxu0 %v6531_v0  ;;  %4721 = vmatprep.mubr.f32.mxu1 %v6533_v1 }
  0x9e   : > { %5065 = vmatprep.mubr.f32.mxu0 %v6535_v7  ;;  %5396 = vmatpush3.bf16.msra.mxu1 %v5393_v34  ;;  %v6567_v34 = vld [vmem:[#allocation2 + $0x15a] sm:$0xff] }
  0x9f   : > { %5398 = vmatprep.subr.bf16.mxu1 %v5397_v41 }
  0xa0   : > { %4722 = vmatmul.mubr.f32.gmra.mrb[8].mxu1 %v6546_v16 }
  0xa1   : > { %5066 = vmatmul.mubr.f32.gmra.mrb[24].mxu0 %v6549_v18  ;;  %4724 = vmatprep.mubr.f32.mxu1 %v6551_v38 }
  0xa2   : > { %5068 = vmatprep.mubr.f32.mxu0 %v6553_v48  ;;  %5400 = vmatpush3.bf16.msra.mxu1 %v5397_v41  ;;  %v6585_v41 = vld [vmem:[#allocation2 + $0x172] sm:$0xff] }
  0xa3   : > { %5402 = vmatprep.subr.bf16.mxu1 %v5401_v39 }
  0xa4   : > { %4725 = vmatmul.mubr.f32.gmra.mrb[10].mxu1 %v6564_v29 }
  0xa5   : > { %5069 = vmatmul.mubr.f32.gmra.mrb[26].mxu0 %v6567_v34  ;;  %4727 = vmatprep.mubr.f32.mxu1 %v6569_v22 }
  0xa6   : > { %5071 = vmatprep.mubr.f32.mxu0 %v6571_v19  ;;  %5404 = vmatpush3.bf16.msra.mxu1 %v5401_v39  ;;  %v4059_v39 = vld [vmem:[#allocation2 + $0x18a] sm:$0xff] }
  0xa7   : > { %5406 = vmatprep.subr.bf16.mxu1 %v5405_v4 }
  0xa8   : > { %4728 = vmatmul.mubr.f32.gmra.mrb[12].mxu1 %v6582_v60 }
  0xa9   : > { %5072 = vmatmul.mubr.f32.gmra.mrb[28].mxu0 %v6585_v41  ;;  %4730 = vmatprep.mubr.f32.mxu1 %v6587_v10 }
  0xaa   : > { %5074 = vmatprep.mubr.f32.mxu0 %v4058_v31  ;;  %5408 = vmatpush3.bf16.msra.mxu1 %v5405_v4  ;;  %v6612_v31 = vld [vmem:[#allocation2 + $0xc8] sm:$0xff]  ;;  %v6615_v4 = vld [vmem:[#allocation2 + $0xd8] sm:$0xff] }
  0xab   : > { %5410 = vmatprep.subr.bf16.mxu1 %v5409_v14  ;;  %7057 = vst [vmem:[#allocation43_spill] sm:$0xff] %v6612_v31 }
  0xac   : > { %4731 = vmatmul.mubr.f32.gmra.mrb[14].mxu1 %v6598_v5 }
  0xad   : > { %5075 = vmatmul.mubr.f32.gmra.mrb[30].mxu0 %v4059_v39  ;;  %4733 = vmatprep.mubr.f32.mxu1 %v6600_v2  ;;  %v2867_v39 = vld [vmem:[%s6985_s1 + $0x3a8] sm:$0xff] }
  0xae   : > { %5109 = vmatprep.mubr.f32.mxu0 %v6497_v36  ;;  %5412 = vmatpush3.bf16.msra.mxu1 %v5409_v14  ;;  %v5549_v14 = vpack.c.bf16 %v2867_v39, %v2866_v12  ;;  %v6645_v12 = vld [vmem:[#allocation2 + $0x108] sm:$0xff] }
  0xaf   : > { %5414 = vmatprep.subr.bf16.mxu1 %v6602_v20  ;;  %v1302_v36 = vld [vmem:[#allocation2 + $0xa] sm:$0xff] }
  0xb0   : > { %4734 = vmatmul.mubr.f32.gmra.mrb[16].mxu1 %v6612_v31 }
  0xb1   : > { %5110 = vmatmul.mubr.f32.vlgmr.msra.gmra.mrb[0].mxu0 %v6510_v25  ;;  %4736 = vmatprep.mubr.f32.mxu1 %v6615_v4  ;;  %v2869_v25 = vld [vmem:[%s6985_s1 + $0x3b8] sm:$0xff] }
  0xb2   : > { %5544 = vmatpush3.bf16.msra.mxu0 %v6463_v47  ;;  %5112 = vmatprep.mubr.f32.mxu0 %v6515_v27  ;;  %v6642_v47 = vld [vmem:[#allocation2 + $0xf8] sm:$0xff]  ;;  %v5553_v39 = vpack.c.bf16 %v2869_v25, %v2868_v23  ;;  %v2870_v27 = vld [vmem:[%s6985_s1 + $0x3c0] sm:$0xff]  ;;  %v2872_v23 = vld [vmem:[%s6985_s1 + $0x3d0] sm:$0xff] }
  0xb3   : > { %5546 = vmatprep.subr.bf16.mxu0 %v5545_v54 }
  0xb4   : > { %4737 = vmatmul.mubr.f32.gmra.mrb[18].mxu1 %v6627_v61 }
  0xb5   : > { %5113 = vmatmul.mubr.f32.gmra.mrb[2].mxu0 %v6528_v55  ;;  %4739 = vmatprep.mubr.f32.mxu1 %v6631_v49  ;;  %v2871_v55 = vld [vmem:[%s6985_s1 + $0x3c8] sm:$0xff] }
  0xb6   : > { %5115 = vmatprep.mubr.f32.mxu0 %v6533_v1  ;;  %5548 = vmatpush3.bf16.msra.mxu0 %v5545_v54  ;;  %v6656_v1 = vld [vmem:[#allocation2 + $0x110] sm:$0xff]  ;;  %v6659_v54 = vld [vmem:[#allocation2 + $0x120] sm:$0xff]  ;;  %v5557_v25 = vpack.c.bf16 %v2871_v55, %v2870_v27 }
  0xb7   : > { %5550 = vmatprep.subr.bf16.mxu0 %v5549_v14  ;;  %v2874_v55 = vld [vmem:[%s6985_s1 + $0x3e0] sm:$0xff] }
  0xb8   : > { %4740 = vmatmul.mubr.f32.gmra.mrb[20].mxu1 %v6642_v47 }
  0xb9   : > { %5116 = vmatmul.mubr.f32.gmra.mrb[4].mxu0 %v6546_v16  ;;  %4742 = vmatprep.mubr.f32.mxu1 %v6645_v12  ;;  %v2873_v16 = vld [vmem:[%s6985_s1 + $0x3d8] sm:$0xff] }
  0xba   : > { %5118 = vmatprep.mubr.f32.mxu0 %v6551_v38  ;;  %5552 = vmatpush3.bf16.msra.mxu0 %v5549_v14  ;;  %v6670_v38 = vld [vmem:[#allocation2 + $0x128] sm:$0xff]  ;;  %v6673_v14 = vld [vmem:[#allocation2 + $0x138] sm:$0xff]  ;;  %v5561_v27 = vpack.c.bf16 %v2873_v16, %v2872_v23  ;;  %v2876_v23 = vld [vmem:[%s6985_s1 + $0x3f0] sm:$0xff] }
  0xbb   : > { %5554 = vmatprep.subr.bf16.mxu0 %v5553_v39 }
  0xbc   : > { %4743 = vmatmul.mubr.f32.gmra.mrb[22].mxu1 %v6656_v1 }
  0xbd   : > { %5119 = vmatmul.mubr.f32.gmra.mrb[6].mxu0 %v6564_v29  ;;  %4745 = vmatprep.mubr.f32.mxu1 %v6659_v54  ;;  %v2875_v29 = vld [vmem:[%s6985_s1 + $0x3e8] sm:$0xff] }
  0xbe   : > { %5121 = vmatprep.mubr.f32.mxu0 %v6569_v22  ;;  %5556 = vmatpush3.bf16.msra.mxu0 %v5553_v39  ;;  %v6684_v22 = vld [vmem:[#allocation2 + $0x140] sm:$0xff]  ;;  %v6687_v39 = vld [vmem:[#allocation2 + $0x150] sm:$0xff]  ;;  %v5565_v16 = vpack.c.bf16 %v2875_v29, %v2874_v55 }
  0xbf   : > { %5558 = vmatprep.subr.bf16.mxu0 %v5557_v25  ;;  %v3167_v55 = vld [vmem:[%s6985_s1 + $0x400] sm:$0xff] }
  0xc0   : > { %4746 = vmatmul.mubr.f32.gmra.mrb[24].mxu1 %v6670_v38 }
  0xc1   : > { %5122 = vmatmul.mubr.f32.gmra.mrb[8].mxu0 %v6582_v60  ;;  %4748 = vmatprep.mubr.f32.mxu1 %v6673_v14  ;;  %v2877_v60 = vld [vmem:[%s6985_s1 + $0x3f8] sm:$0xff] }
  0xc2   : > { %5124 = vmatprep.mubr.f32.mxu0 %v6587_v10  ;;  %5560 = vmatpush3.bf16.msra.mxu0 %v5557_v25  ;;  %v6698_v10 = vld [vmem:[#allocation2 + $0x158] sm:$0xff]  ;;  %v6701_v25 = vld [vmem:[#allocation2 + $0x168] sm:$0xff]  ;;  %v5569_v29 = vpack.c.bf16 %v2877_v60, %v2876_v23  ;;  %v1642_v23 = vld [vmem:[%s6985_s1 + $0x190] sm:$0xff] }
  0xc3   : > { %5562 = vmatprep.subr.bf16.mxu0 %v5561_v27 }
  0xc4   : > { %4749 = vmatmul.mubr.f32.gmra.mrb[26].mxu1 %v6684_v22 }
  0xc5   : > { %5125 = vmatmul.mubr.f32.gmra.mrb[10].mxu0 %v6598_v5  ;;  %4751 = vmatprep.mubr.f32.mxu1 %v6687_v39  ;;  %v3168_v5 = vld [vmem:[%s6985_s1 + $0x408] sm:$0xff] }
  0xc6   : > { %5127 = vmatprep.mubr.f32.mxu0 %v6600_v2  ;;  %5564 = vmatpush3.bf16.msra.mxu0 %v5561_v27  ;;  %v6712_v2 = vld [vmem:[#allocation2 + $0x170] sm:$0xff]  ;;  %v1301_v27 = vld [vmem:[#allocation2 + $0x2] sm:$0xff]  ;;  %v6715_v60 = vpack.c.bf16 %v3168_v5, %v3167_v55 }
  0xc7   : > { %5566 = vmatprep.subr.bf16.mxu0 %v5565_v16  ;;  %v1644_v5 = vld [vmem:[%s6985_s1 + $0x1a0] sm:$0xff]  ;;  %v1645_v55 = vld [vmem:[%s6985_s1 + $0x1a8] sm:$0xff] }
  0xc8   : > { %4752 = vmatmul.mubr.f32.gmra.mrb[28].mxu1 %v6698_v10 }
  0xc9   : > { %5128 = vmatmul.mubr.f32.gmra.mrb[12].mxu0 %v6612_v31  ;;  %4754 = vmatprep.mubr.f32.mxu1 %v6701_v25  ;;  %v1643_v31 = vld [vmem:[%s6985_s1 + $0x198] sm:$0xff] }
  0xca   : > { %5130 = vmatprep.mubr.f32.mxu0 %v6615_v4  ;;  %5568 = vmatpush3.bf16.msra.mxu0 %v5565_v16  ;;  %v5417_v16 = vpack.c.bf16 %v1643_v31, %v1642_v23  ;;  %v5421_v31 = vpack.c.bf16 %v1645_v55, %v1644_v5  ;;  %v1653_v23 = vld [vmem:[%s6985_s1 + $0x1e8] sm:$0xff]  ;;  %v1655_v5 = vld [vmem:[%s6985_s1 + $0x1f8] sm:$0xff] }
  0xcb   : > { %5570 = vmatprep.subr.bf16.mxu0 %v5569_v29 }
  0xcc   : > { %4755 = vmatmul.mubr.f32.gmra.mrb[30].mxu1 %v6712_v2 }
  0xcd   : > { %5131 = vmatmul.mubr.f32.gmra.mrb[14].mxu0 %v6627_v61  ;;  %4789 = vmatprep.mubr.f32.mxu1 %v1301_v27  ;;  %v1651_v27 = vld [vmem:[%s6985_s1 + $0x1d8] sm:$0xff] }
  0xce   : > { %5133 = vmatprep.mubr.f32.mxu0 %v6631_v49  ;;  %5572 = vmatpush3.bf16.msra.mxu0 %v5569_v29  ;;  %v1647_v29 = vld [vmem:[%s6985_s1 + $0x1b8] sm:$0xff] }
  0xcf   : > { %5574 = vmatprep.subr.bf16.mxu0 %v6715_v60 }
  0xd0   : > { %4790 = vmatmul.mubr.f32.vlgmr.msra.gmra.mrb[0].mxu1 %v1302_v36  ;;  %v1646_v36 = vld [vmem:[%s6985_s1 + $0x1b0] sm:$0xff] }
  0xd1   : > { %5134 = vmatmul.mubr.f32.gmra.mrb[16].mxu0 %v6642_v47  ;;  %5416 = vmatpush3.bf16.msra.mxu1 %v6602_v20  ;;  %v1649_v20 = vld [vmem:[%s6985_s1 + $0x1c8] sm:$0xff] }
  0xd2   : > { %4792 = vmatprep.mubr.f32.mxu1 %v6319_v37  ;;  %5136 = vmatprep.mubr.f32.mxu0 %v6645_v12  ;;  %v5425_v37 = vpack.c.bf16 %v1647_v29, %v1646_v36  ;;  %v3170_v36 = vld [vmem:[%s6985_s1 + $0x418] sm:$0xff] }
  0xd3   : > { %5418 = vmatprep.subr.bf16.mxu1 %v5417_v16 }
  0xd4   : > { %4793 = vmatmul.mubr.f32.gmra.mrb[2].mxu1 %v6332_v42  ;;  %v1648_v42 = vld [vmem:[%s6985_s1 + $0x1c0] sm:$0xff] }
  0xd5   : > { %5137 = vmatmul.mubr.f32.gmra.mrb[18].mxu0 %v6656_v1  ;;  %4795 = vmatprep.mubr.f32.mxu1 %v6336_v45  ;;  %v5429_v45 = vpack.c.bf16 %v1649_v20, %v1648_v42  ;;  %v4096_v42 = vld [vmem:[#allocation2 + $0x61] sm:$0xff] }
  0xd6   : > { %5139 = vmatprep.mubr.f32.mxu0 %v6659_v54  ;;  %5420 = vmatpush3.bf16.msra.mxu1 %v5417_v16 }
  0xd7   : > { %5422 = vmatprep.subr.bf16.mxu1 %v5421_v31 }
  0xd8   : > { %4796 = vmatmul.mubr.f32.gmra.mrb[4].mxu1 %v6351_v51  ;;  %v1650_v51 = vld [vmem:[%s6985_s1 + $0x1d0] sm:$0xff] }
  0xd9   : > { %5140 = vmatmul.mubr.f32.gmra.mrb[20].mxu0 %v6670_v38  ;;  %4798 = vmatprep.mubr.f32.mxu1 %v6355_v53  ;;  %v5433_v53 = vpack.c.bf16 %v1651_v27, %v1650_v51  ;;  %v3176_v27 = vld [vmem:[%s6985_s1 + $0x448] sm:$0xff] }
  0xda   : > { %5142 = vmatprep.mubr.f32.mxu0 %v6673_v14  ;;  %5424 = vmatpush3.bf16.msra.mxu1 %v5421_v31  ;;  %v4092_v31 = vld [vmem:[#allocation2 + $0x31] sm:$0xff] }
  0xdb   : > { %5426 = vmatprep.subr.bf16.mxu1 %v5425_v37 }
  0xdc   : > { %4799 = vmatmul.mubr.f32.gmra.mrb[6].mxu1 %v6369_v59  ;;  %v1652_v59 = vld [vmem:[%s6985_s1 + $0x1e0] sm:$0xff] }
  0xdd   : > { %5143 = vmatmul.mubr.f32.gmra.mrb[22].mxu0 %v6684_v22  ;;  %4801 = vmatprep.mubr.f32.mxu1 %v6373_v62  ;;  %v6777_v62 = vld [vmem:[#allocation2 + $0x180] sm:$0xff]  ;;  %v5437_v16 = vpack.c.bf16 %v1653_v23, %v1652_v59  ;;  %v3178_v59 = vld [vmem:[%s6985_s1 + $0x458] sm:$0xff]  ;;  %v4102_v23 = vld [vmem:[#allocation2 + $0xa9] sm:$0xff] }
  0xde   : > { %5145 = vmatprep.mubr.f32.mxu0 %v6687_v39  ;;  %5428 = vmatpush3.bf16.msra.mxu1 %v5425_v37  ;;  %v3172_v37 = vld [vmem:[%s6985_s1 + $0x428] sm:$0xff] }
  0xdf   : > { %5430 = vmatprep.subr.bf16.mxu1 %v5429_v45 }
  0xe0   : > { %4802 = vmatmul.mubr.f32.gmra.mrb[8].mxu1 %v6387_v3  ;;  %v1654_v3 = vld [vmem:[%s6985_s1 + $0x1f0] sm:$0xff] }
  0xe1   : > { %5146 = vmatmul.mubr.f32.gmra.mrb[24].mxu0 %v6698_v10  ;;  %4804 = vmatprep.mubr.f32.mxu1 %v6391_v6  ;;  %v6789_v6 = vld [vmem:[#allocation2 + $0x188] sm:$0xff]  ;;  %v5441_v55 = vpack.c.bf16 %v1655_v5, %v1654_v3  ;;  %v3182_v5 = vld [vmem:[%s6985_s1 + $0x478] sm:$0xff] }
  0xe2   : > { %5148 = vmatprep.mubr.f32.mxu0 %v6701_v25  ;;  %5432 = vmatpush3.bf16.msra.mxu1 %v5429_v45  ;;  %v3174_v45 = vld [vmem:[%s6985_s1 + $0x438] sm:$0xff]  ;;  %v3180_v3 = vld [vmem:[%s6985_s1 + $0x468] sm:$0xff] }
  0xe3   : > { %5434 = vmatprep.subr.bf16.mxu1 %v5433_v53 }
  0xe4   : > { %4805 = vmatmul.mubr.f32.gmra.mrb[10].mxu1 %v6405_v13  ;;  %v5903_v13 = vld [vmem:[#allocation2 + $0x8] sm:$0xff] }
  0xe5   : > { %5149 = vmatmul.mubr.f32.gmra.mrb[26].mxu0 %v6712_v2  ;;  %4807 = vmatprep.mubr.f32.mxu1 %v6409_v15  ;;  %v3169_v15 = vld [vmem:[%s6985_s1 + $0x410] sm:$0xff] }
  0xe6   : > { %5151 = vmatprep.mubr.f32.mxu0 %v6777_v62  ;;  %5436 = vmatpush3.bf16.msra.mxu1 %v5433_v53  ;;  %v5577_v29 = vpack.c.bf16 %v3170_v36, %v3169_v15  ;;  %v7075_v15 = vld [vmem:[#allocation16_spill] sm:$0xff]  ;;  %v7076_v36 = vld [vmem:[#allocation37_spill] sm:$0xff] }
  0xe7   : > { %5438 = vmatprep.subr.bf16.mxu1 %v5437_v16 }
  0xe8   : > { %4808 = vmatmul.mubr.f32.gmra.mrb[12].mxu1 %v6423_v21  ;;  %v4093_v21 = vld [vmem:[#allocation2 + $0x39] sm:$0xff] }
  0xe9   : > { %5152 = vmatmul.mubr.f32.gmra.mrb[28].mxu0 %v6789_v6  ;;  %4810 = vmatprep.mubr.f32.mxu1 %v6427_v24  ;;  %v4094_v24 = vld [vmem:[#allocation2 + $0x49] sm:$0xff] }
  0xea   : > { %5154 = vmatprep.mubr.f32.mxu0 %v5903_v13  ;;  %5440 = vmatpush3.bf16.msra.mxu1 %v5437_v16 }
  0xeb   : > { %5442 = vmatprep.subr.bf16.mxu1 %v5441_v55 }
  0xec   : > { %4811 = vmatmul.mubr.f32.gmra.mrb[14].mxu1 %v6441_v30  ;;  %v3171_v30 = vld [vmem:[%s6985_s1 + $0x420] sm:$0xff] }
  0xed   : > { %5155 = vmatmul.mubr.f32.gmra.mrb[30].mxu0 %v5903_v13  ;;  %4813 = vmatprep.mubr.f32.mxu1 %v6445_v32  ;;  %v4095_v32 = vld [vmem:[#allocation2 + $0x51] sm:$0xff]  ;;  %v5581_v20 = vpack.c.bf16 %v3172_v37, %v3171_v30  ;;  %v6891_v30 = vld [vmem:[#allocation2 + $0x181] sm:$0xff] }
  0xee   : > { %5189 = vmatprep.mubr.f32.mxu0 %v4092_v31  ;;  %5444 = vmatpush3.bf16.msra.mxu1 %v5441_v55  ;;  %v7072_v55 = vld [vmem:[#allocation25_spill] sm:$0xff]  ;;  %v7073_v13 = vld [vmem:[#allocation36_spill] sm:$0xff]  ;;  %v7074_v31 = vld [vmem:[#allocation26_spill] sm:$0xff] }
  0xef   : > { %5605 = vmatprep.subr.bf16.mxu1 %v6088_v44  ;;  %v7080_v37 = vld [vmem:[#allocation17_spill] sm:$0xff] }
  0xf0   : > { %4814 = vmatmul.mubr.f32.gmra.mrb[16].mxu1 %v6459_v40  ;;  %v3173_v40 = vld [vmem:[%s6985_s1 + $0x430] sm:$0xff] }
  0xf1   : > { %5190 = vmatmul.mubr.f32.vlgmr.msra.gmra.mrb[0].mxu0 %v4093_v21  ;;  %4816 = vmatprep.mubr.f32.mxu1 %v6461_v46  ;;  %v4097_v46 = vld [vmem:[#allocation2 + $0x69] sm:$0xff]  ;;  %v5585_v51 = vpack.c.bf16 %v3174_v45, %v3173_v40  ;;  %v4122_v45 = vld [vmem:[#allocation2 + $0x199] sm:$0xff] }
  0xf2   : > { %5576 = vmatpush3.bf16.msra.mxu0 %v6715_v60  ;;  %5192 = vmatprep.mubr.f32.mxu0 %v4094_v24  ;;  %v4098_v60 = vld [vmem:[#allocation2 + $0x79] sm:$0xff]  ;;  %v7077_v21 = vld [vmem:[#allocation27_spill] sm:$0xff]  ;;  %v7078_v24 = vld [vmem:[#allocation38_spill] sm:$0xff] }
  0xf3   : > { %5578 = vmatprep.subr.bf16.mxu0 %v5577_v29  ;;  %v6898_v40 = vld [vmem:[#allocation2 + $0x189] sm:$0xff] }
  0xf4   : > { %4817 = vmatmul.mubr.f32.gmra.mrb[18].mxu1 %v6475_v56  ;;  %v3175_v56 = vld [vmem:[%s6985_s1 + $0x440] sm:$0xff] }
  0xf5   : > { %5193 = vmatmul.mubr.f32.gmra.mrb[2].mxu0 %v4095_v32  ;;  %4819 = vmatprep.mubr.f32.mxu1 %v6479_v63  ;;  %v4099_v63 = vld [vmem:[#allocation2 + $0x81] sm:$0xff]  ;;  %v5589_v53 = vpack.c.bf16 %v3176_v27, %v3175_v56  ;;  %v7081_v32 = vld [vmem:[#allocation39_spill] sm:$0xff] }
  0xf6   : > { %5195 = vmatprep.mubr.f32.mxu0 %v4096_v42  ;;  %5580 = vmatpush3.bf16.msra.mxu0 %v5577_v29  ;;  %v7079_v29 = vld [vmem:[#allocation28_spill] sm:$0xff]  ;;  %v7082_v42 = vld [vmem:[#allocation29_spill] sm:$0xff] }
  0xf7   : > { %5582 = vmatprep.subr.bf16.mxu0 %v5581_v20  ;;  %v4123_v56 = vld [vmem:[#allocation2 + $0x1a1] sm:$0xff]  ;;  %v4124_v27 = vld [vmem:[#allocation2 + $0x32] sm:$0xff] }
  0xf8   : > { %4820 = vmatmul.mubr.f32.gmra.mrb[20].mxu1 %v6495_v11  ;;  %v3177_v11 = vld [vmem:[%s6985_s1 + $0x450] sm:$0xff] }
  0xf9   : > { %5196 = vmatmul.mubr.f32.gmra.mrb[4].mxu0 %v4097_v46  ;;  %4822 = vmatprep.mubr.f32.mxu1 %v6499_v17  ;;  %v4101_v17 = vld [vmem:[#allocation2 + $0x99] sm:$0xff]  ;;  %v5593_v16 = vpack.c.bf16 %v3178_v59, %v3177_v11  ;;  %v7084_v46 = vld [vmem:[#allocation18_spill] sm:$0xff] }
  0xfa   : > { %5198 = vmatprep.mubr.f32.mxu0 %v4098_v60  ;;  %5584 = vmatpush3.bf16.msra.mxu0 %v5581_v20  ;;  %v7083_v20 = vld [vmem:[#allocation40_spill] sm:$0xff]  ;;  %v7085_v60 = vld [vmem:[#allocation41_spill] sm:$0xff]  ;;  %v4126_v59 = vld [vmem:[#allocation2 + $0x4a] sm:$0xff] }
  0xfb   : > { %5586 = vmatprep.subr.bf16.mxu0 %v5585_v51  ;;  %v4125_v11 = vld [vmem:[#allocation2 + $0x3a] sm:$0xff] }
  0xfc   : > { %4823 = vmatmul.mubr.f32.gmra.mrb[22].mxu1 %v6513_v26  ;;  %v3179_v26 = vld [vmem:[%s6985_s1 + $0x460] sm:$0xff] }
  0xfd   : > { %5199 = vmatmul.mubr.f32.gmra.mrb[6].mxu0 %v4099_v63  ;;  %4825 = vmatprep.mubr.f32.mxu1 %v6517_v33  ;;  %v5597_v33 = vpack.c.bf16 %v3180_v3, %v3179_v26  ;;  %v7087_v63 = vld [vmem:[#allocation19_spill] sm:$0xff]  ;;  %v4141_v3 = vld [vmem:[#allocation2 + $0xfa] sm:$0xff] }
  0xfe   : > { %5201 = vmatprep.mubr.f32.mxu0 %v6274_v9  ;;  %5588 = vmatpush3.bf16.msra.mxu0 %v5585_v51  ;;  %v4103_v9 = vld [vmem:[#allocation2 + $0xb1] sm:$0xff]  ;;  %v7086_v51 = vld [vmem:[#allocation42_spill] sm:$0xff] }
  0xff   : > { %5590 = vmatprep.subr.bf16.mxu0 %v5589_v53  ;;  %v4132_v26 = vld [vmem:[#allocation2 + $0x92] sm:$0xff] }
 0x100   : > { %4826 = vmatmul.mubr.f32.gmra.mrb[24].mxu1 %v6531_v0  ;;  %v3181_v0 = vld [vmem:[%s6985_s1 + $0x470] sm:$0xff] }
 0x101   : > { %5202 = vmatmul.mubr.f32.gmra.mrb[8].mxu0 %v4101_v17  ;;  %4828 = vmatprep.mubr.f32.mxu1 %v6535_v7  ;;  %v5601_v7 = vpack.c.bf16 %v3182_v5, %v3181_v0  ;;  %v4127_v17 = vld [vmem:[#allocation2 + $0x52] sm:$0xff]  ;;  %v4144_v0 = vld [vmem:[#allocation2 + $0x122] sm:$0xff] }
 0x102   : > { %5204 = vmatprep.mubr.f32.mxu0 %v4102_v23  ;;  %5592 = vmatpush3.bf16.msra.mxu0 %v5589_v53  ;;  %v7088_v53 = vld [vmem:[#allocation43_spill] sm:$0xff]  ;;  %v4128_v23 = vld [vmem:[#allocation2 + $0x62] sm:$0xff] }
 0x103   : > { %5594 = vmatprep.subr.bf16.mxu0 %v5593_v16  ;;  %v4017_v5 = vld [vmem:[#allocation2 + $0x111] sm:$0xff] }
 0x104   : > { %4829 = vmatmul.mubr.f32.gmra.mrb[26].mxu1 %v6549_v18  ;;  %v7061_v18 = vld [vmem:[#allocation31_spill] sm:$0xff] }
 0x105   : > { %5205 = vmatmul.mubr.f32.gmra.mrb[10].mxu0 %v4103_v9  ;;  %4831 = vmatprep.mubr.f32.mxu1 %v6553_v48  ;;  %v7068_v48 = vld [vmem:[#allocation34_spill] sm:$0xff] }
 0x106   : > { %5207 = vmatprep.mubr.f32.mxu0 %v6302_v28  ;;  %5596 = vmatpush3.bf16.msra.mxu0 %v5593_v16  ;;  %v7058_v28 = vld [vmem:[#allocation30_spill] sm:$0xff]  ;;  %v4130_v16 = vld [vmem:[#allocation2 + $0x7a] sm:$0xff] }
 0x107   : > { %5598 = vmatprep.subr.bf16.mxu0 %v5597_v33  ;;  %v4142_v9 = vld [vmem:[#allocation2 + $0x10a] sm:$0xff] }
 0x108   : > { %4832 = vmatmul.mubr.f32.gmra.mrb[28].mxu1 %v6567_v34  ;;  %v7069_v34 = vld [vmem:[#allocation24_spill] sm:$0xff] }
 0x109   : > { %5208 = vmatmul.mubr.f32.gmra.mrb[12].mxu0 %v6317_v35  ;;  %4834 = vmatprep.mubr.f32.mxu1 %v6571_v19  ;;  %v7059_v35 = vld [vmem:[#allocation20_spill] sm:$0xff]  ;;  %v7070_v19 = vld [vmem:[#allocation15_spill] sm:$0xff] }
 0x10a   : > { %5210 = vmatprep.mubr.f32.mxu0 %v6334_v43  ;;  %5600 = vmatpush3.bf16.msra.mxu0 %v5597_v33  ;;  %v7060_v43 = vld [vmem:[#allocation13_spill] sm:$0xff]  ;;  %v4143_v33 = vld [vmem:[#allocation2 + $0x112] sm:$0xff] }
 0x10b   : > { %5602 = vmatprep.subr.bf16.mxu0 %v5601_v7 }
 0x10c   : > { %4835 = vmatmul.mubr.f32.gmra.mrb[30].mxu1 %v6585_v41  ;;  %v7071_v41 = vld [vmem:[#allocation35_spill] sm:$0xff] }
 0x10d   : > { %5211 = vmatmul.mubr.f32.gmra.mrb[14].mxu0 %v6348_v50  ;;  %4869 = vmatprep.mubr.f32.mxu1 %v6477_v57  ;;  %v7062_v50 = vld [vmem:[#allocation21_spill] sm:$0xff]  ;;  %v7063_v57 = vld [vmem:[#allocation32_spill] sm:$0xff] }
 0x10e   : > { %5213 = vmatprep.mubr.f32.mxu0 %v6353_v52  ;;  %5604 = vmatpush3.bf16.msra.mxu0 %v5601_v7  ;;  %v7064_v52 = vld [vmem:[#allocation22_spill] sm:$0xff] }
 0x10f   : > { %v4018_v7 = vld [vmem:[#allocation2 + $0x121] sm:$0xff] }
 0x110   : > { %4870 = vmatmul.mubr.f32.vlgmr.msra.gmra.mrb[0].mxu1 %v6491_v8  ;;  %v7065_v8 = vld [vmem:[#allocation14_spill] sm:$0xff] }
 0x111   : > { %5214 = vmatmul.mubr.f32.gmra.mrb[16].mxu0 %v6366_v58  ;;  %5613 = vmatpush3.bf16.msra.mxu1 %v6088_v44  ;;  %v7066_v58 = vld [vmem:[#allocation33_spill] sm:$0xff]  ;;  %v7067_v44 = vld [vmem:[#allocation23_spill] sm:$0xff] }
 0x112   : > { %4872 = vmatprep.mubr.f32.mxu1 %v7058_v28  ;;  %5216 = vmatprep.mubr.f32.mxu0 %v7059_v35  ;;  %v4146_v28 = vld [vmem:[#allocation2 + $0x13a] sm:$0xff]  ;;  %v4019_v35 = vld [vmem:[#allocation2 + $0x129] sm:$0xff] }
 0x113   : > { %5606 = vmatprep.subr.bf16.mxu1 %v7060_v43 }
 0x114   : > { %4873 = vmatmul.mubr.f32.gmra.mrb[2].mxu1 %v7061_v18  ;;  %v4020_v18 = vld [vmem:[#allocation2 + $0x139] sm:$0xff] }
 0x115   : > { %5217 = vmatmul.mubr.f32.gmra.mrb[18].mxu0 %v7062_v50  ;;  %4875 = vmatprep.mubr.f32.mxu1 %v7063_v57  ;;  %v4148_v50 = vld [vmem:[#allocation2 + $0x152] sm:$0xff]  ;;  %v4021_v57 = vld [vmem:[#allocation2 + $0x141] sm:$0xff] }
 0x116   : > { %5219 = vmatprep.mubr.f32.mxu0 %v7064_v52  ;;  %5614 = vmatpush3.bf16.msra.mxu1 %v7060_v43  ;;  %v4147_v43 = vld [vmem:[#allocation2 + $0x142] sm:$0xff]  ;;  %v4149_v52 = vld [vmem:[#allocation2 + $0x15a] sm:$0xff] }
 0x117   : > { %5607 = vmatprep.subr.bf16.mxu1 %v7065_v8 }
 0x118   : > { %4876 = vmatmul.mubr.f32.gmra.mrb[4].mxu1 %v7066_v58  ;;  %v4150_v58 = vld [vmem:[#allocation2 + $0x16a] sm:$0xff] }
 0x119   : > { %5220 = vmatmul.mubr.f32.gmra.mrb[20].mxu0 %v7067_v44  ;;  %4878 = vmatprep.mubr.f32.mxu1 %v7068_v48  ;;  %v4023_v44 = vld [vmem:[#allocation2 + $0x159] sm:$0xff] }
 0x11a   : > { %5222 = vmatprep.mubr.f32.mxu0 %v7069_v34  ;;  %5615 = vmatpush3.bf16.msra.mxu1 %v7065_v8  ;;  %v4022_v8 = vld [vmem:[#allocation2 + $0x151] sm:$0xff]  ;;  %v4024_v34 = vld [vmem:[#allocation2 + $0x169] sm:$0xff] }
 0x11b   : > { %5608 = vmatprep.subr.bf16.mxu1 %v7070_v19  ;;  %v4151_v48 = vld [vmem:[#allocation2 + $0x172] sm:$0xff] }
 0x11c   : > { %4879 = vmatmul.mubr.f32.gmra.mrb[6].mxu1 %v7071_v41  ;;  %v4025_v41 = vld [vmem:[#allocation2 + $0x171] sm:$0xff] }
 0x11d   : > { %5223 = vmatmul.mubr.f32.gmra.mrb[22].mxu0 %v7072_v55  ;;  %4881 = vmatprep.mubr.f32.mxu1 %v7073_v13  ;;  %v4153_v55 = vld [vmem:[#allocation2 + $0x18a] sm:$0xff]  ;;  %v4154_v13 = vld [vmem:[#allocation2 + $0x19a] sm:$0xff] }
 0x11e   : > { %5225 = vmatprep.mubr.f32.mxu0 %v7074_v31  ;;  %5616 = vmatpush3.bf16.msra.mxu1 %v7070_v19  ;;  %v4152_v19 = vld [vmem:[#allocation2 + $0x182] sm:$0xff] }
 0x11f   : > { %5609 = vmatprep.subr.bf16.mxu1 %v7075_v15  ;;  %v4155_v31 = vld [vmem:[#allocation2 + $0x1a2] sm:$0xff] }
 0x120   : > { %4882 = vmatmul.mubr.f32.gmra.mrb[8].mxu1 %v7076_v36 }
 0x121   : > { %5226 = vmatmul.mubr.f32.gmra.mrb[24].mxu0 %v7077_v21  ;;  %4884 = vmatprep.mubr.f32.mxu1 %v7078_v24 }
 0x122   : > { %5228 = vmatprep.mubr.f32.mxu0 %v7079_v29  ;;  %5617 = vmatpush3.bf16.msra.mxu1 %v7075_v15 }
 0x123   : > { %5610 = vmatprep.subr.bf16.mxu1 %v7080_v37 }
 0x124   : > { %4885 = vmatmul.mubr.f32.gmra.mrb[10].mxu1 %v7081_v32 }
 0x125   : > { %5229 = vmatmul.mubr.f32.gmra.mrb[26].mxu0 %v7082_v42  ;;  %4887 = vmatprep.mubr.f32.mxu1 %v7083_v20 }
 0x126   : > { %5231 = vmatprep.mubr.f32.mxu0 %v6891_v30  ;;  %5618 = vmatpush3.bf16.msra.mxu1 %v7080_v37 }
 0x127   : > { %5611 = vmatprep.subr.bf16.mxu1 %v7084_v46 }
 0x128   : > { %4888 = vmatmul.mubr.f32.gmra.mrb[12].mxu1 %v7085_v60 }
 0x129   : > { %5232 = vmatmul.mubr.f32.gmra.mrb[28].mxu0 %v6898_v40  ;;  %4890 = vmatprep.mubr.f32.mxu1 %v7086_v51 }
 0x12a   : > { %5234 = vmatprep.mubr.f32.mxu0 %v4122_v45  ;;  %5619 = vmatpush3.bf16.msra.mxu1 %v7084_v46 }
 0x12b   : > { %5612 = vmatprep.subr.bf16.mxu1 %v7087_v63 }
 0x12c   : > { %4891 = vmatmul.mubr.f32.gmra.mrb[14].mxu1 %v7088_v53 }
 0x12d   : > { %5235 = vmatmul.mubr.f32.gmra.mrb[30].mxu0 %v4123_v56  ;;  %4893 = vmatprep.mubr.f32.mxu1 %v6615_v4  ;;  %v4129_v4 = vld [vmem:[#allocation2 + $0x6a] sm:$0xff] }
 0x12e   : > { %5269 = vmatprep.mubr.f32.mxu0 %v4124_v27  ;;  %5620 = vmatpush3.bf16.msra.mxu1 %v7087_v63 }
 0x130   : > { %4894 = vmatmul.mubr.f32.gmra.mrb[16].mxu1 %v6627_v61  ;;  %v4131_v61 = vld [vmem:[#allocation2 + $0x82] sm:$0xff] }
 0x131   : > { %5270 = vmatmul.mubr.f32.vlgmr.msra.gmra.mrb[0].mxu0 %v4125_v11  ;;  %4896 = vmatprep.mubr.f32.mxu1 %v6631_v49  ;;  %v4133_v49 = vld [vmem:[#allocation2 + $0x9a] sm:$0xff] }
 0x132   : > { %5272 = vmatprep.mubr.f32.mxu0 %v4126_v59 }
 0x134   : > { %4897 = vmatmul.mubr.f32.gmra.mrb[18].mxu1 %v6642_v47  ;;  %v4134_v47 = vld [vmem:[#allocation2 + $0xaa] sm:$0xff] }
 0x135   : > { %5273 = vmatmul.mubr.f32.gmra.mrb[2].mxu0 %v4127_v17  ;;  %4899 = vmatprep.mubr.f32.mxu1 %v6645_v12  ;;  %v4136_v12 = vld [vmem:[#allocation2 + $0xc2] sm:$0xff] }
 0x136   : > { %5275 = vmatprep.mubr.f32.mxu0 %v4128_v23 }
 0x138   : > { %4900 = vmatmul.mubr.f32.gmra.mrb[20].mxu1 %v6656_v1  ;;  %v4135_v1 = vld [vmem:[#allocation2 + $0xb2] sm:$0xff] }
 0x139   : > { %5276 = vmatmul.mubr.f32.gmra.mrb[4].mxu0 %v4129_v4  ;;  %4902 = vmatprep.mubr.f32.mxu1 %v6659_v54  ;;  %v4138_v54 = vld [vmem:[#allocation2 + $0xda] sm:$0xff] }
 0x13a   : > { %5278 = vmatprep.mubr.f32.mxu0 %v4130_v16 }
 0x13c   : > { %4903 = vmatmul.mubr.f32.gmra.mrb[22].mxu1 %v6670_v38  ;;  %v4137_v38 = vld [vmem:[#allocation2 + $0xca] sm:$0xff] }
 0x13d   : > { %5279 = vmatmul.mubr.f32.gmra.mrb[6].mxu0 %v4131_v61  ;;  %4905 = vmatprep.mubr.f32.mxu1 %v6673_v14  ;;  %v4012_v14 = vld [vmem:[#allocation2 + $0xd9] sm:$0xff] }
 0x13e   : > { %5281 = vmatprep.mubr.f32.mxu0 %v4132_v26 }
 0x140   : > { %4906 = vmatmul.mubr.f32.gmra.mrb[24].mxu1 %v6684_v22  ;;  %v4139_v22 = vld [vmem:[#allocation2 + $0xe2] sm:$0xff] }
 0x141   : > { %5282 = vmatmul.mubr.f32.gmra.mrb[8].mxu0 %v4133_v49  ;;  %4908 = vmatprep.mubr.f32.mxu1 %v6687_v39  ;;  %v4140_v39 = vld [vmem:[#allocation2 + $0xf2] sm:$0xff] }
 0x142   : > { %5284 = vmatprep.mubr.f32.mxu0 %v4134_v47 }
 0x144   : > { %4909 = vmatmul.mubr.f32.gmra.mrb[26].mxu1 %v6698_v10  ;;  %v4013_v10 = vld [vmem:[#allocation2 + $0xe1] sm:$0xff] }
 0x145   : > { %5285 = vmatmul.mubr.f32.gmra.mrb[10].mxu0 %v4135_v1  ;;  %4911 = vmatprep.mubr.f32.mxu1 %v6701_v25  ;;  %v4014_v25 = vld [vmem:[#allocation2 + $0xf1] sm:$0xff] }
 0x146   : > { %5287 = vmatprep.mubr.f32.mxu0 %v4136_v12 }
 0x148   : > { %4912 = vmatmul.mubr.f32.gmra.mrb[28].mxu1 %v6712_v2  ;;  %v4015_v2 = vld [vmem:[#allocation2 + $0xf9] sm:$0xff] }
 0x149   : > { %5288 = vmatmul.mubr.f32.gmra.mrb[12].mxu0 %v4137_v38  ;;  %4914 = vmatprep.mubr.f32.mxu1 %v6777_v62  ;;  %v4016_v62 = vld [vmem:[#allocation2 + $0x109] sm:$0xff] }
 0x14a   : > { %5290 = vmatprep.mubr.f32.mxu0 %v4138_v54 }
 0x14c   : > { %4915 = vmatmul.mubr.f32.gmra.mrb[30].mxu1 %v6789_v6  ;;  %v4145_v6 = vld [vmem:[#allocation2 + $0x12a] sm:$0xff] }
 0x14d   : > { %5291 = vmatmul.mubr.f32.gmra.mrb[14].mxu0 %v4139_v22  ;;  %4973 = vmatprep.mubr.f32.mxu1 %v4012_v14 }
 0x14e   : > { %5293 = vmatprep.mubr.f32.mxu0 %v4140_v39 }
 0x150   : > { %4974 = vmatmul.mubr.f32.vlgmr.msra.gmra.mrb[16].mxu1 %v4013_v10 }
 0x151   : > { %5294 = vmatmul.mubr.f32.gmra.mrb[16].mxu0 %v4141_v3  ;;  %4976 = vmatprep.mubr.f32.mxu1 %v4014_v25 }
 0x152   : > { %5296 = vmatprep.mubr.f32.mxu0 %v4142_v9 }
 0x154   : > { %4977 = vmatmul.mubr.f32.gmra.mrb[18].mxu1 %v4015_v2 }
 0x155   : > { %5297 = vmatmul.mubr.f32.gmra.mrb[18].mxu0 %v4143_v33  ;;  %4979 = vmatprep.mubr.f32.mxu1 %v4016_v62 }
 0x156   : > { %5299 = vmatprep.mubr.f32.mxu0 %v4144_v0 }
 0x158   : > { %4980 = vmatmul.mubr.f32.gmra.mrb[20].mxu1 %v4017_v5 }
 0x159   : > { %5300 = vmatmul.mubr.f32.gmra.mrb[20].mxu0 %v4145_v6  ;;  %4982 = vmatprep.mubr.f32.mxu1 %v4018_v7 }
 0x15a   : > { %5302 = vmatprep.mubr.f32.mxu0 %v4146_v28 }
 0x15c   : > { %4983 = vmatmul.mubr.f32.gmra.mrb[22].mxu1 %v4019_v35 }
 0x15d   : > { %5303 = vmatmul.mubr.f32.gmra.mrb[22].mxu0 %v4147_v43  ;;  %4985 = vmatprep.mubr.f32.mxu1 %v4020_v18 }
 0x15e   : > { %5305 = vmatprep.mubr.f32.mxu0 %v4148_v50 }
 0x160   : > { %4986 = vmatmul.mubr.f32.gmra.mrb[24].mxu1 %v4021_v57 }
 0x161   : > { %5306 = vmatmul.mubr.f32.gmra.mrb[24].mxu0 %v4149_v52  ;;  %4988 = vmatprep.mubr.f32.mxu1 %v4022_v8 }
 0x162   : > { %5308 = vmatprep.mubr.f32.mxu0 %v4150_v58 }
 0x164   : > { %4989 = vmatmul.mubr.f32.gmra.mrb[26].mxu1 %v4023_v44 }
 0x165   : > { %5309 = vmatmul.mubr.f32.gmra.mrb[26].mxu0 %v4151_v48  ;;  %4991 = vmatprep.mubr.f32.mxu1 %v4024_v34 }
 0x166   : > { %5311 = vmatprep.mubr.f32.mxu0 %v4152_v19 }
 0x168   : > { %4992 = vmatmul.mubr.f32.gmra.mrb[28].mxu1 %v4025_v41 }
 0x169   : > { %5312 = vmatmul.mubr.f32.gmra.mrb[28].mxu0 %v4153_v55  ;;  %4994 = vmatprep.mubr.f32.mxu1 %v6891_v30 }
 0x16a   : > { %5314 = vmatprep.mubr.f32.mxu0 %v4154_v13 }
 0x16c   : > { %4995 = vmatmul.mubr.f32.gmra.mrb[30].mxu1 %v6898_v40 }
 0x16d   : > { %5315 = vmatmul.mubr.f32.gmra.mrb[30].mxu0 %v4155_v31 }
 0x1e3   : > { %v4871_v15 = vpop.f32.mrb[0].mxu1 }
 0x1e4   : > { %v1722_v36 = vpop.f32.mrb[1].mxu1 }
 0x1e7   : > { %v4874_v21 = vpop.f32.mrb[2].mxu1 }
 0x1e8   : > { %v1732_v24 = vpop.f32.mrb[3].mxu1 }
 0x1eb   : > { %v4877_v29 = vpop.f32.mrb[4].mxu1 }
 0x1ec   : > { %v1742_v37 = vpop.f32.mrb[5].mxu1 }
 0x1ef   : > { %v4880_v32 = vpop.f32.mrb[6].mxu1 }
 0x1f0   : > { %v1752_v42 = vpop.f32.mrb[7].mxu1 }
 0x1f3   : > { %v4883_v20 = vpop.f32.mrb[8].mxu1 }
 0x1f4   : > { %v1762_v45 = vpop.f32.mrb[9].mxu1 }
 0x1f7   : > { %v4886_v46 = vpop.f32.mrb[10].mxu1 }
 0x1f8   : > { %v6927_v60 = vpop.f32.mrb[11].mxu1 }
 0x1fb   : > { %v6929_v30 = vpop.f32.mrb[12].mxu1 }
 0x1fc   : > { %v6931_v51 = vpop.f32.mrb[13].mxu1 }
 0x1ff   : > { %v6933_v40 = vpop.f32.mrb[14].mxu1 }
 0x200   : > { %v6935_v56 = vpop.f32.mrb[15].mxu1 }
 0x204   : > { %v5271_v27 = vpop.f32.mrb[0].mxu0 }
 0x205   : > { %v5621_v63 = vadd.f32 %v5271_v27, %v4871_v15  ;;  %v3249_v53 = vpop.f32.mrb[1].mxu0 }
 0x206   : > { %v5622_v11 = vadd.f32 %v3249_v53, %v1722_v36 }
 0x207   : > { %3441 = vst [vmem:[%s5989_s26 + $0x8] sm:$0xff] %v5621_v63  ;;  %v3510_v59 = vmul.f32 %v5621_v63, %v5621_v63 }
 0x208   : > { %3440 = vst [vmem:[%s5989_s26] sm:$0xff] %v5622_v11  ;;  %v3472_v17 = vadd.f32 %v5622_v11, %v5621_v63  ;;  %v3509_v23 = vmul.f32 %v5622_v11, %v5622_v11  ;;  %v5274_v4 = vpop.f32.mrb[2].mxu0 }
 0x209   : > { %v5623_v16 = vadd.f32 %v5274_v4, %v4874_v21  ;;  %v3259_v61 = vpop.f32.mrb[3].mxu0 }
 0x20a   : > { %v3541_v26 = vadd.f32 %v3510_v59, %v3509_v23  ;;  %v5624_v49 = vadd.f32 %v3259_v61, %v1732_v24 }
 0x20b   : > { %3443 = vst [vmem:[%s5989_s26 + $0x18] sm:$0xff] %v5623_v16  ;;  %v3512_v22 = vmul.f32 %v5623_v16, %v5623_v16 }
 0x20c   : > { %3442 = vst [vmem:[%s5989_s26 + $0x10] sm:$0xff] %v5624_v49  ;;  %v3473_v47 = vadd.f32 %v5624_v49, %v3472_v17  ;;  %v3511_v1 = vmul.f32 %v5624_v49, %v5624_v49  ;;  %v5277_v12 = vpop.f32.mrb[4].mxu0 }
 0x20d   : > { %v5625_v38 = vadd.f32 %v5277_v12, %v4877_v29  ;;  %v3269_v54 = vpop.f32.mrb[5].mxu0 }
 0x20e   : > { %v3542_v14 = vadd.f32 %v3541_v26, %v3511_v1  ;;  %v5626_v39 = vadd.f32 %v3269_v54, %v1742_v37  ;;  %v3474_v10 = vadd.f32 %v5623_v16, %v3473_v47 }
 0x20f   : > { %3445 = vst [vmem:[%s5989_s26 + $0x28] sm:$0xff] %v5625_v38  ;;  %v3514_v0 = vmul.f32 %v5625_v38, %v5625_v38 }
 0x210   : > { %3444 = vst [vmem:[%s5989_s26 + $0x20] sm:$0xff] %v5626_v39  ;;  %v3475_v3 = vadd.f32 %v5626_v39, %v3474_v10  ;;  %v3513_v25 = vmul.f32 %v5626_v39, %v5626_v39  ;;  %v3543_v9 = vadd.f32 %v3542_v14, %v3512_v22  ;;  %v5280_v2 = vpop.f32.mrb[6].mxu0 }
 0x211   : > { %v5627_v33 = vadd.f32 %v5280_v2, %v4880_v32  ;;  %v3279_v62 = vpop.f32.mrb[7].mxu0 }
 0x212   : > { %v3544_v5 = vadd.f32 %v3543_v9, %v3513_v25  ;;  %v5628_v6 = vadd.f32 %v3279_v62, %v1752_v42  ;;  %v3476_v7 = vadd.f32 %v5625_v38, %v3475_v3 }
 0x213   : > { %3447 = vst [vmem:[%s5989_s26 + $0x38] sm:$0xff] %v5627_v33  ;;  %v3516_v52 = vmul.f32 %v5627_v33, %v5627_v33 }
 0x214   : > { %3446 = vst [vmem:[%s5989_s26 + $0x30] sm:$0xff] %v5628_v6  ;;  %v3477_v28 = vadd.f32 %v5628_v6, %v3476_v7  ;;  %v3515_v35 = vmul.f32 %v5628_v6, %v5628_v6  ;;  %v3545_v43 = vadd.f32 %v3544_v5, %v3514_v0  ;;  %v5283_v18 = vpop.f32.mrb[8].mxu0 }
 0x215   : > { %v5629_v50 = vadd.f32 %v5283_v18, %v4883_v20  ;;  %v3289_v57 = vpop.f32.mrb[9].mxu0 }
 0x216   : > { %v3546_v8 = vadd.f32 %v3545_v43, %v3515_v35  ;;  %v5630_v58 = vadd.f32 %v3289_v57, %v1762_v45  ;;  %v3478_v44 = vadd.f32 %v5627_v33, %v3477_v28 }
 0x217   : > { %3449 = vst [vmem:[%s5989_s26 + $0x48] sm:$0xff] %v5629_v50  ;;  %v3518_v31 = vmul.f32 %v5629_v50, %v5629_v50 }
 0x218   : > { %3448 = vst [vmem:[%s5989_s26 + $0x40] sm:$0xff] %v5630_v58  ;;  %v3479_v48 = vadd.f32 %v5630_v58, %v3478_v44  ;;  %v3517_v34 = vmul.f32 %v5630_v58, %v5630_v58  ;;  %v3547_v19 = vadd.f32 %v3546_v8, %v3516_v52  ;;  %v5286_v41 = vpop.f32.mrb[10].mxu0 }
 0x219   : > { %v5631_v55 = vadd.f32 %v5286_v41, %v4886_v46  ;;  %v3299_v13 = vpop.f32.mrb[11].mxu0 }
 0x21a   : > { %v3548_v15 = vadd.f32 %v3547_v19, %v3517_v34  ;;  %v5632_v36 = vadd.f32 %v3299_v13, %v6927_v60  ;;  %v3480_v21 = vadd.f32 %v5629_v50, %v3479_v48 }
 0x21b   : > { %3451 = vst [vmem:[%s5989_s26 + $0x58] sm:$0xff] %v5631_v55  ;;  %v3520_v45 = vmul.f32 %v5631_v55, %v5631_v55 }
 0x21c   : > { %3450 = vst [vmem:[%s5989_s26 + $0x50] sm:$0xff] %v5632_v36  ;;  %v3481_v24 = vadd.f32 %v5632_v36, %v3480_v21  ;;  %v3519_v29 = vmul.f32 %v5632_v36, %v5632_v36  ;;  %v3549_v37 = vadd.f32 %v3548_v15, %v3518_v31  ;;  %v5289_v32 = vpop.f32.mrb[12].mxu0 }
 0x21d   : > { %v5633_v42 = vadd.f32 %v5289_v32, %v6929_v30  ;;  %v3309_v20 = vpop.f32.mrb[13].mxu0 }
 0x21e   : > { %v3550_v46 = vadd.f32 %v3549_v37, %v3519_v29  ;;  %v5634_v27 = vadd.f32 %v3309_v20, %v6931_v51  ;;  %v3482_v63 = vadd.f32 %v5631_v55, %v3481_v24 }
 0x21f   : > { %3453 = vst [vmem:[%s5989_s26 + $0x68] sm:$0xff] %v5633_v42  ;;  %v3522_v4 = vmul.f32 %v5633_v42, %v5633_v42 }
 0x220   : > { %3452 = vst [vmem:[%s5989_s26 + $0x60] sm:$0xff] %v5634_v27  ;;  %v3483_v60 = vadd.f32 %v5634_v27, %v3482_v63  ;;  %v3521_v53 = vmul.f32 %v5634_v27, %v5634_v27  ;;  %v3551_v11 = vadd.f32 %v3550_v46, %v3520_v45  ;;  %v5292_v59 = vpop.f32.mrb[14].mxu0 }
 0x221   : > { %v5635_v17 = vadd.f32 %v5292_v59, %v6933_v40  ;;  %v3319_v23 = vpop.f32.mrb[15].mxu0 }
 0x222   : > { %v3552_v16 = vadd.f32 %v3551_v11, %v3521_v53  ;;  %v5636_v30 = vadd.f32 %v3319_v23, %v6935_v56  ;;  %v3484_v61 = vadd.f32 %v5633_v42, %v3483_v60 }
 0x223   : > { %3455 = vst [vmem:[%s5989_s26 + $0x78] sm:$0xff] %v5635_v17  ;;  %v4975_v51 = vpop.f32.mrb[16].mxu1  ;;  %v3524_v22 = vmul.f32 %v5635_v17, %v5635_v17 }
 0x224   : > { %3454 = vst [vmem:[%s5989_s26 + $0x70] sm:$0xff] %v5636_v30  ;;  %v3485_v26 = vadd.f32 %v5636_v30, %v3484_v61  ;;  %v3523_v49 = vmul.f32 %v5636_v30, %v5636_v30  ;;  %v3553_v47 = vadd.f32 %v3552_v16, %v3522_v4  ;;  %v5295_v1 = vpop.f32.mrb[16].mxu0  ;;  %v2107_v12 = vpop.f32.mrb[17].mxu1 }
 0x225   : > { %v5637_v38 = vadd.f32 %v5295_v1, %v4975_v51  ;;  %v3329_v54 = vpop.f32.mrb[17].mxu0 }
 0x226   : > { %v3554_v40 = vadd.f32 %v3553_v47, %v3523_v49  ;;  %v5638_v14 = vadd.f32 %v3329_v54, %v2107_v12  ;;  %v3486_v39 = vadd.f32 %v5635_v17, %v3485_v26 }
 0x227   : > { %3457 = vst [vmem:[%s5989_s26 + $0x88] sm:$0xff] %v5637_v38  ;;  %v4978_v56 = vpop.f32.mrb[18].mxu1  ;;  %v3526_v0 = vmul.f32 %v5637_v38, %v5637_v38 }
 0x228   : > { %3456 = vst [vmem:[%s5989_s26 + $0x80] sm:$0xff] %v5638_v14  ;;  %v3487_v10 = vadd.f32 %v5638_v14, %v3486_v39  ;;  %v3525_v3 = vmul.f32 %v5638_v14, %v5638_v14  ;;  %v3555_v25 = vadd.f32 %v3554_v40, %v3524_v22  ;;  %v5298_v9 = vpop.f32.mrb[18].mxu0  ;;  %v2117_v2 = vpop.f32.mrb[19].mxu1 }
 0x229   : > { %v5639_v33 = vadd.f32 %v5298_v9, %v4978_v56  ;;  %v3339_v62 = vpop.f32.mrb[19].mxu0 }
 0x22a   : > { %v3556_v5 = vadd.f32 %v3555_v25, %v3525_v3  ;;  %v5640_v6 = vadd.f32 %v3339_v62, %v2117_v2  ;;  %v3488_v7 = vadd.f32 %v5637_v38, %v3487_v10 }
 0x22b   : > { %3459 = vst [vmem:[%s5989_s26 + $0x98] sm:$0xff] %v5639_v33  ;;  %v4981_v28 = vpop.f32.mrb[20].mxu1  ;;  %v3528_v58 = vmul.f32 %v5639_v33, %v5639_v33 }
 0x22c   : > { %3458 = vst [vmem:[%s5989_s26 + $0x90] sm:$0xff] %v5640_v6  ;;  %v3489_v35 = vadd.f32 %v5640_v6, %v3488_v7  ;;  %v3527_v43 = vmul.f32 %v5640_v6, %v5640_v6  ;;  %v3557_v18 = vadd.f32 %v3556_v5, %v3526_v0  ;;  %v5301_v50 = vpop.f32.mrb[20].mxu0  ;;  %v2127_v57 = vpop.f32.mrb[21].mxu1 }
 0x22d   : > { %v5641_v52 = vadd.f32 %v5301_v50, %v4981_v28  ;;  %v3349_v8 = vpop.f32.mrb[21].mxu0 }
 0x22e   : > { %v3558_v44 = vadd.f32 %v3557_v18, %v3527_v43  ;;  %v5642_v48 = vadd.f32 %v3349_v8, %v2127_v57  ;;  %v3490_v34 = vadd.f32 %v5639_v33, %v3489_v35 }
 0x22f   : > { %3461 = vst [vmem:[%s5989_s26 + $0xa8] sm:$0xff] %v5641_v52  ;;  %v4984_v19 = vpop.f32.mrb[22].mxu1  ;;  %v3530_v24 = vmul.f32 %v5641_v52, %v5641_v52 }
 0x230   : > { %3460 = vst [vmem:[%s5989_s26 + $0xa0] sm:$0xff] %v5642_v48  ;;  %v3491_v41 = vadd.f32 %v5642_v48, %v3490_v34  ;;  %v3529_v55 = vmul.f32 %v5642_v48, %v5642_v48  ;;  %v3559_v13 = vadd.f32 %v3558_v44, %v3528_v58  ;;  %v5304_v31 = vpop.f32.mrb[22].mxu0  ;;  %v2137_v15 = vpop.f32.mrb[23].mxu1 }
 0x231   : > { %v5643_v36 = vadd.f32 %v5304_v31, %v4984_v19  ;;  %v3359_v21 = vpop.f32.mrb[23].mxu0 }
 0x232   : > { %v3560_v29 = vadd.f32 %v3559_v13, %v3529_v55  ;;  %v5644_v37 = vadd.f32 %v3359_v21, %v2137_v15  ;;  %v3492_v32 = vadd.f32 %v5641_v52, %v3491_v41 }
 0x233   : > { %3463 = vst [vmem:[%s5989_s26 + $0xb8] sm:$0xff] %v5643_v36  ;;  %v4987_v42 = vpop.f32.mrb[24].mxu1  ;;  %v3532_v11 = vmul.f32 %v5643_v36, %v5643_v36 }
 0x234   : > { %3462 = vst [vmem:[%s5989_s26 + $0xb0] sm:$0xff] %v5644_v37  ;;  %v3493_v20 = vadd.f32 %v5644_v37, %v3492_v32  ;;  %v3531_v45 = vmul.f32 %v5644_v37, %v5644_v37  ;;  %v3561_v46 = vadd.f32 %v3560_v29, %v3530_v24  ;;  %v5307_v27 = vpop.f32.mrb[24].mxu0  ;;  %v2147_v63 = vpop.f32.mrb[25].mxu1 }
 0x235   : > { %v5645_v60 = vadd.f32 %v5307_v27, %v4987_v42  ;;  %v3369_v53 = vpop.f32.mrb[25].mxu0 }
 0x236   : > { %v3562_v59 = vadd.f32 %v3561_v46, %v3531_v45  ;;  %v5646_v17 = vadd.f32 %v3369_v53, %v2147_v63  ;;  %v3494_v23 = vadd.f32 %v5643_v36, %v3493_v20 }
 0x237   : > { %3465 = vst [vmem:[%s5989_s26 + $0xc8] sm:$0xff] %v5645_v60  ;;  %v4990_v4 = vpop.f32.mrb[26].mxu1  ;;  %v3534_v1 = vmul.f32 %v5645_v60, %v5645_v60 }
 0x238   : > { %3464 = vst [vmem:[%s5989_s26 + $0xc0] sm:$0xff] %v5646_v17  ;;  %v3495_v16 = vadd.f32 %v5646_v17, %v3494_v23  ;;  %v3533_v30 = vmul.f32 %v5646_v17, %v5646_v17  ;;  %v3563_v61 = vadd.f32 %v3562_v59, %v3532_v11  ;;  %v5310_v51 = vpop.f32.mrb[26].mxu0  ;;  %v2157_v26 = vpop.f32.mrb[27].mxu1 }
 0x239   : > { %v5647_v49 = vadd.f32 %v5310_v51, %v4990_v4  ;;  %v3379_v47 = vpop.f32.mrb[27].mxu0 }
 0x23a   : > { %v3564_v12 = vadd.f32 %v3563_v61, %v3533_v30  ;;  %v5648_v38 = vadd.f32 %v3379_v47, %v2157_v26  ;;  %v3496_v54 = vadd.f32 %v5645_v60, %v3495_v16 }
 0x23b   : > { %3467 = vst [vmem:[%s5989_s26 + $0xd8] sm:$0xff] %v5647_v49  ;;  %v4993_v22 = vpop.f32.mrb[28].mxu1  ;;  %v3536_v9 = vmul.f32 %v5647_v49, %v5647_v49 }
 0x23c   : > { %3466 = vst [vmem:[%s5989_s26 + $0xd0] sm:$0xff] %v5648_v38  ;;  %v3497_v40 = vadd.f32 %v5648_v38, %v3496_v54  ;;  %v3535_v14 = vmul.f32 %v5648_v38, %v5648_v38  ;;  %v3565_v39 = vadd.f32 %v3564_v12, %v3534_v1  ;;  %v5313_v56 = vpop.f32.mrb[28].mxu0  ;;  %v2167_v10 = vpop.f32.mrb[29].mxu1 }
 0x23d   : > { %v5649_v3 = vadd.f32 %v5313_v56, %v4993_v22  ;;  %v3389_v25 = vpop.f32.mrb[29].mxu0 }
 0x23e   : > { %v3566_v2 = vadd.f32 %v3565_v39, %v3535_v14  ;;  %v5650_v33 = vadd.f32 %v3389_v25, %v2167_v10  ;;  %v3498_v62 = vadd.f32 %v5647_v49, %v3497_v40 }
 0x23f   : > { %3469 = vst [vmem:[%s5989_s26 + $0xe8] sm:$0xff] %v5649_v3  ;;  %v4996_v0 = vpop.f32.mrb[30].mxu1  ;;  %v3538_v50 = vmul.f32 %v5649_v3, %v5649_v3 }
 0x240   : > { %3468 = vst [vmem:[%s5989_s26 + $0xe0] sm:$0xff] %v5650_v33  ;;  %v3499_v5 = vadd.f32 %v5650_v33, %v3498_v62  ;;  %v3537_v6 = vmul.f32 %v5650_v33, %v5650_v33  ;;  %v3567_v7 = vadd.f32 %v3566_v2, %v3536_v9  ;;  %v5316_v28 = vpop.f32.mrb[30].mxu0  ;;  %v2177_v35 = vpop.f32.mrb[31].mxu1 }
 0x241   : > { %v5651_v43 = vadd.f32 %v5316_v28, %v4996_v0  ;;  %v3399_v18 = vpop.f32.mrb[31].mxu0 }
 0x242   : > { %v3568_v57 = vadd.f32 %v3567_v7, %v3537_v6  ;;  %v5652_v52 = vadd.f32 %v3399_v18, %v2177_v35  ;;  %v3500_v8 = vadd.f32 %v5649_v3, %v3499_v5 }
 0x243   : > { %3471 = vst [vmem:[%s5989_s26 + $0xf8] sm:$0xff] %v5651_v43  ;;  %v3540_v34 = vmul.f32 %v5651_v43, %v5651_v43 }
 0x244   : > { %3470 = vst [vmem:[%s5989_s26 + $0xf0] sm:$0xff] %v5652_v52  ;;  %v3501_v58 = vadd.f32 %v5652_v52, %v3500_v8  ;;  %v3539_v44 = vmul.f32 %v5652_v52, %v5652_v52  ;;  %v3569_v48 = vadd.f32 %v3568_v57, %v3538_v50 }
 0x246   : > { %v3502_v19 = vadd.f32 %v5651_v43, %v3501_v58  ;;  %v3570_v41 = vadd.f32 %v3569_v48, %v3539_v44 }
 0x248   : > { %v3503_v55 = vrot.slane %v3502_v19, 4  ;;  %v3571_v13 = vadd.f32 %v3570_v41, %v3540_v34 }
 0x24a   : > { %v3504_v31 = vadd.f32 %v3503_v55, %v3502_v19  ;;  %v3572_v15 = vrot.slane %v3571_v13, 4 }
 0x24c   : > { %v3505_v36 = vrot.slane %v3504_v31, 2  ;;  %v3573_v21 = vadd.f32 %v3572_v15, %v3571_v13 }
 0x24e   : > { %v3506_v24 = vadd.f32 %v3505_v36, %v3504_v31  ;;  %v3574_v29 = vrot.slane %v3573_v21, 2 }
 0x250   : > { %v3507_v37 = vrot.slane %v3506_v24, 1  ;;  %v3575_v32 = vadd.f32 %v3574_v29, %v3573_v21 }
 0x252   : > { %v3576_v42 = vrot.slane %v3575_v32, 1  ;;  %v3508_v20 = vadd.f32 %v3507_v37, %v3506_v24 }
 0x254   : > { %v3577_v45 = vadd.f32 %v3576_v42, %v3575_v32 }
 0x256   : > { %v3579_v46 = vsel %vm3578_vm0, %v3508_v20, %v3577_v45 }
 0x257   : > { %3580 = vst [vmem:[%s5994_s29] sm:$0x3] %v3579_v46 }
 0x258 PF: > { %s15_s17 = sadd.s32 1, %s5932_s17   ;;  %s7089_s15 = smov %s5928_s16 }
 0x259   : > { %p12_p5 = scmp.ge.s32.totalorder %s15_s17, 4   ;;  %s7090_s16 = smov %s7092_s2 }
 0x25b   :  { %14 = sbr.rel (!%p12_p5) target bundleno = 2 (0x2), region = 359 }
 0x262   :  { %3633 = vsyncmov [#allocation3] }
 0x265   :  { %s3634_s26 = vpop.sfrf %3633 }
 0x266   :  { %p4158_p6 = scmp.ne.s32.totalorder %s3634_s26, 0 }
 0x268   :  { %3638 = shalt.err (%p4158_p6)  }
 0x269   :  { %3640 = vsyncmov [#allocation3 + $0x1] }
 0x26c   :  { %s3641_s9 = vpop.sfrf %3640 }
 0x26d   :  { %p4159_p7 = scmp.ne.s32.totalorder %s3641_s9, 0 }
 0x26f   :  { %3645 = shalt.err (%p4159_p7)  }
 0x270   :  { %3647 = vsyncmov [#allocation3 + $0x2] }
 0x273   :  { %s3648_s29 = vpop.sfrf %3647 }
 0x274   :  { %p4160_p8 = scmp.ne.s32.totalorder %s3648_s29, 0 }
 0x276   :  { %3652 = shalt.err (%p4160_p8)  }
 0x277   :  { %3654 = vsyncmov [#allocation3 + $0x3] }
 0x27a   :  { %s3655_s10 = vpop.sfrf %3654 }
 0x27b   :  { %p4161_p9 = scmp.ne.s32.totalorder %s3655_s10, 0 }
 0x27d   :  { %3659 = shalt.err (%p4161_p9)  }
 0x27e   :  { %3661 = vsyncmov [#allocation3 + $0x4] }
 0x281   :  { %s3662_s2 = vpop.sfrf %3661 }
 0x282   :  { %p4162_p10 = scmp.ne.s32.totalorder %s3662_s2, 0 }
 0x284   :  { %3666 = shalt.err (%p4162_p10)  }
 0x285   :  { %3668 = vsyncmov [#allocation3 + $0x5] }
 0x288   :  { %s3669_s0 = vpop.sfrf %3668 }
 0x289   :  { %p4163_p11 = scmp.ne.s32.totalorder %s3669_s0, 0 }
 0x28b   :  { %3673 = shalt.err (%p4163_p11)  }

// kernel: double_conv.4
= control target key start
LH: loop header
LB: loop body
LE: loop exit
PB: predicated region body
PF: predicated region fallthrough
CT: control target
= control target key end

     0   :  { %s6154_s15 = smov 0   ;;  %s6156_s16 = smov 0   ;;  %s7433_s0 = inlined_call_operand.vmem [shape: f32[2,16,16,128], index: 0, kind: input, shape index: {}]   ;;  %s7434_s1 = inlined_call_operand.vmem [shape: f32[1152,128], index: 1, kind: input, shape index: {}]   ;;  %s7435_s2 = inlined_call_operand.vmem [shape: f32[2,128], index: 2, kind: input, shape index: {}]   ;;  %s7436_s3 = inlined_call_operand.vmem [shape: f32[2,16,16,128], index: 3, kind: output, shape index: {0}]   ;;  %s7437_s4 = inlined_call_operand.vmem [shape: f32[2,1,2,128], index: 4, kind: output, shape index: {1}]  }
   0x1   :  { %s6158_s17 = smov 0  }
   0x2 LB: > { %s27_s18 = sadd.s32 1, %s6121_s16  ;;  %p4033_p0 = scmp.ge.s32.totalorder %s6125_s17, 1  ;;  %s6125_s17 = sphi %s6158_s17, %s15_s17   ;;  %s6121_s16 = sphi %s6156_s16, %s7496_s16   ;;  %s6117_s15 = sphi %s6154_s15, %s7495_s15  }
   0x3   : > { %p29_p1 = scmp.ge.s32.totalorder %s27_s18, 2  ;;  %p147_p2 = scmp.lt.s32.totalorder %s6125_s17, 3 }
   0x5   : > { %s7498_s18 = smov (%p29_p1, %s27_s18), 0  ;;  %p148_p3 = pnand %p4033_p0, %p147_p2 }
   0x7   : > { %151 = sbr.rel (%p148_p3) target bundleno = 601 (0x259), region = 28 }
   0xe   : > { %p179_p4 = scmp.lt.s32.totalorder %s6117_s15, 1  ;;  %s4037_s19 = sshll.u32 %s6117_s15, 8 }
   0xf   : > { %s6175_s22 = scalar_lea.vmem %s7433_s0, %s4037_s19 }
  0x10   : > { %s7500_s15 = smov (!%p179_p4, %s6117_s15), 1  ;;  %v236_v0 = vld [vmem:[%s6175_s22] sm:$0xff]  ;;  %v238_v1 = vld [vmem:[%s6175_s22 + $0x8] sm:$0xff] }
  0x11   : > { %237 = vst [vmem:[#allocation2 + $0x1] sm:$0xff] %v236_v0  ;;  %239 = vst [vmem:[#allocation2 + $0x9] sm:$0xff] %v238_v1  ;;  %s4356_s23 = sshll.u32 %s7500_s15, 8  ;;  %s4036_s24 = sshll.u32 %s7500_s15, 1 }
  0x12   : > { %s6182_s27 = scalar_lea.vmem %s7436_s3, %s4356_s23  ;;  %s6187_s30 = scalar_lea.vmem %s7437_s4, %s4036_s24 }
  0x13   : > { %247 = vsyncadd [#allocation3], 256  ;;  %v312_v2 = vld [vmem:[%s6175_s22] sm:$0xff]  ;;  %v314_v3 = vld [vmem:[%s6175_s22 + $0x8] sm:$0xff] }
  0x14   : > { %313 = vst [vmem:[#allocation2 + $0x19] sm:$0xff] %v312_v2  ;;  %315 = vst [vmem:[#allocation2 + $0x21] sm:$0xff] %v314_v3  ;;  %v316_v4 = vld [vmem:[%s6175_s22 + $0x10] sm:$0xff]  ;;  %v318_v5 = vld [vmem:[%s6175_s22 + $0x18] sm:$0xff] }
  0x15   : > { %v320_v6 = vld [vmem:[%s6175_s22 + $0x20] sm:$0xff]  ;;  %317 = vst [vmem:[#allocation2 + $0x31] sm:$0xff] %v316_v4  ;;  %319 = vst [vmem:[#allocation2 + $0x39] sm:$0xff] %v318_v5  ;;  %v322_v7 = vld [vmem:[%s6175_s22 + $0x28] sm:$0xff] }
  0x16   : > { %321 = vst [vmem:[#allocation2 + $0x49] sm:$0xff] %v320_v6  ;;  %v324_v8 = vld [vmem:[%s6175_s22 + $0x30] sm:$0xff]  ;;  %v326_v9 = vld [vmem:[%s6175_s22 + $0x38] sm:$0xff]  ;;  %323 = vst [vmem:[#allocation2 + $0x51] sm:$0xff] %v322_v7 }
  0x17   : > { %325 = vst [vmem:[#allocation2 + $0x61] sm:$0xff] %v324_v8  ;;  %327 = vst [vmem:[#allocation2 + $0x69] sm:$0xff] %v326_v9  ;;  %v328_v10 = vld [vmem:[%s6175_s22 + $0x40] sm:$0xff]  ;;  %v330_v11 = vld [vmem:[%s6175_s22 + $0x48] sm:$0xff] }
  0x18   : > { %v332_v12 = vld [vmem:[%s6175_s22 + $0x50] sm:$0xff]  ;;  %329 = vst [vmem:[#allocation2 + $0x79] sm:$0xff] %v328_v10  ;;  %331 = vst [vmem:[#allocation2 + $0x81] sm:$0xff] %v330_v11  ;;  %v334_v13 = vld [vmem:[%s6175_s22 + $0x58] sm:$0xff] }
  0x19   : > { %333 = vst [vmem:[#allocation2 + $0x91] sm:$0xff] %v332_v12  ;;  %v336_v14 = vld [vmem:[%s6175_s22 + $0x60] sm:$0xff]  ;;  %v338_v15 = vld [vmem:[%s6175_s22 + $0x68] sm:$0xff]  ;;  %335 = vst [vmem:[#allocation2 + $0x99] sm:$0xff] %v334_v13 }
  0x1a   : > { %337 = vst [vmem:[#allocation2 + $0xa9] sm:$0xff] %v336_v14  ;;  %339 = vst [vmem:[#allocation2 + $0xb1] sm:$0xff] %v338_v15  ;;  %v340_v16 = vld [vmem:[%s6175_s22 + $0x70] sm:$0xff]  ;;  %v342_v17 = vld [vmem:[%s6175_s22 + $0x78] sm:$0xff] }
  0x1b   : > { %v344_v18 = vld [vmem:[%s6175_s22 + $0x80] sm:$0xff]  ;;  %341 = vst [vmem:[#allocation2 + $0xc1] sm:$0xff] %v340_v16  ;;  %343 = vst [vmem:[#allocation2 + $0xc9] sm:$0xff] %v342_v17  ;;  %v346_v19 = vld [vmem:[%s6175_s22 + $0x88] sm:$0xff] }
  0x1c   : > { %345 = vst [vmem:[#allocation2 + $0xd9] sm:$0xff] %v344_v18  ;;  %v348_v20 = vld [vmem:[%s6175_s22 + $0x90] sm:$0xff]  ;;  %v350_v21 = vld [vmem:[%s6175_s22 + $0x98] sm:$0xff]  ;;  %347 = vst [vmem:[#allocation2 + $0xe1] sm:$0xff] %v346_v19 }
  0x1d   : > { %349 = vst [vmem:[#allocation2 + $0xf1] sm:$0xff] %v348_v20  ;;  %351 = vst [vmem:[#allocation2 + $0xf9] sm:$0xff] %v350_v21  ;;  %v352_v22 = vld [vmem:[%s6175_s22 + $0xa0] sm:$0xff]  ;;  %v354_v23 = vld [vmem:[%s6175_s22 + $0xa8] sm:$0xff] }
  0x1e   : > { %v356_v24 = vld [vmem:[%s6175_s22 + $0xb0] sm:$0xff]  ;;  %353 = vst [vmem:[#allocation2 + $0x109] sm:$0xff] %v352_v22  ;;  %355 = vst [vmem:[#allocation2 + $0x111] sm:$0xff] %v354_v23  ;;  %v358_v25 = vld [vmem:[%s6175_s22 + $0xb8] sm:$0xff] }
  0x1f   : > { %357 = vst [vmem:[#allocation2 + $0x121] sm:$0xff] %v356_v24  ;;  %v360_v26 = vld [vmem:[%s6175_s22 + $0xc0] sm:$0xff]  ;;  %v362_v27 = vld [vmem:[%s6175_s22 + $0xc8] sm:$0xff]  ;;  %359 = vst [vmem:[#allocation2 + $0x129] sm:$0xff] %v358_v25 }
  0x20   : > { %361 = vst [vmem:[#allocation2 + $0x139] sm:$0xff] %v360_v26  ;;  %363 = vst [vmem:[#allocation2 + $0x141] sm:$0xff] %v362_v27  ;;  %v364_v28 = vld [vmem:[%s6175_s22 + $0xd0] sm:$0xff]  ;;  %v366_v29 = vld [vmem:[%s6175_s22 + $0xd8] sm:$0xff] }
  0x21   : > { %v368_v30 = vld [vmem:[%s6175_s22 + $0xe0] sm:$0xff]  ;;  %365 = vst [vmem:[#allocation2 + $0x151] sm:$0xff] %v364_v28  ;;  %367 = vst [vmem:[#allocation2 + $0x159] sm:$0xff] %v366_v29  ;;  %v370_v31 = vld [vmem:[%s6175_s22 + $0xe8] sm:$0xff] }
  0x22   : > { %369 = vst [vmem:[#allocation2 + $0x169] sm:$0xff] %v368_v30  ;;  %v372_v32 = vld [vmem:[%s6175_s22 + $0xf0] sm:$0xff]  ;;  %v374_v33 = vld [vmem:[%s6175_s22 + $0xf8] sm:$0xff]  ;;  %371 = vst [vmem:[#allocation2 + $0x171] sm:$0xff] %v370_v31 }
  0x23   : > { %373 = vst [vmem:[#allocation2 + $0x181] sm:$0xff] %v372_v32  ;;  %375 = vst [vmem:[#allocation2 + $0x189] sm:$0xff] %v374_v33 }
  0x24   : > { %383 = vsyncadd [#allocation3 + $0x1], 4096  ;;  %v4039_v34 = vld [vmem:[%s6175_s22 + $0xf0] sm:$0xff]  ;;  %v4040_v35 = vld [vmem:[%s6175_s22 + $0xf8] sm:$0xff] }
  0x25   : > { %421 = vst [vmem:[#allocation2 + $0x199] sm:$0xff] %v4039_v34  ;;  %423 = vst [vmem:[#allocation2 + $0x1a1] sm:$0xff] %v4040_v35 }
  0x26   : > { %431 = vsyncadd [#allocation3 + $0x2], 256 }
  0x27   : > { %6109 = dma.done.wait [#allocation3], 256 }
  0x28   : > { %6110 = vsyncadd [#allocation3], 4294967040  ;;  %s6127_s5 = smov [#allocation3]  }
  0x29   : > { %s3919_s6 = scalar_lea.sflag %s6127_s5, 1 }
  0x2a   : > { %6111 = dma.done.wait %s3919_s6, 4096 }
  0x2b   : > { %6112 = vsyncadd %s3919_s6, 4294963200  ;;  %s3922_s7 = scalar_lea.sflag %s6127_s5, 2 }
  0x2c   : > { %6113 = dma.done.wait %s3922_s7, 256 }
  0x2d   : > { %6114 = vsyncadd %s3922_s7, 4294967040  ;;  %v6128_v36 = vmov 0.0   ;;  %v1025_v37 = vld [vmem:[%s7434_s1 + $0x80] sm:$0xff]  ;;  %v1026_v38 = vld [vmem:[%s7434_s1 + $0x88] sm:$0xff]  ;;  %vm3768_vm0 = vcmask 1040384  }
  0x2e   : > { %898 = vst [vmem:[#allocation2] sm:$0x1] %v6128_v36  ;;  %899 = vst [vmem:[#allocation2 + $0x18] sm:$0x1] %v6128_v36  ;;  %v2135_v39 = vld [vmem:[%s7434_s1 + $0x200] sm:$0xff]  ;;  %v5509_v40 = vpack.c.bf16 %v1026_v38, %v1025_v37  ;;  %v2136_v41 = vld [vmem:[%s7434_s1 + $0x208] sm:$0xff] }
  0x2f   : > { %900 = vst [vmem:[#allocation2 + $0x30] sm:$0x1] %v6128_v36  ;;  %901 = vst [vmem:[#allocation2 + $0x48] sm:$0x1] %v6128_v36  ;;  %v1027_v42 = vld [vmem:[%s7434_s1 + $0x90] sm:$0xff]  ;;  %v1028_v43 = vld [vmem:[%s7434_s1 + $0x98] sm:$0xff]  ;;  %v6276_v44 = vpack.c.bf16 %v2136_v41, %v2135_v39 }
  0x30   : > { %902 = vst [vmem:[#allocation2 + $0x60] sm:$0x1] %v6128_v36  ;;  %903 = vst [vmem:[#allocation2 + $0x78] sm:$0x1] %v6128_v36  ;;  %v5513_v45 = vpack.c.bf16 %v1028_v43, %v1027_v42  ;;  %v2137_v46 = vld [vmem:[%s7434_s1 + $0x210] sm:$0xff]  ;;  %v2138_v47 = vld [vmem:[%s7434_s1 + $0x218] sm:$0xff]  ;;  %5510 = vmatprep.subr.bf16.mxu1 %v5509_v40 }
  0x31   : > { %904 = vst [vmem:[#allocation2 + $0x90] sm:$0x1] %v6128_v36  ;;  %905 = vst [vmem:[#allocation2 + $0xa8] sm:$0x1] %v6128_v36  ;;  %v1029_v48 = vld [vmem:[%s7434_s1 + $0xa0] sm:$0xff]  ;;  %v6287_v49 = vpack.c.bf16 %v2138_v47, %v2137_v46  ;;  %v1030_v50 = vld [vmem:[%s7434_s1 + $0xa8] sm:$0xff]  ;;  %5638 = vmatprep.subr.bf16.mxu0 %v6276_v44  ;;  %5512 = vmatpush3.bf16.msra.mxu1 %v5509_v40 }
  0x32   : > { %906 = vst [vmem:[#allocation2 + $0xc0] sm:$0x1] %v6128_v36  ;;  %907 = vst [vmem:[#allocation2 + $0xd8] sm:$0x1] %v6128_v36  ;;  %v2139_v51 = vld [vmem:[%s7434_s1 + $0x220] sm:$0xff]  ;;  %v2140_v52 = vld [vmem:[%s7434_s1 + $0x228] sm:$0xff]  ;;  %5640 = vmatpush3.bf16.msra.mxu0 %v6276_v44  ;;  %5514 = vmatprep.subr.bf16.mxu1 %v5513_v45  ;;  %v5517_v53 = vpack.c.bf16 %v1030_v50, %v1029_v48 }
  0x33   : > { %908 = vst [vmem:[#allocation2 + $0xf0] sm:$0x1] %v6128_v36  ;;  %909 = vst [vmem:[#allocation2 + $0x108] sm:$0x1] %v6128_v36  ;;  %5642 = vmatprep.subr.bf16.mxu0 %v6287_v49  ;;  %v6301_v54 = vpack.c.bf16 %v2140_v52, %v2139_v51  ;;  %v1031_v55 = vld [vmem:[%s7434_s1 + $0xb0] sm:$0xff]  ;;  %v1032_v56 = vld [vmem:[%s7434_s1 + $0xb8] sm:$0xff] }
  0x34   : > { %910 = vst [vmem:[#allocation2 + $0x120] sm:$0x1] %v6128_v36  ;;  %911 = vst [vmem:[#allocation2 + $0x138] sm:$0x1] %v6128_v36  ;;  %v2141_v57 = vld [vmem:[%s7434_s1 + $0x230] sm:$0xff]  ;;  %v2142_v58 = vld [vmem:[%s7434_s1 + $0x238] sm:$0xff]  ;;  %v5521_v59 = vpack.c.bf16 %v1032_v56, %v1031_v55 }
  0x35   : > { %912 = vst [vmem:[#allocation2 + $0x150] sm:$0x1] %v6128_v36  ;;  %913 = vst [vmem:[#allocation2 + $0x168] sm:$0x1] %v6128_v36  ;;  %5516 = vmatpush3.bf16.msra.mxu1 %v5513_v45  ;;  %v1033_v60 = vld [vmem:[%s7434_s1 + $0xc0] sm:$0xff]  ;;  %v1034_v61 = vld [vmem:[%s7434_s1 + $0xc8] sm:$0xff]  ;;  %v6323_v62 = vpack.c.bf16 %v2142_v58, %v2141_v57 }
  0x36   : > { %914 = vst [vmem:[#allocation2 + $0x180] sm:$0x1] %v6128_v36  ;;  %916 = vst [vmem:[#allocation2 + $0x11] sm:$0x1] %v6128_v36  ;;  %5644 = vmatpush3.bf16.msra.mxu0 %v6287_v49  ;;  %5518 = vmatprep.subr.bf16.mxu1 %v5517_v53  ;;  %v2143_v63 = vld [vmem:[%s7434_s1 + $0x240] sm:$0xff]  ;;  %v2144_v0 = vld [vmem:[%s7434_s1 + $0x248] sm:$0xff]  ;;  %v5525_v8 = vpack.c.bf16 %v1034_v61, %v1033_v60 }
  0x37   : > { %917 = vst [vmem:[#allocation2 + $0x29] sm:$0x1] %v6128_v36  ;;  %918 = vst [vmem:[#allocation2 + $0x41] sm:$0x1] %v6128_v36  ;;  %5646 = vmatprep.subr.bf16.mxu0 %v6301_v54  ;;  %v708_v1 = vld [vmem:[#allocation2 + $0x1] sm:$0xff]  ;;  %v709_v2 = vld [vmem:[#allocation2 + $0x9] sm:$0xff]  ;;  %v6352_v13 = vpack.c.bf16 %v2144_v0, %v2143_v63 }
  0x38   : > { %919 = vst [vmem:[#allocation2 + $0x59] sm:$0x1] %v6128_v36  ;;  %920 = vst [vmem:[#allocation2 + $0x71] sm:$0x1] %v6128_v36  ;;  %v6334_v3 = vld [vmem:[%s7435_s2] ss:$0 sm:$0xff] }
  0x39   : > { %921 = vst [vmem:[#allocation2 + $0x89] sm:$0x1] %v6128_v36  ;;  %922 = vst [vmem:[#allocation2 + $0xa1] sm:$0x1] %v6128_v36  ;;  %v6339_v4 = vld [vmem:[%s7435_s2 + $0x1] ss:$0 sm:$0xff]  ;;  %5520 = vmatpush3.bf16.msra.mxu1 %v5517_v53  ;;  %v749_v5 = vmul.f32 %v6334_v3, %v708_v1  ;;  %v750_v6 = vmul.f32 %v6334_v3, %v709_v2 }
  0x3a   : > { %923 = vst [vmem:[#allocation2 + $0xb9] sm:$0x1] %v6128_v36  ;;  %924 = vst [vmem:[#allocation2 + $0xd1] sm:$0x1] %v6128_v36  ;;  %v710_v7 = vld [vmem:[#allocation2 + $0x19] sm:$0xff]  ;;  %5648 = vmatpush3.bf16.msra.mxu0 %v6301_v54  ;;  %5522 = vmatprep.subr.bf16.mxu1 %v5521_v59  ;;  %v1035_v9 = vld [vmem:[%s7434_s1 + $0xd0] sm:$0xff] }
  0x3b   : > { %925 = vst [vmem:[#allocation2 + $0xe9] sm:$0x1] %v6128_v36  ;;  %926 = vst [vmem:[#allocation2 + $0x101] sm:$0x1] %v6128_v36  ;;  %v1036_v10 = vld [vmem:[%s7434_s1 + $0xd8] sm:$0xff]  ;;  %v751_v11 = vmul.f32 %v6334_v3, %v710_v7  ;;  %v711_v12 = vld [vmem:[#allocation2 + $0x21] sm:$0xff]  ;;  %5650 = vmatprep.subr.bf16.mxu0 %v6323_v62  ;;  %v790_v14 = vadd.f32 %v6339_v4, %v749_v5  ;;  %v791_v15 = vadd.f32 %v6339_v4, %v750_v6 }
  0x3c   : > { %927 = vst [vmem:[#allocation2 + $0x119] sm:$0x1] %v6128_v36  ;;  %928 = vst [vmem:[#allocation2 + $0x131] sm:$0x1] %v6128_v36  ;;  %v752_v16 = vmul.f32 %v6334_v3, %v711_v12  ;;  %v712_v17 = vld [vmem:[#allocation2 + $0x31] sm:$0xff]  ;;  %v713_v18 = vld [vmem:[#allocation2 + $0x39] sm:$0xff]  ;;  %v6366_v25 = vpack.c.bf16 %v1036_v10, %v1035_v9 }
  0x3d   : > { %929 = vst [vmem:[#allocation2 + $0x149] sm:$0x1] %v6128_v36  ;;  %930 = vst [vmem:[#allocation2 + $0x161] sm:$0x1] %v6128_v36  ;;  %v2145_v19 = vld [vmem:[%s7434_s1 + $0x250] sm:$0xff]  ;;  %v2146_v20 = vld [vmem:[%s7434_s1 + $0x258] sm:$0xff]  ;;  %v792_v21 = vadd.f32 %v6339_v4, %v751_v11  ;;  %v753_v22 = vmul.f32 %v6334_v3, %v712_v17  ;;  %v754_v23 = vmul.f32 %v6334_v3, %v713_v18  ;;  %5524 = vmatpush3.bf16.msra.mxu1 %v5521_v59 }
  0x3e   : > { %931 = vst [vmem:[#allocation2 + $0x179] sm:$0x1] %v6128_v36  ;;  %932 = vst [vmem:[#allocation2 + $0x191] sm:$0x1] %v6128_v36  ;;  %v714_v24 = vld [vmem:[#allocation2 + $0x49] sm:$0xff]  ;;  %v826_v26 = vmax.f32 %v790_v14, 0.0  ;;  %v793_v28 = vadd.f32 %v6339_v4, %v752_v16  ;;  %5652 = vmatpush3.bf16.msra.mxu0 %v6323_v62  ;;  %5526 = vmatprep.subr.bf16.mxu1 %v5525_v8  ;;  %v6376_v37 = vpack.c.bf16 %v2146_v20, %v2145_v19 }
  0x3f   : > { %933 = vst [vmem:[#allocation2 + $0x1a9] sm:$0x1] %v6128_v36  ;;  %7461 = vst [vmem:[#allocation13_spill] sm:$0xff] %v6323_v62  ;;  %v827_v27 = vmax.f32 %v791_v15, 0.0  ;;  %v715_v29 = vld [vmem:[#allocation2 + $0x51] sm:$0xff]  ;;  %v6370_v30 = vmax.f32 %v792_v21, 0.0  ;;  %v794_v31 = vadd.f32 %v6339_v4, %v753_v22  ;;  %v795_v32 = vadd.f32 %v6339_v4, %v754_v23  ;;  %5654 = vmatprep.subr.bf16.mxu0 %v6352_v13 }
  0x40   : > { %7462 = vst [vmem:[#allocation14_spill] sm:$0xff] %v6352_v13  ;;  %v755_v33 = vmul.f32 %v6334_v3, %v714_v24  ;;  %v716_v34 = vld [vmem:[#allocation2 + $0x61] sm:$0xff]  ;;  %v717_v35 = vld [vmem:[#allocation2 + $0x69] sm:$0xff]  ;;  %7463 = vst [vmem:[#allocation15_spill] sm:$0xff] %v6376_v37  ;;  %v6384_v40 = vmax.f32 %v793_v28, 0.0  ;;  %v756_v41 = vmul.f32 %v6334_v3, %v715_v29 }
  0x41   : > { %v1037_v38 = vld [vmem:[%s7434_s1 + $0xe0] sm:$0xff]  ;;  %v1038_v39 = vld [vmem:[%s7434_s1 + $0xe8] sm:$0xff]  ;;  %862 = vst [vmem:[#allocation2 + $0x1] sm:$0xff] %v826_v26  ;;  %863 = vst [vmem:[#allocation2 + $0x9] sm:$0xff] %v827_v27  ;;  %5141 = vmatprep.mubr.f32.mxu0 %v6370_v30  ;;  %v6398_v46 = vmax.f32 %v794_v31, 0.0  ;;  %v6400_v47 = vmax.f32 %v795_v32, 0.0  ;;  %v757_v50 = vmul.f32 %v6334_v3, %v716_v34  ;;  %5528 = vmatpush3.bf16.msra.mxu1 %v5525_v8 }
  0x42   : > { %v718_v42 = vld [vmem:[#allocation2 + $0x79] sm:$0xff]  ;;  %v2148_v45 = vld [vmem:[%s7434_s1 + $0x268] sm:$0xff]  ;;  %937 = vst [vmem:[#allocation2] sm:$0xff] %v6128_v36  ;;  %938 = vst [vmem:[#allocation2 + $0x8] sm:$0xff] %v6128_v36  ;;  %v796_v48 = vadd.f32 %v6339_v4, %v755_v33  ;;  %v797_v52 = vadd.f32 %v6339_v4, %v756_v41  ;;  %v758_v53 = vmul.f32 %v6334_v3, %v717_v35  ;;  %5656 = vmatpush3.bf16.msra.mxu0 %v6352_v13 }
  0x43   : > { %v2147_v43 = vld [vmem:[%s7434_s1 + $0x260] sm:$0xff]  ;;  %864 = vst [vmem:[#allocation2 + $0x19] sm:$0xff] %v6370_v30  ;;  %939 = vst [vmem:[#allocation2 + $0x10] sm:$0x3] %v6128_v36  ;;  %v759_v55 = vmul.f32 %v6334_v3, %v718_v42  ;;  %v720_v56 = vld [vmem:[#allocation2 + $0x91] sm:$0xff]  ;;  %5530 = vmatprep.subr.bf16.mxu1 %v6366_v25  ;;  %v5533_v57 = vpack.c.bf16 %v1038_v39, %v1037_v38  ;;  %v798_v59 = vadd.f32 %v6339_v4, %v757_v50 }
  0x44   : > { %v719_v51 = vld [vmem:[#allocation2 + $0x81] sm:$0xff]  ;;  %865 = vst [vmem:[#allocation2 + $0x21] sm:$0xff] %v6384_v40  ;;  %866 = vst [vmem:[#allocation2 + $0x31] sm:$0xff] %v6398_v46  ;;  %v6412_v58 = vmax.f32 %v796_v48, 0.0  ;;  %v721_v61 = vld [vmem:[#allocation2 + $0x99] sm:$0xff]  ;;  %5658 = vmatprep.subr.bf16.mxu0 %v6376_v37  ;;  %v6417_v63 = vpack.c.bf16 %v2148_v45, %v2147_v43  ;;  %v6425_v2 = vmax.f32 %v797_v52, 0.0  ;;  %v799_v5 = vadd.f32 %v6339_v4, %v758_v53 }
  0x45   : > { %867 = vst [vmem:[#allocation2 + $0x39] sm:$0xff] %v6400_v47  ;;  %v760_v60 = vmul.f32 %v6334_v3, %v719_v51  ;;  %v1039_v0 = vld [vmem:[%s7434_s1 + $0xf0] sm:$0xff]  ;;  %v1040_v1 = vld [vmem:[%s7434_s1 + $0xf8] sm:$0xff]  ;;  %v800_v6 = vadd.f32 %v6339_v4, %v759_v55  ;;  %v6436_v10 = vmax.f32 %v798_v59, 0.0  ;;  %v761_v12 = vmul.f32 %v6334_v3, %v720_v56  ;;  %5532 = vmatpush3.bf16.msra.mxu1 %v6366_v25  ;;  %v724_v19 = vld [vmem:[#allocation2 + $0xc1] sm:$0xff] }
  0x46   : > { %7464 = vst [vmem:[#allocation16_spill] sm:$0xff] %v6417_v63  ;;  %v722_v7 = vld [vmem:[#allocation2 + $0xa9] sm:$0xff]  ;;  %v2150_v9 = vld [vmem:[%s7434_s1 + $0x278] sm:$0xff]  ;;  %868 = vst [vmem:[#allocation2 + $0x49] sm:$0xff] %v6412_v58  ;;  %v762_v14 = vmul.f32 %v6334_v3, %v721_v61  ;;  %v6443_v16 = vmax.f32 %v799_v5, 0.0  ;;  %5660 = vmatpush3.bf16.msra.mxu0 %v6376_v37  ;;  %5534 = vmatprep.subr.bf16.mxu1 %v5533_v57  ;;  %v5537_v21 = vpack.c.bf16 %v1040_v1, %v1039_v0 }
  0x47   : > { %v2149_v8 = vld [vmem:[%s7434_s1 + $0x270] sm:$0xff]  ;;  %v801_v11 = vadd.f32 %v6339_v4, %v760_v60  ;;  %869 = vst [vmem:[#allocation2 + $0x51] sm:$0xff] %v6425_v2  ;;  %v6445_v17 = vmax.f32 %v800_v6, 0.0  ;;  %v763_v18 = vmul.f32 %v6334_v3, %v722_v7  ;;  %v977_v22 = vld [vmem:[%s7434_s1] sm:$0xff]  ;;  %v978_v23 = vld [vmem:[%s7434_s1 + $0x8] sm:$0xff]  ;;  %v802_v25 = vadd.f32 %v6339_v4, %v761_v12  ;;  %5662 = vmatprep.subr.bf16.mxu0 %v6417_v63 }
  0x48   : > { %v723_v15 = vld [vmem:[#allocation2 + $0xb1] sm:$0xff]  ;;  %v725_v20 = vld [vmem:[#allocation2 + $0xc9] sm:$0xff]  ;;  %870 = vst [vmem:[#allocation2 + $0x61] sm:$0xff] %v6436_v10  ;;  %v803_v26 = vadd.f32 %v6339_v4, %v762_v14  ;;  %v6461_v27 = vpack.c.bf16 %v2150_v9, %v2149_v8  ;;  %v2440_v29 = vld [vmem:[%s7434_s1 + $0x280] sm:$0xff]  ;;  %v765_v34 = vmul.f32 %v6334_v3, %v724_v19  ;;  %v5541_v41 = vpack.c.bf16 %v978_v23, %v977_v22 }
  0x49   : > { %v6456_v24 = vmax.f32 %v801_v11, 0.0  ;;  %v993_v28 = vld [vmem:[#allocation2 + $0x1] sm:$0xff]  ;;  %871 = vst [vmem:[#allocation2 + $0x69] sm:$0xff] %v6443_v16  ;;  %872 = vst [vmem:[#allocation2 + $0x79] sm:$0xff] %v6445_v17  ;;  %v804_v32 = vadd.f32 %v6339_v4, %v763_v18  ;;  %v764_v33 = vmul.f32 %v6334_v3, %v723_v15  ;;  %v6475_v35 = vmax.f32 %v802_v25, 0.0  ;;  %5536 = vmatpush3.bf16.msra.mxu1 %v5533_v57  ;;  %v2442_v42 = vld [vmem:[%s7434_s1 + $0x290] sm:$0xff] }
  0x4a   : > { %7465 = vst [vmem:[#allocation17_spill] sm:$0xff] %v6461_v27  ;;  %v2441_v31 = vld [vmem:[%s7434_s1 + $0x288] sm:$0xff]  ;;  %4821 = vmatprep.mubr.f32.mxu1 %v993_v28  ;;  %v6477_v38 = vmax.f32 %v803_v26, 0.0  ;;  %v766_v39 = vmul.f32 %v6334_v3, %v725_v20  ;;  %v806_v48 = vadd.f32 %v6339_v4, %v765_v34  ;;  %v726_v50 = vld [vmem:[#allocation2 + $0xd9] sm:$0xff]  ;;  %5664 = vmatpush3.bf16.msra.mxu0 %v6417_v63  ;;  %v728_v57 = vld [vmem:[#allocation2 + $0xf1] sm:$0xff] }
  0x4b   : > { %873 = vst [vmem:[#allocation2 + $0x81] sm:$0xff] %v6456_v24  ;;  %v6483_v43 = vmax.f32 %v804_v32, 0.0  ;;  %v805_v45 = vadd.f32 %v6339_v4, %v764_v33  ;;  %v727_v51 = vld [vmem:[#allocation2 + $0xe1] sm:$0xff]  ;;  %5538 = vmatprep.subr.bf16.mxu1 %v5537_v21  ;;  %v5669_v52 = vpack.c.bf16 %v2441_v31, %v2440_v29  ;;  %v2443_v53 = vld [vmem:[%s7434_s1 + $0x298] sm:$0xff]  ;;  %874 = vst [vmem:[#allocation2 + $0x91] sm:$0xff] %v6475_v35  ;;  %5666 = vmatprep.subr.bf16.mxu0 %v6461_v27 }
  0x4c   : > { %875 = vst [vmem:[#allocation2 + $0x99] sm:$0xff] %v6477_v38  ;;  %v807_v55 = vadd.f32 %v6339_v4, %v766_v39  ;;  %v767_v56 = vmul.f32 %v6334_v3, %v726_v50  ;;  %v729_v59 = vld [vmem:[#allocation2 + $0xf9] sm:$0xff]  ;;  %v6499_v61 = vmax.f32 %v806_v48, 0.0  ;;  %v768_v0 = vmul.f32 %v6334_v3, %v727_v51  ;;  %v994_v5 = vld [vmem:[#allocation2 + $0x9] sm:$0xff]  ;;  %v731_v19 = vld [vmem:[#allocation2 + $0x111] sm:$0xff] }
  0x4d   : > { %876 = vst [vmem:[#allocation2 + $0xa9] sm:$0xff] %v6483_v43  ;;  %v6497_v60 = vmax.f32 %v805_v45, 0.0  ;;  %v769_v1 = vmul.f32 %v6334_v3, %v728_v57  ;;  %v979_v6 = vld [vmem:[%s7434_s1 + $0x10] sm:$0xff]  ;;  %v980_v7 = vld [vmem:[%s7434_s1 + $0x18] sm:$0xff]  ;;  %v770_v11 = vmul.f32 %v6334_v3, %v729_v59  ;;  %5540 = vmatpush3.bf16.msra.mxu1 %v5537_v21  ;;  %v6515_v12 = vpack.c.bf16 %v2443_v53, %v2442_v42  ;;  %v732_v20 = vld [vmem:[#allocation2 + $0x121] sm:$0xff] }
  0x4e   : > { %v6509_v8 = vmax.f32 %v807_v55, 0.0  ;;  %v6512_v9 = vadd.f32 %v6339_v4, %v767_v56  ;;  %878 = vst [vmem:[#allocation2 + $0xc1] sm:$0xff] %v6499_v61  ;;  %v6520_v14 = vadd.f32 %v6339_v4, %v768_v0  ;;  %v730_v18 = vld [vmem:[#allocation2 + $0x109] sm:$0xff]  ;;  %5668 = vmatpush3.bf16.msra.mxu0 %v6461_v27  ;;  %5542 = vmatprep.subr.bf16.mxu1 %v5541_v41  ;;  %v2444_v21 = vld [vmem:[%s7434_s1 + $0x2a0] sm:$0xff]  ;;  %v3055_v27 = vld [vmem:[%s7434_s1 + $0x398] sm:$0xff] }
  0x4f   : > { %877 = vst [vmem:[#allocation2 + $0xb1] sm:$0xff] %v6497_v60  ;;  %v6523_v15 = vadd.f32 %v6339_v4, %v769_v1  ;;  %v2445_v22 = vld [vmem:[%s7434_s1 + $0x2a8] sm:$0xff]  ;;  %v6535_v25 = vadd.f32 %v6339_v4, %v770_v11  ;;  %v771_v26 = vmul.f32 %v6334_v3, %v730_v18  ;;  %v772_v28 = vmul.f32 %v6334_v3, %v731_v19  ;;  %v981_v42 = vld [vmem:[%s7434_s1 + $0x20] sm:$0xff]  ;;  %v2446_v19 = vld [vmem:[%s7434_s1 + $0x2b0] sm:$0xff] }
  0x50   : > { %879 = vst [vmem:[#allocation2 + $0xc9] sm:$0xff] %v6509_v8  ;;  %v844_v23 = vmax.f32 %v6512_v9, 0.0  ;;  %v733_v29 = vld [vmem:[#allocation2 + $0x129] sm:$0xff]  ;;  %5670 = vmatprep.subr.bf16.mxu0 %v5669_v52  ;;  %v845_v31 = vmax.f32 %v6520_v14, 0.0  ;;  %v773_v33 = vmul.f32 %v6334_v3, %v732_v20  ;;  %4822 = vmatmul.mubr.f32.vlgmr.msra.gmra.mrb[0].mxu1 %v994_v5  ;;  %v5545_v39 = vpack.c.bf16 %v980_v7, %v979_v6  ;;  %v734_v57 = vld [vmem:[#allocation2 + $0x139] sm:$0xff]  ;;  %v736_v6 = vld [vmem:[#allocation2 + $0x151] sm:$0xff] }
  0x51   : > { %v846_v32 = vmax.f32 %v6523_v15, 0.0  ;;  %v774_v34 = vmul.f32 %v6334_v3, %v733_v29  ;;  %v847_v45 = vmax.f32 %v6535_v25, 0.0  ;;  %v6550_v48 = vadd.f32 %v6339_v4, %v771_v26  ;;  %5142 = vmatmul.mubr.f32.vlgmr.msra.gmra.mrb[0].mxu0 %v6384_v40  ;;  %5544 = vmatpush3.bf16.msra.mxu1 %v5541_v41  ;;  %v982_v53 = vld [vmem:[%s7434_s1 + $0x28] sm:$0xff]  ;;  %v737_v7 = vld [vmem:[#allocation2 + $0x159] sm:$0xff] }
  0x52   : > { %880 = vst [vmem:[#allocation2 + $0xd9] sm:$0xff] %v844_v23  ;;  %v6553_v50 = vadd.f32 %v6339_v4, %v772_v28  ;;  %v6556_v51 = vpack.c.bf16 %v2445_v22, %v2444_v21  ;;  %881 = vst [vmem:[#allocation2 + $0xe1] sm:$0xff] %v845_v31  ;;  %v6566_v55 = vadd.f32 %v6339_v4, %v773_v33  ;;  %v735_v41 = vld [vmem:[#allocation2 + $0x141] sm:$0xff]  ;;  %5672 = vmatpush3.bf16.msra.mxu0 %v5669_v52  ;;  %v2447_v20 = vld [vmem:[%s7434_s1 + $0x2b8] sm:$0xff] }
  0x53   : > { %882 = vst [vmem:[#allocation2 + $0xf1] sm:$0xff] %v846_v32  ;;  %v6569_v56 = vadd.f32 %v6339_v4, %v774_v34  ;;  %4824 = vmatprep.mubr.f32.mxu1 %v6370_v30  ;;  %883 = vst [vmem:[#allocation2 + $0xf9] sm:$0xff] %v847_v45  ;;  %v848_v59 = vmax.f32 %v6550_v48, 0.0  ;;  %v775_v1 = vmul.f32 %v6334_v3, %v734_v57  ;;  %5144 = vmatprep.mubr.f32.mxu0 %v6398_v46  ;;  %v983_v22 = vld [vmem:[%s7434_s1 + $0x30] sm:$0xff]  ;;  %v984_v28 = vld [vmem:[%s7434_s1 + $0x38] sm:$0xff] }
  0x54   : > { %v849_v0 = vmax.f32 %v6553_v50, 0.0  ;;  %v776_v5 = vmul.f32 %v6334_v3, %v735_v41  ;;  %5674 = vmatprep.subr.bf16.mxu0 %v6515_v12  ;;  %v850_v52 = vmax.f32 %v6566_v55, 0.0  ;;  %v777_v11 = vmul.f32 %v6334_v3, %v736_v6  ;;  %4825 = vmatmul.mubr.f32.gmra.mrb[2].mxu1 %v6384_v40  ;;  %v738_v34 = vld [vmem:[#allocation2 + $0x169] sm:$0xff]  ;;  %v2754_v9 = vld [vmem:[%s7434_s1 + $0x338] sm:$0xff]  ;;  %v2759_v55 = vld [vmem:[%s7434_s1 + $0x360] sm:$0xff] }
  0x55   : > { %v851_v30 = vmax.f32 %v6569_v56, 0.0  ;;  %v778_v18 = vmul.f32 %v6334_v3, %v737_v7  ;;  %5546 = vmatprep.subr.bf16.mxu1 %v5545_v39  ;;  %v5549_v21 = vpack.c.bf16 %v982_v53, %v981_v42  ;;  %884 = vst [vmem:[#allocation2 + $0x109] sm:$0xff] %v848_v59  ;;  %v6599_v40 = vadd.f32 %v6339_v4, %v775_v1  ;;  %v739_v42 = vld [vmem:[#allocation2 + $0x171] sm:$0xff]  ;;  %v2449_v7 = vld [vmem:[%s7434_s1 + $0x2c8] sm:$0xff]  ;;  %v6844_v56 = vld [vmem:[#allocation2 + $0x9a] sm:$0xff] }
  0x56   : > { %885 = vst [vmem:[#allocation2 + $0x111] sm:$0xff] %v849_v0  ;;  %v6602_v26 = vadd.f32 %v6339_v4, %v776_v5  ;;  %5145 = vmatmul.mubr.f32.gmra.mrb[2].mxu0 %v6400_v47  ;;  %4827 = vmatprep.mubr.f32.mxu1 %v6398_v46  ;;  %886 = vst [vmem:[#allocation2 + $0x121] sm:$0xff] %v850_v52  ;;  %v6614_v29 = vadd.f32 %v6339_v4, %v777_v11  ;;  %v6791_v14 = vld [vmem:[#allocation2 + $0x62] sm:$0xff]  ;;  %v6807_v25 = vld [vmem:[#allocation2 + $0x6a] sm:$0xff] }
  0x57   : > { %887 = vst [vmem:[#allocation2 + $0x129] sm:$0xff] %v851_v30  ;;  %v6617_v33 = vadd.f32 %v6339_v4, %v778_v18  ;;  %5676 = vmatpush3.bf16.msra.mxu0 %v6515_v12  ;;  %5147 = vmatprep.mubr.f32.mxu0 %v6412_v58  ;;  %v852_v46 = vmax.f32 %v6599_v40, 0.0  ;;  %v779_v57 = vmul.f32 %v6334_v3, %v738_v34  ;;  %v2448_v12 = vld [vmem:[%s7434_s1 + $0x2c0] sm:$0xff]  ;;  %v2451_v34 = vld [vmem:[%s7434_s1 + $0x2d8] sm:$0xff]  ;;  %v2756_v15 = vld [vmem:[%s7434_s1 + $0x348] sm:$0xff] }
  0x58   : > { %v853_v53 = vmax.f32 %v6602_v26, 0.0  ;;  %v780_v41 = vmul.f32 %v6334_v3, %v739_v42  ;;  %5678 = vmatprep.subr.bf16.mxu0 %v6556_v51  ;;  %5548 = vmatpush3.bf16.msra.mxu1 %v5545_v39  ;;  %v5681_v1 = vpack.c.bf16 %v2447_v20, %v2446_v19  ;;  %v854_v5 = vmax.f32 %v6614_v29, 0.0  ;;  %v985_v18 = vld [vmem:[%s7434_s1 + $0x40] sm:$0xff]  ;;  %v986_v19 = vld [vmem:[%s7434_s1 + $0x48] sm:$0xff]  ;;  %v2758_v48 = vld [vmem:[%s7434_s1 + $0x358] sm:$0xff] }
  0x59   : > { %v855_v6 = vmax.f32 %v6617_v33, 0.0  ;;  %4828 = vmatmul.mubr.f32.gmra.mrb[4].mxu1 %v6400_v47  ;;  %5550 = vmatprep.subr.bf16.mxu1 %v5549_v21  ;;  %v5553_v11 = vpack.c.bf16 %v984_v28, %v983_v22  ;;  %888 = vst [vmem:[#allocation2 + $0x139] sm:$0xff] %v852_v46  ;;  %v6640_v39 = vadd.f32 %v6339_v4, %v779_v57  ;;  %v2450_v28 = vld [vmem:[%s7434_s1 + $0x2d0] sm:$0xff]  ;;  %v2453_v57 = vld [vmem:[%s7434_s1 + $0x2e8] sm:$0xff]  ;;  %v2762_v40 = vld [vmem:[%s7434_s1 + $0x378] sm:$0xff] }
  0x5a   : > { %889 = vst [vmem:[#allocation2 + $0x141] sm:$0xff] %v853_v53  ;;  %v6643_v47 = vadd.f32 %v6339_v4, %v780_v41  ;;  %5148 = vmatmul.mubr.f32.gmra.mrb[4].mxu0 %v6425_v2  ;;  %4830 = vmatprep.mubr.f32.mxu1 %v6412_v58  ;;  %890 = vst [vmem:[#allocation2 + $0x151] sm:$0xff] %v854_v5  ;;  %v5685_v22 = vpack.c.bf16 %v2449_v7, %v2448_v12  ;;  %v2455_v7 = vld [vmem:[%s7434_s1 + $0x2f8] sm:$0xff]  ;;  %v6862_v26 = vld [vmem:[#allocation2 + $0xc2] sm:$0xff] }
  0x5b   : > { %891 = vst [vmem:[#allocation2 + $0x159] sm:$0xff] %v855_v6  ;;  %5680 = vmatpush3.bf16.msra.mxu0 %v6556_v51  ;;  %5150 = vmatprep.mubr.f32.mxu0 %v6436_v10  ;;  %v856_v58 = vmax.f32 %v6640_v39, 0.0  ;;  %v5557_v51 = vpack.c.bf16 %v986_v19, %v985_v18  ;;  %v5689_v42 = vpack.c.bf16 %v2451_v34, %v2450_v28  ;;  %v740_v18 = vld [vmem:[#allocation2 + $0x181] sm:$0xff]  ;;  %v991_v19 = vld [vmem:[%s7434_s1 + $0x70] sm:$0xff]  ;;  %v1526_v39 = vld [vmem:[%s7434_s1 + $0x118] sm:$0xff] }
  0x5c   : > { %v857_v20 = vmax.f32 %v6643_v47, 0.0  ;;  %5682 = vmatprep.subr.bf16.mxu0 %v5681_v1  ;;  %5552 = vmatpush3.bf16.msra.mxu1 %v5549_v21  ;;  %v988_v21 = vld [vmem:[%s7434_s1 + $0x58] sm:$0xff]  ;;  %v781_v28 = vmul.f32 %v6334_v3, %v740_v18  ;;  %v3053_v29 = vld [vmem:[%s7434_s1 + $0x388] sm:$0xff] }
  0x5d   : > { %4831 = vmatmul.mubr.f32.gmra.mrb[6].mxu1 %v6425_v2  ;;  %5554 = vmatprep.subr.bf16.mxu1 %v5553_v11  ;;  %892 = vst [vmem:[#allocation2 + $0x169] sm:$0xff] %v856_v58  ;;  %v987_v2 = vld [vmem:[%s7434_s1 + $0x50] sm:$0xff]  ;;  %v6878_v33 = vld [vmem:[#allocation2 + $0xda] sm:$0xff]  ;;  %v3061_v37 = vld [vmem:[%s7434_s1 + $0x3c8] sm:$0xff] }
  0x5e   : > { %893 = vst [vmem:[#allocation2 + $0x171] sm:$0xff] %v857_v20  ;;  %5151 = vmatmul.mubr.f32.gmra.mrb[6].mxu0 %v6443_v16  ;;  %4833 = vmatprep.mubr.f32.mxu1 %v6436_v10  ;;  %v2452_v10 = vld [vmem:[%s7434_s1 + $0x2e0] sm:$0xff]  ;;  %v5561_v41 = vpack.c.bf16 %v988_v21, %v987_v2  ;;  %v2748_v21 = vld [vmem:[%s7434_s1 + $0x308] sm:$0xff]  ;;  %v6827_v50 = vld [vmem:[#allocation2 + $0x92] sm:$0xff] }
  0x5f   : > { %5684 = vmatpush3.bf16.msra.mxu0 %v5681_v1  ;;  %5153 = vmatprep.mubr.f32.mxu0 %v6445_v17  ;;  %v989_v1 = vld [vmem:[%s7434_s1 + $0x60] sm:$0xff]  ;;  %v5693_v12 = vpack.c.bf16 %v2453_v57, %v2452_v10  ;;  %v1524_v57 = vld [vmem:[%s7434_s1 + $0x108] sm:$0xff]  ;;  %v6897_v47 = vld [vmem:[#allocation2 + $0xf2] sm:$0xff] }
  0x60   : > { %5686 = vmatprep.subr.bf16.mxu0 %v5685_v22  ;;  %5556 = vmatpush3.bf16.msra.mxu1 %v5553_v11  ;;  %v2747_v2 = vld [vmem:[%s7434_s1 + $0x300] sm:$0xff]  ;;  %v3059_v63 = vld [vmem:[%s7434_s1 + $0x3b8] sm:$0xff]  ;;  %v7074_v13 = vld [vmem:[#allocation2 + $0x110] sm:$0xff] }
  0x61   : > { %4834 = vmatmul.mubr.f32.gmra.mrb[8].mxu1 %v6443_v16  ;;  %5558 = vmatprep.subr.bf16.mxu1 %v5557_v51  ;;  %v990_v16 = vld [vmem:[%s7434_s1 + $0x68] sm:$0xff] }
  0x62   : > { %5154 = vmatmul.mubr.f32.gmra.mrb[8].mxu0 %v6456_v24  ;;  %4836 = vmatprep.mubr.f32.mxu1 %v6445_v17  ;;  %v2454_v17 = vld [vmem:[%s7434_s1 + $0x2f0] sm:$0xff]  ;;  %v5565_v11 = vpack.c.bf16 %v990_v16, %v989_v1  ;;  %v6739_v16 = vld [vmem:[#allocation2 + $0x1a] sm:$0xff] }
  0x63   : > { %5688 = vmatpush3.bf16.msra.mxu0 %v5685_v22  ;;  %5156 = vmatprep.mubr.f32.mxu0 %v6475_v35  ;;  %v741_v22 = vld [vmem:[#allocation2 + $0x189] sm:$0xff] }
  0x64   : > { %5690 = vmatprep.subr.bf16.mxu0 %v5689_v42  ;;  %5560 = vmatpush3.bf16.msra.mxu1 %v5557_v51  ;;  %v782_v34 = vmul.f32 %v6334_v3, %v741_v22  ;;  %v5697_v51 = vpack.c.bf16 %v2455_v7, %v2454_v17  ;;  %v5701_v17 = vpack.c.bf16 %v2748_v21, %v2747_v2  ;;  %v743_v2 = vld [vmem:[#allocation2 + $0x1a1] sm:$0xff]  ;;  %v1492_v62 = vld [vmem:[#allocation2 + $0xa] sm:$0xff] }
  0x65   : > { %4837 = vmatmul.mubr.f32.gmra.mrb[10].mxu1 %v6456_v24  ;;  %5562 = vmatprep.subr.bf16.mxu1 %v5561_v41  ;;  %v992_v24 = vld [vmem:[%s7434_s1 + $0x78] sm:$0xff]  ;;  %v784_v21 = vmul.f32 %v6334_v3, %v743_v2 }
  0x66   : > { %5157 = vmatmul.mubr.f32.gmra.mrb[10].mxu0 %v6477_v38  ;;  %4839 = vmatprep.mubr.f32.mxu1 %v6475_v35  ;;  %v6716_v35 = vadd.f32 %v6339_v4, %v781_v28  ;;  %v6726_v10 = vadd.f32 %v6339_v4, %v782_v34  ;;  %v2753_v28 = vld [vmem:[%s7434_s1 + $0x330] sm:$0xff]  ;;  %v742_v34 = vld [vmem:[#allocation2 + $0x199] sm:$0xff] }
  0x67   : > { %5692 = vmatpush3.bf16.msra.mxu0 %v5689_v42  ;;  %5159 = vmatprep.mubr.f32.mxu0 %v6483_v43  ;;  %v5569_v42 = vpack.c.bf16 %v992_v24, %v991_v19  ;;  %v2751_v19 = vld [vmem:[%s7434_s1 + $0x320] sm:$0xff]  ;;  %v6931_v2 = vld [vmem:[#allocation2 + $0x112] sm:$0xff] }
  0x68   : > { %5694 = vmatprep.subr.bf16.mxu0 %v5693_v12  ;;  %5564 = vmatpush3.bf16.msra.mxu1 %v5561_v41  ;;  %7466 = vst [vmem:[#allocation18_spill] sm:$0xff] %v6716_v35  ;;  %7467 = vst [vmem:[#allocation19_spill] sm:$0xff] %v6726_v10  ;;  %v7439_v41 = vmax.f32 %v6716_v35, 0.0  ;;  %v7438_v1 = vmax.f32 %v6726_v10, 0.0  ;;  %v6773_v24 = vld [vmem:[#allocation2 + $0x3a] sm:$0xff] }
  0x69   : > { %4840 = vmatmul.mubr.f32.gmra.mrb[12].mxu1 %v6477_v38  ;;  %5566 = vmatprep.subr.bf16.mxu1 %v5565_v11  ;;  %v1523_v38 = vld [vmem:[%s7434_s1 + $0x100] sm:$0xff] }
  0x6a   : > { %5160 = vmatmul.mubr.f32.gmra.mrb[12].mxu0 %v6497_v60  ;;  %4842 = vmatprep.mubr.f32.mxu1 %v6483_v43  ;;  %894 = vst [vmem:[#allocation2 + $0x181] sm:$0xff] %v7439_v41  ;;  %v2749_v43 = vld [vmem:[%s7434_s1 + $0x310] sm:$0xff]  ;;  %v6750_v7 = vpack.c.bf16 %v1524_v57, %v1523_v38  ;;  %895 = vst [vmem:[#allocation2 + $0x189] sm:$0xff] %v7438_v1  ;;  %v825_v57 = vadd.f32 %v6339_v4, %v784_v21  ;;  %v6933_v21 = vld [vmem:[#allocation2 + $0x48] sm:$0xff] }
  0x6b   : > { %5696 = vmatpush3.bf16.msra.mxu0 %v5693_v12  ;;  %5162 = vmatprep.mubr.f32.mxu0 %v6499_v61  ;;  %v2750_v12 = vld [vmem:[%s7434_s1 + $0x318] sm:$0xff]  ;;  %v7016_v1 = vld [vmem:[#allocation2 + $0xb0] sm:$0xff]  ;;  %v7018_v41 = vld [vmem:[#allocation2 + $0xc0] sm:$0xff] }
  0x6c   : > { %5698 = vmatprep.subr.bf16.mxu0 %v5697_v51  ;;  %5568 = vmatpush3.bf16.msra.mxu1 %v5565_v11  ;;  %v6759_v11 = vld [vmem:[#allocation2 + $0x32] sm:$0xff]  ;;  %v5705_v18 = vpack.c.bf16 %v2750_v12, %v2749_v43  ;;  %7474 = vst [vmem:[#allocation26_spill] sm:$0xff] %v7016_v1  ;;  %7475 = vst [vmem:[#allocation27_spill] sm:$0xff] %v7018_v41  ;;  %v7045_v10 = vld [vmem:[#allocation2 + $0xe0] sm:$0xff] }
  0x6d   : > { %4843 = vmatmul.mubr.f32.gmra.mrb[14].mxu1 %v6497_v60  ;;  %5570 = vmatprep.subr.bf16.mxu1 %v5569_v42  ;;  %v6757_v60 = vld [vmem:[#allocation2 + $0x22] sm:$0xff]  ;;  %v2761_v12 = vld [vmem:[%s7434_s1 + $0x370] sm:$0xff] }
  0x6e   : > { %5163 = vmatmul.mubr.f32.gmra.mrb[14].mxu0 %v6509_v8  ;;  %4845 = vmatprep.mubr.f32.mxu1 %v6499_v61  ;;  %v2752_v61 = vld [vmem:[%s7434_s1 + $0x328] sm:$0xff]  ;;  %v3060_v35 = vld [vmem:[%s7434_s1 + $0x3c0] sm:$0xff] }
  0x6f   : > { %5700 = vmatpush3.bf16.msra.mxu0 %v5697_v51  ;;  %5221 = vmatprep.mubr.f32.mxu0 %v6739_v16  ;;  %v5709_v22 = vpack.c.bf16 %v2752_v61, %v2751_v19  ;;  %v2755_v51 = vld [vmem:[%s7434_s1 + $0x340] sm:$0xff]  ;;  %v1525_v19 = vld [vmem:[%s7434_s1 + $0x110] sm:$0xff]  ;;  %v6895_v61 = vld [vmem:[#allocation2 + $0x18] sm:$0xff] }
  0x70   : > { %5702 = vmatprep.subr.bf16.mxu0 %v5701_v17  ;;  %5572 = vmatpush3.bf16.msra.mxu1 %v5569_v42  ;;  %v6810_v42 = vld [vmem:[#allocation2 + $0x7a] sm:$0xff]  ;;  %v5717_v38 = vpack.c.bf16 %v2756_v15, %v2755_v51 }
  0x71   : > { %4846 = vmatmul.mubr.f32.gmra.mrb[16].mxu1 %v6509_v8  ;;  %5574 = vmatprep.subr.bf16.mxu1 %v6750_v7  ;;  %v6775_v8 = vld [vmem:[#allocation2 + $0x4a] sm:$0xff]  ;;  %v1530_v15 = vld [vmem:[%s7434_s1 + $0x138] sm:$0xff] }
  0x72   : > { %5222 = vmatmul.mubr.f32.vlgmr.msra.gmra.mrb[0].mxu0 %v6757_v60  ;;  %4848 = vmatprep.mubr.f32.mxu1 %v844_v23  ;;  %v6789_v23 = vld [vmem:[#allocation2 + $0x52] sm:$0xff] }
  0x73   : > { %5704 = vmatpush3.bf16.msra.mxu0 %v5701_v17  ;;  %5224 = vmatprep.mubr.f32.mxu0 %v6759_v11  ;;  %v861_v17 = vmax.f32 %v825_v57, 0.0  ;;  %v1531_v57 = vld [vmem:[%s7434_s1 + $0x140] sm:$0xff] }
  0x74   : > { %5706 = vmatprep.subr.bf16.mxu0 %v5705_v18 }
  0x75   : > { %4849 = vmatmul.mubr.f32.gmra.mrb[18].mxu1 %v845_v31  ;;  %v5713_v31 = vpack.c.bf16 %v2754_v9, %v2753_v28  ;;  %897 = vst [vmem:[#allocation2 + $0x1a1] sm:$0xff] %v861_v17  ;;  %v1528_v28 = vld [vmem:[%s7434_s1 + $0x128] sm:$0xff]  ;;  %v6909_v9 = vld [vmem:[#allocation2 + $0x20] sm:$0xff] }
  0x76   : > { %5225 = vmatmul.mubr.f32.gmra.mrb[2].mxu0 %v6773_v24  ;;  %4851 = vmatprep.mubr.f32.mxu1 %v846_v32  ;;  %v783_v32 = vmul.f32 %v6334_v3, %v742_v34  ;;  %v2757_v3 = vld [vmem:[%s7434_s1 + $0x350] sm:$0xff]  ;;  %4155 = vst [vmem:[#allocation2 + $0x1a8] sm:$0x3] %v6128_v36  ;;  %v6951_v17 = vld [vmem:[#allocation2 + $0x60] sm:$0xff] }
  0x77   : > { %5227 = vmatprep.mubr.f32.mxu0 %v6775_v8  ;;  %5708 = vmatpush3.bf16.msra.mxu0 %v5705_v18  ;;  %v3052_v18 = vld [vmem:[%s7434_s1 + $0x380] sm:$0xff]  ;;  %v6917_v34 = vld [vmem:[#allocation2 + $0x10a] sm:$0xff] }
  0x78   : > { %5710 = vmatprep.subr.bf16.mxu0 %v5709_v22 }
  0x79   : > { %4852 = vmatmul.mubr.f32.gmra.mrb[20].mxu1 %v847_v45  ;;  %v824_v45 = vadd.f32 %v6339_v4, %v783_v32  ;;  %v6825_v4 = vld [vmem:[#allocation2 + $0x82] sm:$0xff]  ;;  %v6928_v32 = vld [vmem:[#allocation2 + $0x38] sm:$0xff] }
  0x7a   : > { %5228 = vmatmul.mubr.f32.gmra.mrb[4].mxu0 %v6789_v23  ;;  %4854 = vmatprep.mubr.f32.mxu1 %v848_v59 }
  0x7b   : > { %5230 = vmatprep.mubr.f32.mxu0 %v6791_v14  ;;  %5712 = vmatpush3.bf16.msra.mxu0 %v5709_v22  ;;  %v860_v59 = vmax.f32 %v824_v45, 0.0  ;;  %v1527_v22 = vld [vmem:[%s7434_s1 + $0x120] sm:$0xff] }
  0x7c   : > { %5714 = vmatprep.subr.bf16.mxu0 %v5713_v31  ;;  %v5581_v51 = vpack.c.bf16 %v1528_v28, %v1527_v22  ;;  %v6935_v45 = vld [vmem:[#allocation2 + $0x122] sm:$0xff]  ;;  %v6985_v22 = vld [vmem:[#allocation2 + $0x15a] sm:$0xff]  ;;  %v6987_v28 = vld [vmem:[#allocation2 + $0x90] sm:$0xff] }
  0x7d   : > { %4855 = vmatmul.mubr.f32.gmra.mrb[22].mxu1 %v849_v0  ;;  %896 = vst [vmem:[#allocation2 + $0x199] sm:$0xff] %v860_v59  ;;  %v5721_v0 = vpack.c.bf16 %v2758_v48, %v2757_v3  ;;  %v1532_v3 = vld [vmem:[%s7434_s1 + $0x148] sm:$0xff]  ;;  %v6946_v48 = vld [vmem:[#allocation2 + $0x50] sm:$0xff]  ;;  %7471 = vst [vmem:[#allocation23_spill] sm:$0xff] %v6987_v28 }
  0x7e   : > { %5231 = vmatmul.mubr.f32.gmra.mrb[6].mxu0 %v6807_v25  ;;  %4857 = vmatprep.mubr.f32.mxu1 %v850_v52  ;;  %4153 = vst [vmem:[#allocation2 + $0x198] sm:$0xff] %v6128_v36  ;;  %v2760_v52 = vld [vmem:[%s7434_s1 + $0x368] sm:$0xff]  ;;  %4154 = vst [vmem:[#allocation2 + $0x1a0] sm:$0xff] %v6128_v36 }
  0x7f   : > { %5233 = vmatprep.mubr.f32.mxu0 %v6810_v42  ;;  %5716 = vmatpush3.bf16.msra.mxu0 %v5713_v31  ;;  %v5725_v43 = vpack.c.bf16 %v2760_v52, %v2759_v55  ;;  %v6913_v31 = vld [vmem:[#allocation2 + $0xfa] sm:$0xff]  ;;  %v6949_v59 = vld [vmem:[#allocation2 + $0x12a] sm:$0xff]  ;;  %v5589_v55 = vpack.c.bf16 %v1532_v3, %v1531_v57  ;;  %v7003_v3 = vld [vmem:[#allocation2 + $0x172] sm:$0xff] }
  0x80   : > { %5718 = vmatprep.subr.bf16.mxu0 %v5717_v38  ;;  %v1533_v52 = vld [vmem:[%s7434_s1 + $0x150] sm:$0xff]  ;;  %v7000_v57 = vld [vmem:[#allocation2 + $0x98] sm:$0xff] }
  0x81   : > { %4858 = vmatmul.mubr.f32.gmra.mrb[24].mxu1 %v851_v30  ;;  %v6846_v30 = vld [vmem:[#allocation2 + $0xaa] sm:$0xff]  ;;  %7472 = vst [vmem:[#allocation24_spill] sm:$0xff] %v7000_v57 }
  0x82   : > { %5234 = vmatmul.mubr.f32.gmra.mrb[8].mxu0 %v6825_v4  ;;  %4860 = vmatprep.mubr.f32.mxu1 %v852_v46  ;;  %v6860_v46 = vld [vmem:[#allocation2 + $0xb2] sm:$0xff] }
  0x83   : > { %5236 = vmatprep.mubr.f32.mxu0 %v6827_v50  ;;  %5720 = vmatpush3.bf16.msra.mxu0 %v5717_v38 }
  0x84   : > { %5722 = vmatprep.subr.bf16.mxu0 %v5721_v0 }
  0x85   : > { %4861 = vmatmul.mubr.f32.gmra.mrb[26].mxu1 %v853_v53  ;;  %v5729_v53 = vpack.c.bf16 %v2762_v40, %v2761_v12  ;;  %v6964_v12 = vld [vmem:[#allocation2 + $0x68] sm:$0xff] }
  0x86   : > { %5237 = vmatmul.mubr.f32.gmra.mrb[10].mxu0 %v6844_v56  ;;  %4863 = vmatprep.mubr.f32.mxu1 %v854_v5  ;;  %v6876_v5 = vld [vmem:[#allocation2 + $0xca] sm:$0xff]  ;;  %7468 = vst [vmem:[#allocation20_spill] sm:$0xff] %v6964_v12  ;;  %v6967_v40 = vld [vmem:[#allocation2 + $0x142] sm:$0xff] }
  0x87   : > { %5239 = vmatprep.mubr.f32.mxu0 %v6846_v30  ;;  %5724 = vmatpush3.bf16.msra.mxu0 %v5721_v0  ;;  %v6953_v0 = vld [vmem:[#allocation2 + $0x13a] sm:$0xff] }
  0x88   : > { %5726 = vmatprep.subr.bf16.mxu0 %v5725_v43 }
  0x89   : > { %4864 = vmatmul.mubr.f32.gmra.mrb[28].mxu1 %v855_v6  ;;  %v6880_v6 = vpack.c.bf16 %v3053_v29, %v3052_v18  ;;  %v6971_v18 = vld [vmem:[#allocation2 + $0x152] sm:$0xff] }
  0x8a   : > { %5240 = vmatmul.mubr.f32.gmra.mrb[12].mxu0 %v6860_v46  ;;  %4866 = vmatprep.mubr.f32.mxu1 %v856_v58  ;;  %v6893_v58 = vld [vmem:[#allocation2 + $0xe2] sm:$0xff] }
  0x8b   : > { %5242 = vmatprep.mubr.f32.mxu0 %v6862_v26  ;;  %5728 = vmatpush3.bf16.msra.mxu0 %v5725_v43  ;;  %v1534_v43 = vld [vmem:[%s7434_s1 + $0x158] sm:$0xff] }
  0x8c   : > { %5730 = vmatprep.subr.bf16.mxu0 %v5729_v53  ;;  %v5593_v29 = vpack.c.bf16 %v1534_v43, %v1533_v52  ;;  %v4250_v52 = vld [vmem:[#allocation2 + $0x182] sm:$0xff] }
  0x8d   : > { %4867 = vmatmul.mubr.f32.gmra.mrb[30].mxu1 %v857_v20  ;;  %v5577_v20 = vpack.c.bf16 %v1526_v39, %v1525_v19  ;;  %v1535_v19 = vld [vmem:[%s7434_s1 + $0x160] sm:$0xff]  ;;  %v1536_v39 = vld [vmem:[%s7434_s1 + $0x168] sm:$0xff] }
  0x8e   : > { %5243 = vmatmul.mubr.f32.gmra.mrb[14].mxu0 %v6876_v5  ;;  %4901 = vmatprep.mubr.f32.mxu1 %v6128_v36 }
  0x8f   : > { %5245 = vmatprep.mubr.f32.mxu0 %v6878_v33  ;;  %5732 = vmatpush3.bf16.msra.mxu0 %v5729_v53  ;;  %v6969_v53 = vld [vmem:[#allocation2 + $0x78] sm:$0xff] }
  0x90   : > { %5734 = vmatprep.subr.bf16.mxu0 %v6880_v6  ;;  %7469 = vst [vmem:[#allocation21_spill] sm:$0xff] %v6969_v53 }
  0x91   : > { %4902 = vmatmul.mubr.f32.vlgmr.msra.gmra.mrb[0].mxu1 %v6128_v36  ;;  %v6915_v36 = vld [vmem:[#allocation2 + $0x30] sm:$0xff] }
  0x92   : > { %5246 = vmatmul.mubr.f32.gmra.mrb[16].mxu0 %v6893_v58  ;;  %5576 = vmatpush3.bf16.msra.mxu1 %v6750_v7  ;;  %v1529_v7 = vld [vmem:[%s7434_s1 + $0x130] sm:$0xff] }
  0x93   : > { %4904 = vmatprep.mubr.f32.mxu1 %v6895_v61  ;;  %5248 = vmatprep.mubr.f32.mxu0 %v6897_v47  ;;  %v5585_v38 = vpack.c.bf16 %v1530_v15, %v1529_v7  ;;  %v5597_v7 = vpack.c.bf16 %v1536_v39, %v1535_v19  ;;  %v1537_v15 = vld [vmem:[%s7434_s1 + $0x170] sm:$0xff]  ;;  %v1830_v19 = vld [vmem:[%s7434_s1 + $0x180] sm:$0xff]  ;;  %v1831_v39 = vld [vmem:[%s7434_s1 + $0x188] sm:$0xff] }
  0x94   : > { %5578 = vmatprep.subr.bf16.mxu1 %v5577_v20 }
  0x95   : > { %4905 = vmatmul.mubr.f32.gmra.mrb[2].mxu1 %v6909_v9 }
  0x96   : > { %5249 = vmatmul.mubr.f32.gmra.mrb[18].mxu0 %v6913_v31  ;;  %4907 = vmatprep.mubr.f32.mxu1 %v6915_v36 }
  0x97   : > { %5251 = vmatprep.mubr.f32.mxu0 %v6917_v34  ;;  %5580 = vmatpush3.bf16.msra.mxu1 %v5577_v20  ;;  %v6982_v20 = vld [vmem:[#allocation2 + $0x80] sm:$0xff] }
  0x98   : > { %5582 = vmatprep.subr.bf16.mxu1 %v5581_v51  ;;  %7470 = vst [vmem:[#allocation22_spill] sm:$0xff] %v6982_v20 }
  0x99   : > { %4908 = vmatmul.mubr.f32.gmra.mrb[4].mxu1 %v6928_v32 }
  0x9a   : > { %5252 = vmatmul.mubr.f32.gmra.mrb[20].mxu0 %v6931_v2  ;;  %4910 = vmatprep.mubr.f32.mxu1 %v6933_v21 }
  0x9b   : > { %5254 = vmatprep.mubr.f32.mxu0 %v6935_v45  ;;  %5584 = vmatpush3.bf16.msra.mxu1 %v5581_v51  ;;  %v6989_v51 = vld [vmem:[#allocation2 + $0x16a] sm:$0xff] }
  0x9c   : > { %5586 = vmatprep.subr.bf16.mxu1 %v5585_v38 }
  0x9d   : > { %4911 = vmatmul.mubr.f32.gmra.mrb[6].mxu1 %v6946_v48 }
  0x9e   : > { %5255 = vmatmul.mubr.f32.gmra.mrb[22].mxu0 %v6949_v59  ;;  %4913 = vmatprep.mubr.f32.mxu1 %v6951_v17 }
  0x9f   : > { %5257 = vmatprep.mubr.f32.mxu0 %v6953_v0  ;;  %5588 = vmatpush3.bf16.msra.mxu1 %v5585_v38  ;;  %v1538_v38 = vld [vmem:[%s7434_s1 + $0x178] sm:$0xff] }
  0xa0   : > { %5590 = vmatprep.subr.bf16.mxu1 %v5589_v55  ;;  %v5601_v43 = vpack.c.bf16 %v1538_v38, %v1537_v15  ;;  %v7020_v15 = vpack.c.bf16 %v1831_v39, %v1830_v19  ;;  %v3054_v38 = vld [vmem:[%s7434_s1 + $0x390] sm:$0xff]  ;;  %v3056_v39 = vld [vmem:[%s7434_s1 + $0x3a0] sm:$0xff] }
  0xa1   : > { %4914 = vmatmul.mubr.f32.gmra.mrb[8].mxu1 %v6964_v12  ;;  %v5737_v19 = vpack.c.bf16 %v3055_v27, %v3054_v38  ;;  %v7049_v27 = vld [vmem:[#allocation2 + $0xf0] sm:$0xff] }
  0xa2   : > { %5258 = vmatmul.mubr.f32.gmra.mrb[24].mxu0 %v6967_v40  ;;  %4916 = vmatprep.mubr.f32.mxu1 %v6969_v53  ;;  %v3058_v38 = vld [vmem:[%s7434_s1 + $0x3b0] sm:$0xff] }
  0xa3   : > { %5260 = vmatprep.mubr.f32.mxu0 %v6971_v18  ;;  %5592 = vmatpush3.bf16.msra.mxu1 %v5589_v55  ;;  %v7005_v55 = vld [vmem:[#allocation2 + $0xa8] sm:$0xff] }
  0xa4   : > { %5594 = vmatprep.subr.bf16.mxu1 %v5593_v29  ;;  %7473 = vst [vmem:[#allocation25_spill] sm:$0xff] %v7005_v55 }
  0xa5   : > { %4917 = vmatmul.mubr.f32.gmra.mrb[10].mxu1 %v6982_v20 }
  0xa6   : > { %5261 = vmatmul.mubr.f32.gmra.mrb[26].mxu0 %v6985_v22  ;;  %4919 = vmatprep.mubr.f32.mxu1 %v6987_v28 }
  0xa7   : > { %5263 = vmatprep.mubr.f32.mxu0 %v6989_v51  ;;  %5596 = vmatpush3.bf16.msra.mxu1 %v5593_v29  ;;  %v4251_v29 = vld [vmem:[#allocation2 + $0x18a] sm:$0xff] }
  0xa8   : > { %5598 = vmatprep.subr.bf16.mxu1 %v5597_v7 }
  0xa9   : > { %4920 = vmatmul.mubr.f32.gmra.mrb[12].mxu1 %v7000_v57 }
  0xaa   : > { %5264 = vmatmul.mubr.f32.gmra.mrb[28].mxu0 %v7003_v3  ;;  %4922 = vmatprep.mubr.f32.mxu1 %v7005_v55 }
  0xab   : > { %5266 = vmatprep.mubr.f32.mxu0 %v4250_v52  ;;  %5600 = vmatpush3.bf16.msra.mxu1 %v5597_v7  ;;  %v7030_v52 = vld [vmem:[#allocation2 + $0xc8] sm:$0xff]  ;;  %v7033_v7 = vld [vmem:[#allocation2 + $0xd8] sm:$0xff] }
  0xac   : > { %5602 = vmatprep.subr.bf16.mxu1 %v5601_v43  ;;  %7476 = vst [vmem:[#allocation28_spill] sm:$0xff] %v7030_v52 }
  0xad   : > { %4923 = vmatmul.mubr.f32.gmra.mrb[14].mxu1 %v7016_v1 }
  0xae   : > { %5267 = vmatmul.mubr.f32.gmra.mrb[30].mxu0 %v4251_v29  ;;  %4925 = vmatprep.mubr.f32.mxu1 %v7018_v41  ;;  %v3057_v29 = vld [vmem:[%s7434_s1 + $0x3a8] sm:$0xff] }
  0xaf   : > { %5301 = vmatprep.mubr.f32.mxu0 %v6915_v36  ;;  %5604 = vmatpush3.bf16.msra.mxu1 %v5601_v43  ;;  %v5741_v43 = vpack.c.bf16 %v3057_v29, %v3056_v39  ;;  %v7063_v39 = vld [vmem:[#allocation2 + $0x108] sm:$0xff]  ;;  %v5745_v29 = vpack.c.bf16 %v3059_v63, %v3058_v38  ;;  %v5749_v63 = vpack.c.bf16 %v3061_v37, %v3060_v35  ;;  %v3062_v38 = vld [vmem:[%s7434_s1 + $0x3d0] sm:$0xff]  ;;  %v3064_v35 = vld [vmem:[%s7434_s1 + $0x3e0] sm:$0xff] }
  0xb0   : > { %5606 = vmatprep.subr.bf16.mxu1 %v7020_v15 }
  0xb1   : > { %4926 = vmatmul.mubr.f32.gmra.mrb[16].mxu1 %v7030_v52 }
  0xb2   : > { %5302 = vmatmul.mubr.f32.vlgmr.msra.gmra.mrb[0].mxu0 %v6928_v32  ;;  %4928 = vmatprep.mubr.f32.mxu1 %v7033_v7 }
  0xb3   : > { %5736 = vmatpush3.bf16.msra.mxu0 %v6880_v6  ;;  %5304 = vmatprep.mubr.f32.mxu0 %v6933_v21  ;;  %v7060_v6 = vld [vmem:[#allocation2 + $0xf8] sm:$0xff] }
  0xb4   : > { %5738 = vmatprep.subr.bf16.mxu0 %v5737_v19 }
  0xb5   : > { %4929 = vmatmul.mubr.f32.gmra.mrb[18].mxu1 %v7045_v10 }
  0xb6   : > { %5305 = vmatmul.mubr.f32.gmra.mrb[2].mxu0 %v6946_v48  ;;  %4931 = vmatprep.mubr.f32.mxu1 %v7049_v27 }
  0xb7   : > { %5307 = vmatprep.mubr.f32.mxu0 %v6951_v17  ;;  %5740 = vmatpush3.bf16.msra.mxu0 %v5737_v19  ;;  %v7077_v19 = vld [vmem:[#allocation2 + $0x120] sm:$0xff] }
  0xb8   : > { %5742 = vmatprep.subr.bf16.mxu0 %v5741_v43 }
  0xb9   : > { %4932 = vmatmul.mubr.f32.gmra.mrb[20].mxu1 %v7060_v6 }
  0xba   : > { %5308 = vmatmul.mubr.f32.gmra.mrb[4].mxu0 %v6964_v12  ;;  %4934 = vmatprep.mubr.f32.mxu1 %v7063_v39  ;;  %v3063_v12 = vld [vmem:[%s7434_s1 + $0x3d8] sm:$0xff] }
  0xbb   : > { %5310 = vmatprep.mubr.f32.mxu0 %v6969_v53  ;;  %5744 = vmatpush3.bf16.msra.mxu0 %v5741_v43  ;;  %v7088_v53 = vld [vmem:[#allocation2 + $0x128] sm:$0xff]  ;;  %v7091_v43 = vld [vmem:[#allocation2 + $0x138] sm:$0xff]  ;;  %v5753_v37 = vpack.c.bf16 %v3063_v12, %v3062_v38  ;;  %v3066_v38 = vld [vmem:[%s7434_s1 + $0x3f0] sm:$0xff] }
  0xbc   : > { %5746 = vmatprep.subr.bf16.mxu0 %v5745_v29 }
  0xbd   : > { %4935 = vmatmul.mubr.f32.gmra.mrb[22].mxu1 %v7074_v13 }
  0xbe   : > { %5311 = vmatmul.mubr.f32.gmra.mrb[6].mxu0 %v6982_v20  ;;  %4937 = vmatprep.mubr.f32.mxu1 %v7077_v19  ;;  %v3065_v20 = vld [vmem:[%s7434_s1 + $0x3e8] sm:$0xff] }
  0xbf   : > { %5313 = vmatprep.mubr.f32.mxu0 %v6987_v28  ;;  %5748 = vmatpush3.bf16.msra.mxu0 %v5745_v29  ;;  %v7102_v28 = vld [vmem:[#allocation2 + $0x140] sm:$0xff]  ;;  %v7105_v29 = vld [vmem:[#allocation2 + $0x150] sm:$0xff]  ;;  %v5757_v12 = vpack.c.bf16 %v3065_v20, %v3064_v35 }
  0xc0   : > { %5750 = vmatprep.subr.bf16.mxu0 %v5749_v63  ;;  %v3357_v35 = vld [vmem:[%s7434_s1 + $0x400] sm:$0xff] }
  0xc1   : > { %4938 = vmatmul.mubr.f32.gmra.mrb[24].mxu1 %v7088_v53 }
  0xc2   : > { %5314 = vmatmul.mubr.f32.gmra.mrb[8].mxu0 %v7000_v57  ;;  %4940 = vmatprep.mubr.f32.mxu1 %v7091_v43  ;;  %v3067_v57 = vld [vmem:[%s7434_s1 + $0x3f8] sm:$0xff] }
  0xc3   : > { %5316 = vmatprep.mubr.f32.mxu0 %v7005_v55  ;;  %5752 = vmatpush3.bf16.msra.mxu0 %v5749_v63  ;;  %v7116_v55 = vld [vmem:[#allocation2 + $0x158] sm:$0xff]  ;;  %v7119_v63 = vld [vmem:[#allocation2 + $0x168] sm:$0xff]  ;;  %v5761_v20 = vpack.c.bf16 %v3067_v57, %v3066_v38  ;;  %v1832_v38 = vld [vmem:[%s7434_s1 + $0x190] sm:$0xff] }
  0xc4   : > { %5754 = vmatprep.subr.bf16.mxu0 %v5753_v37 }
  0xc5   : > { %4941 = vmatmul.mubr.f32.gmra.mrb[26].mxu1 %v7102_v28 }
  0xc6   : > { %5317 = vmatmul.mubr.f32.gmra.mrb[10].mxu0 %v7016_v1  ;;  %4943 = vmatprep.mubr.f32.mxu1 %v7105_v29  ;;  %v3358_v1 = vld [vmem:[%s7434_s1 + $0x408] sm:$0xff] }
  0xc7   : > { %5319 = vmatprep.mubr.f32.mxu0 %v7018_v41  ;;  %5756 = vmatpush3.bf16.msra.mxu0 %v5753_v37  ;;  %v7130_v41 = vld [vmem:[#allocation2 + $0x170] sm:$0xff]  ;;  %v1491_v37 = vld [vmem:[#allocation2 + $0x2] sm:$0xff]  ;;  %v7133_v57 = vpack.c.bf16 %v3358_v1, %v3357_v35 }
  0xc8   : > { %5758 = vmatprep.subr.bf16.mxu0 %v5757_v12  ;;  %v1834_v1 = vld [vmem:[%s7434_s1 + $0x1a0] sm:$0xff]  ;;  %v1835_v35 = vld [vmem:[%s7434_s1 + $0x1a8] sm:$0xff] }
  0xc9   : > { %4944 = vmatmul.mubr.f32.gmra.mrb[28].mxu1 %v7116_v55 }
  0xca   : > { %5320 = vmatmul.mubr.f32.gmra.mrb[12].mxu0 %v7030_v52  ;;  %4946 = vmatprep.mubr.f32.mxu1 %v7119_v63  ;;  %v1833_v52 = vld [vmem:[%s7434_s1 + $0x198] sm:$0xff] }
  0xcb   : > { %5322 = vmatprep.mubr.f32.mxu0 %v7033_v7  ;;  %5760 = vmatpush3.bf16.msra.mxu0 %v5757_v12  ;;  %v5609_v12 = vpack.c.bf16 %v1833_v52, %v1832_v38  ;;  %v5613_v52 = vpack.c.bf16 %v1835_v35, %v1834_v1  ;;  %v1843_v38 = vld [vmem:[%s7434_s1 + $0x1e8] sm:$0xff]  ;;  %v1845_v1 = vld [vmem:[%s7434_s1 + $0x1f8] sm:$0xff] }
  0xcc   : > { %5762 = vmatprep.subr.bf16.mxu0 %v5761_v20 }
  0xcd   : > { %4947 = vmatmul.mubr.f32.gmra.mrb[30].mxu1 %v7130_v41 }
  0xce   : > { %5323 = vmatmul.mubr.f32.gmra.mrb[14].mxu0 %v7045_v10  ;;  %4981 = vmatprep.mubr.f32.mxu1 %v1491_v37  ;;  %v1841_v37 = vld [vmem:[%s7434_s1 + $0x1d8] sm:$0xff] }
  0xcf   : > { %5325 = vmatprep.mubr.f32.mxu0 %v7049_v27  ;;  %5764 = vmatpush3.bf16.msra.mxu0 %v5761_v20  ;;  %v1837_v20 = vld [vmem:[%s7434_s1 + $0x1b8] sm:$0xff] }
  0xd0   : > { %5766 = vmatprep.subr.bf16.mxu0 %v7133_v57 }
  0xd1   : > { %4982 = vmatmul.mubr.f32.vlgmr.msra.gmra.mrb[0].mxu1 %v1492_v62  ;;  %v1836_v62 = vld [vmem:[%s7434_s1 + $0x1b0] sm:$0xff] }
  0xd2   : > { %5326 = vmatmul.mubr.f32.gmra.mrb[16].mxu0 %v7060_v6  ;;  %5608 = vmatpush3.bf16.msra.mxu1 %v7020_v15  ;;  %v1839_v15 = vld [vmem:[%s7434_s1 + $0x1c8] sm:$0xff] }
  0xd3   : > { %4984 = vmatprep.mubr.f32.mxu1 %v6739_v16  ;;  %5328 = vmatprep.mubr.f32.mxu0 %v7063_v39  ;;  %v5617_v16 = vpack.c.bf16 %v1837_v20, %v1836_v62  ;;  %v3360_v62 = vld [vmem:[%s7434_s1 + $0x418] sm:$0xff] }
  0xd4   : > { %5610 = vmatprep.subr.bf16.mxu1 %v5609_v12 }
  0xd5   : > { %4985 = vmatmul.mubr.f32.gmra.mrb[2].mxu1 %v6757_v60  ;;  %v1838_v60 = vld [vmem:[%s7434_s1 + $0x1c0] sm:$0xff] }
  0xd6   : > { %5329 = vmatmul.mubr.f32.gmra.mrb[18].mxu0 %v7074_v13  ;;  %4987 = vmatprep.mubr.f32.mxu1 %v6759_v11  ;;  %v5621_v11 = vpack.c.bf16 %v1839_v15, %v1838_v60  ;;  %v4288_v60 = vld [vmem:[#allocation2 + $0x61] sm:$0xff] }
  0xd7   : > { %5331 = vmatprep.mubr.f32.mxu0 %v7077_v19  ;;  %5612 = vmatpush3.bf16.msra.mxu1 %v5609_v12 }
  0xd8   : > { %5614 = vmatprep.subr.bf16.mxu1 %v5613_v52 }
  0xd9   : > { %4988 = vmatmul.mubr.f32.gmra.mrb[4].mxu1 %v6773_v24  ;;  %v1840_v24 = vld [vmem:[%s7434_s1 + $0x1d0] sm:$0xff] }
  0xda   : > { %5332 = vmatmul.mubr.f32.gmra.mrb[20].mxu0 %v7088_v53  ;;  %4990 = vmatprep.mubr.f32.mxu1 %v6775_v8  ;;  %v5625_v8 = vpack.c.bf16 %v1841_v37, %v1840_v24  ;;  %v3366_v37 = vld [vmem:[%s7434_s1 + $0x448] sm:$0xff] }
  0xdb   : > { %5334 = vmatprep.mubr.f32.mxu0 %v7091_v43  ;;  %5616 = vmatpush3.bf16.msra.mxu1 %v5613_v52  ;;  %v4284_v52 = vld [vmem:[#allocation2 + $0x31] sm:$0xff] }
  0xdc   : > { %5618 = vmatprep.subr.bf16.mxu1 %v5617_v16 }
  0xdd   : > { %4991 = vmatmul.mubr.f32.gmra.mrb[6].mxu1 %v6789_v23  ;;  %v1842_v23 = vld [vmem:[%s7434_s1 + $0x1e0] sm:$0xff] }
  0xde   : > { %5335 = vmatmul.mubr.f32.gmra.mrb[22].mxu0 %v7102_v28  ;;  %4993 = vmatprep.mubr.f32.mxu1 %v6791_v14  ;;  %v7195_v14 = vld [vmem:[#allocation2 + $0x180] sm:$0xff]  ;;  %v5629_v12 = vpack.c.bf16 %v1843_v38, %v1842_v23  ;;  %v3368_v38 = vld [vmem:[%s7434_s1 + $0x458] sm:$0xff] }
  0xdf   : > { %5337 = vmatprep.mubr.f32.mxu0 %v7105_v29  ;;  %5620 = vmatpush3.bf16.msra.mxu1 %v5617_v16  ;;  %v3362_v16 = vld [vmem:[%s7434_s1 + $0x428] sm:$0xff] }
  0xe0   : > { %5622 = vmatprep.subr.bf16.mxu1 %v5621_v11 }
  0xe1   : > { %4994 = vmatmul.mubr.f32.gmra.mrb[8].mxu1 %v6807_v25  ;;  %v1844_v25 = vld [vmem:[%s7434_s1 + $0x1f0] sm:$0xff] }
  0xe2   : > { %5338 = vmatmul.mubr.f32.gmra.mrb[24].mxu0 %v7116_v55  ;;  %4996 = vmatprep.mubr.f32.mxu1 %v6810_v42  ;;  %v7207_v42 = vld [vmem:[#allocation2 + $0x188] sm:$0xff]  ;;  %v5633_v35 = vpack.c.bf16 %v1845_v1, %v1844_v25 }
  0xe3   : > { %5340 = vmatprep.mubr.f32.mxu0 %v7119_v63  ;;  %5624 = vmatpush3.bf16.msra.mxu1 %v5621_v11  ;;  %v3364_v11 = vld [vmem:[%s7434_s1 + $0x438] sm:$0xff]  ;;  %v3370_v1 = vld [vmem:[%s7434_s1 + $0x468] sm:$0xff] }
  0xe4   : > { %5626 = vmatprep.subr.bf16.mxu1 %v5625_v8 }
  0xe5   : > { %4997 = vmatmul.mubr.f32.gmra.mrb[10].mxu1 %v6825_v4  ;;  %v6095_v4 = vld [vmem:[#allocation2] sm:$0xff] }
  0xe6   : > { %5341 = vmatmul.mubr.f32.gmra.mrb[26].mxu0 %v7130_v41  ;;  %4999 = vmatprep.mubr.f32.mxu1 %v6827_v50  ;;  %v3359_v50 = vld [vmem:[%s7434_s1 + $0x410] sm:$0xff] }
  0xe7   : > { %5343 = vmatprep.mubr.f32.mxu0 %v7195_v14  ;;  %5628 = vmatpush3.bf16.msra.mxu1 %v5625_v8  ;;  %v5769_v20 = vpack.c.bf16 %v3360_v62, %v3359_v50  ;;  %v4292_v8 = vld [vmem:[#allocation2 + $0x91] sm:$0xff]  ;;  %v7270_v50 = vld [vmem:[#allocation2 + $0xd9] sm:$0xff] }
  0xe8   : > { %5630 = vmatprep.subr.bf16.mxu1 %v5629_v12 }
  0xe9   : > { %5000 = vmatmul.mubr.f32.gmra.mrb[12].mxu1 %v6844_v56  ;;  %v4285_v56 = vld [vmem:[#allocation2 + $0x39] sm:$0xff] }
  0xea   : > { %5344 = vmatmul.mubr.f32.gmra.mrb[28].mxu0 %v7207_v42  ;;  %5002 = vmatprep.mubr.f32.mxu1 %v6846_v30  ;;  %v4286_v30 = vld [vmem:[#allocation2 + $0x49] sm:$0xff] }
  0xeb   : > { %5346 = vmatprep.mubr.f32.mxu0 %v6095_v4  ;;  %5632 = vmatpush3.bf16.msra.mxu1 %v5629_v12  ;;  %v4294_v12 = vld [vmem:[#allocation2 + $0xa9] sm:$0xff] }
  0xec   : > { %5634 = vmatprep.subr.bf16.mxu1 %v5633_v35 }
  0xed   : > { %5003 = vmatmul.mubr.f32.gmra.mrb[14].mxu1 %v6860_v46  ;;  %v3361_v46 = vld [vmem:[%s7434_s1 + $0x420] sm:$0xff] }
  0xee   : > { %5347 = vmatmul.mubr.f32.gmra.mrb[30].mxu0 %v6095_v4  ;;  %5005 = vmatprep.mubr.f32.mxu1 %v6862_v26  ;;  %v4287_v26 = vld [vmem:[#allocation2 + $0x51] sm:$0xff]  ;;  %v5773_v15 = vpack.c.bf16 %v3362_v16, %v3361_v46 }
  0xef   : > { %5381 = vmatprep.mubr.f32.mxu0 %v4284_v52  ;;  %5636 = vmatpush3.bf16.msra.mxu1 %v5633_v35  ;;  %v4296_v35 = vld [vmem:[#allocation2 + $0xc1] sm:$0xff]  ;;  %v3372_v52 = vld [vmem:[%s7434_s1 + $0x478] sm:$0xff]  ;;  %v7483_v46 = vld [vmem:[#allocation15_spill] sm:$0xff] }
  0xf0   : > { %5797 = vmatprep.subr.bf16.mxu1 %v6276_v44  ;;  %v7484_v16 = vld [vmem:[#allocation24_spill] sm:$0xff] }
  0xf1   : > { %5006 = vmatmul.mubr.f32.gmra.mrb[16].mxu1 %v6876_v5  ;;  %v3363_v5 = vld [vmem:[%s7434_s1 + $0x430] sm:$0xff] }
  0xf2   : > { %5382 = vmatmul.mubr.f32.vlgmr.msra.gmra.mrb[0].mxu0 %v4285_v56  ;;  %5008 = vmatprep.mubr.f32.mxu1 %v6878_v33  ;;  %v4289_v33 = vld [vmem:[#allocation2 + $0x69] sm:$0xff]  ;;  %v5777_v24 = vpack.c.bf16 %v3364_v11, %v3363_v5  ;;  %v7277_v56 = vld [vmem:[#allocation2 + $0xf1] sm:$0xff]  ;;  %v4314_v11 = vld [vmem:[#allocation2 + $0x199] sm:$0xff] }
  0xf3   : > { %5768 = vmatpush3.bf16.msra.mxu0 %v7133_v57  ;;  %5384 = vmatprep.mubr.f32.mxu0 %v4286_v30  ;;  %v4290_v57 = vld [vmem:[#allocation2 + $0x79] sm:$0xff]  ;;  %v7480_v30 = vld [vmem:[#allocation14_spill] sm:$0xff] }
  0xf4   : > { %5770 = vmatprep.subr.bf16.mxu0 %v5769_v20 }
  0xf5   : > { %5009 = vmatmul.mubr.f32.gmra.mrb[18].mxu1 %v6893_v58  ;;  %v3365_v58 = vld [vmem:[%s7434_s1 + $0x440] sm:$0xff] }
  0xf6   : > { %5385 = vmatmul.mubr.f32.gmra.mrb[2].mxu0 %v4287_v26  ;;  %5011 = vmatprep.mubr.f32.mxu1 %v6897_v47  ;;  %v4291_v47 = vld [vmem:[#allocation2 + $0x81] sm:$0xff]  ;;  %v5781_v23 = vpack.c.bf16 %v3366_v37, %v3365_v58  ;;  %v6096_v26 = vld [vmem:[#allocation2 + $0x171] sm:$0xff] }
  0xf7   : > { %5387 = vmatprep.mubr.f32.mxu0 %v4288_v60  ;;  %5772 = vmatpush3.bf16.msra.mxu0 %v5769_v20  ;;  %v7482_v20 = vld [vmem:[#allocation23_spill] sm:$0xff]  ;;  %v7485_v60 = vld [vmem:[#allocation25_spill] sm:$0xff] }
  0xf8   : > { %5774 = vmatprep.subr.bf16.mxu0 %v5773_v15  ;;  %v7492_v37 = vld [vmem:[#allocation27_spill] sm:$0xff] }
  0xf9   : > { %5012 = vmatmul.mubr.f32.gmra.mrb[20].mxu1 %v6913_v31  ;;  %v3367_v31 = vld [vmem:[%s7434_s1 + $0x450] sm:$0xff] }
  0xfa   : > { %5388 = vmatmul.mubr.f32.gmra.mrb[4].mxu0 %v4289_v33  ;;  %5014 = vmatprep.mubr.f32.mxu1 %v6917_v34  ;;  %v4293_v34 = vld [vmem:[#allocation2 + $0x99] sm:$0xff]  ;;  %v5785_v25 = vpack.c.bf16 %v3368_v38, %v3367_v31 }
  0xfb   : > { %5390 = vmatprep.mubr.f32.mxu0 %v4290_v57  ;;  %5776 = vmatpush3.bf16.msra.mxu0 %v5773_v15  ;;  %v7486_v15 = vld [vmem:[#allocation18_spill] sm:$0xff]  ;;  %v7488_v33 = vld [vmem:[#allocation16_spill] sm:$0xff] }
  0xfc   : > { %5778 = vmatprep.subr.bf16.mxu0 %v5777_v24  ;;  %v7487_v5 = vmax.f32 %v7486_v15, 0.0  ;;  %v7489_v57 = vld [vmem:[#allocation26_spill] sm:$0xff]  ;;  %v7494_v31 = vld [vmem:[#allocation28_spill] sm:$0xff] }
  0xfd   : > { %5015 = vmatmul.mubr.f32.gmra.mrb[22].mxu1 %v6931_v2  ;;  %v3369_v2 = vld [vmem:[%s7434_s1 + $0x460] sm:$0xff] }
  0xfe   : > { %5391 = vmatmul.mubr.f32.gmra.mrb[6].mxu0 %v4291_v47  ;;  %5017 = vmatprep.mubr.f32.mxu1 %v6935_v45  ;;  %v4295_v45 = vld [vmem:[#allocation2 + $0xb1] sm:$0xff]  ;;  %v5789_v4 = vpack.c.bf16 %v3370_v1, %v3369_v2  ;;  %v4315_v47 = vld [vmem:[#allocation2 + $0x1a1] sm:$0xff] }
  0xff   : > { %5393 = vmatprep.mubr.f32.mxu0 %v4292_v8  ;;  %5780 = vmatpush3.bf16.msra.mxu0 %v5777_v24  ;;  %v7490_v24 = vld [vmem:[#allocation19_spill] sm:$0xff]  ;;  %v4317_v38 = vld [vmem:[#allocation2 + $0x3a] sm:$0xff] }
 0x100   : > { %5782 = vmatprep.subr.bf16.mxu0 %v5781_v23  ;;  %v7491_v58 = vmax.f32 %v7490_v24, 0.0  ;;  %v4316_v8 = vld [vmem:[#allocation2 + $0x32] sm:$0xff]  ;;  %v4322_v2 = vld [vmem:[#allocation2 + $0x7a] sm:$0xff] }
 0x101   : > { %5018 = vmatmul.mubr.f32.gmra.mrb[24].mxu1 %v6949_v59  ;;  %v3371_v59 = vld [vmem:[%s7434_s1 + $0x470] sm:$0xff] }
 0x102   : > { %5394 = vmatmul.mubr.f32.gmra.mrb[8].mxu0 %v4293_v34  ;;  %5020 = vmatprep.mubr.f32.mxu1 %v6953_v0  ;;  %v4297_v0 = vld [vmem:[#allocation2 + $0xc9] sm:$0xff]  ;;  %v5793_v62 = vpack.c.bf16 %v3372_v52, %v3371_v59  ;;  %v4324_v1 = vld [vmem:[#allocation2 + $0x92] sm:$0xff] }
 0x103   : > { %5396 = vmatprep.mubr.f32.mxu0 %v4294_v12  ;;  %5784 = vmatpush3.bf16.msra.mxu0 %v5781_v23  ;;  %v7493_v23 = vld [vmem:[#allocation17_spill] sm:$0xff]  ;;  %v4318_v34 = vld [vmem:[#allocation2 + $0x4a] sm:$0xff]  ;;  %v4319_v12 = vld [vmem:[#allocation2 + $0x52] sm:$0xff] }
 0x104   : > { %5786 = vmatprep.subr.bf16.mxu0 %v5785_v25  ;;  %v4342_v59 = vld [vmem:[#allocation2 + $0x16a] sm:$0xff]  ;;  %v4343_v52 = vld [vmem:[#allocation2 + $0x172] sm:$0xff] }
 0x105   : > { %5021 = vmatmul.mubr.f32.gmra.mrb[26].mxu1 %v6967_v40  ;;  %v7275_v40 = vld [vmem:[#allocation2 + $0xe1] sm:$0xff] }
 0x106   : > { %5397 = vmatmul.mubr.f32.gmra.mrb[10].mxu0 %v4295_v45  ;;  %5023 = vmatprep.mubr.f32.mxu1 %v6971_v18  ;;  %v7283_v18 = vld [vmem:[#allocation2 + $0xf9] sm:$0xff]  ;;  %v4339_v45 = vld [vmem:[#allocation2 + $0x142] sm:$0xff] }
 0x107   : > { %5399 = vmatprep.mubr.f32.mxu0 %v4296_v35  ;;  %5788 = vmatpush3.bf16.msra.mxu0 %v5785_v25  ;;  %v4320_v25 = vld [vmem:[#allocation2 + $0x62] sm:$0xff]  ;;  %v4340_v35 = vld [vmem:[#allocation2 + $0x152] sm:$0xff] }
 0x108   : > { %5790 = vmatprep.subr.bf16.mxu0 %v5789_v4 }
 0x109   : > { %5024 = vmatmul.mubr.f32.gmra.mrb[28].mxu1 %v6985_v22  ;;  %v7285_v22 = vld [vmem:[#allocation2 + $0x109] sm:$0xff] }
 0x10a   : > { %5400 = vmatmul.mubr.f32.gmra.mrb[12].mxu0 %v4297_v0  ;;  %5026 = vmatprep.mubr.f32.mxu1 %v6989_v51  ;;  %v7292_v51 = vld [vmem:[#allocation2 + $0x111] sm:$0xff]  ;;  %v4344_v0 = vld [vmem:[#allocation2 + $0x182] sm:$0xff] }
 0x10b   : > { %5402 = vmatprep.mubr.f32.mxu0 %v7270_v50  ;;  %5792 = vmatpush3.bf16.msra.mxu0 %v5789_v4  ;;  %v4341_v4 = vld [vmem:[#allocation2 + $0x15a] sm:$0xff] }
 0x10c   : > { %5794 = vmatprep.subr.bf16.mxu0 %v5793_v62 }
 0x10d   : > { %5027 = vmatmul.mubr.f32.gmra.mrb[30].mxu1 %v7003_v3  ;;  %v7479_v3 = vld [vmem:[#allocation21_spill] sm:$0xff] }
 0x10e   : > { %5403 = vmatmul.mubr.f32.gmra.mrb[14].mxu0 %v7275_v40  ;;  %5061 = vmatprep.mubr.f32.mxu1 %v6895_v61  ;;  %v7294_v61 = vld [vmem:[#allocation2 + $0x121] sm:$0xff] }
 0x10f   : > { %5405 = vmatprep.mubr.f32.mxu0 %v7277_v56  ;;  %5796 = vmatpush3.bf16.msra.mxu0 %v5793_v62  ;;  %v4345_v62 = vld [vmem:[#allocation2 + $0x18a] sm:$0xff] }
 0x111   : > { %5062 = vmatmul.mubr.f32.vlgmr.msra.gmra.mrb[0].mxu1 %v6909_v9  ;;  %v7301_v9 = vld [vmem:[#allocation2 + $0x129] sm:$0xff] }
 0x112   : > { %5406 = vmatmul.mubr.f32.gmra.mrb[16].mxu0 %v7283_v18  ;;  %5805 = vmatpush3.bf16.msra.mxu1 %v6276_v44  ;;  %v7304_v44 = vld [vmem:[#allocation2 + $0x139] sm:$0xff] }
 0x113   : > { %5064 = vmatprep.mubr.f32.mxu1 %v6915_v36  ;;  %5408 = vmatprep.mubr.f32.mxu0 %v7285_v22  ;;  %v7311_v36 = vld [vmem:[#allocation2 + $0x141] sm:$0xff] }
 0x114   : > { %5798 = vmatprep.subr.bf16.mxu1 %v6287_v49 }
 0x115   : > { %5065 = vmatmul.mubr.f32.gmra.mrb[2].mxu1 %v6928_v32  ;;  %v7314_v32 = vld [vmem:[#allocation2 + $0x151] sm:$0xff] }
 0x116   : > { %5409 = vmatmul.mubr.f32.gmra.mrb[18].mxu0 %v7292_v51  ;;  %5067 = vmatprep.mubr.f32.mxu1 %v6933_v21  ;;  %v7477_v21 = vld [vmem:[#allocation13_spill] sm:$0xff] }
 0x117   : > { %5411 = vmatprep.mubr.f32.mxu0 %v7294_v61  ;;  %5806 = vmatpush3.bf16.msra.mxu1 %v6287_v49  ;;  %v7478_v49 = vld [vmem:[#allocation20_spill] sm:$0xff] }
 0x118   : > { %5799 = vmatprep.subr.bf16.mxu1 %v6301_v54 }
 0x119   : > { %5068 = vmatmul.mubr.f32.gmra.mrb[4].mxu1 %v6946_v48  ;;  %v7321_v48 = vld [vmem:[#allocation2 + $0x159] sm:$0xff] }
 0x11a   : > { %5412 = vmatmul.mubr.f32.gmra.mrb[20].mxu0 %v7301_v9  ;;  %5070 = vmatprep.mubr.f32.mxu1 %v6951_v17  ;;  %v7324_v17 = vld [vmem:[#allocation2 + $0x169] sm:$0xff] }
 0x11b   : > { %5414 = vmatprep.mubr.f32.mxu0 %v7304_v44  ;;  %5807 = vmatpush3.bf16.msra.mxu1 %v6301_v54  ;;  %v7481_v54 = vld [vmem:[#allocation22_spill] sm:$0xff] }
 0x11c   : > { %5800 = vmatprep.subr.bf16.mxu1 %v7477_v21 }
 0x11d   : > { %5071 = vmatmul.mubr.f32.gmra.mrb[6].mxu1 %v7478_v49 }
 0x11e   : > { %5415 = vmatmul.mubr.f32.gmra.mrb[22].mxu0 %v7311_v36  ;;  %5073 = vmatprep.mubr.f32.mxu1 %v7479_v3 }
 0x11f   : > { %5417 = vmatprep.mubr.f32.mxu0 %v7314_v32  ;;  %5808 = vmatpush3.bf16.msra.mxu1 %v7477_v21 }
 0x120   : > { %5801 = vmatprep.subr.bf16.mxu1 %v7480_v30 }
 0x121   : > { %5074 = vmatmul.mubr.f32.gmra.mrb[8].mxu1 %v7481_v54 }
 0x122   : > { %5418 = vmatmul.mubr.f32.gmra.mrb[24].mxu0 %v7321_v48  ;;  %5076 = vmatprep.mubr.f32.mxu1 %v7482_v20 }
 0x123   : > { %5420 = vmatprep.mubr.f32.mxu0 %v7324_v17  ;;  %5809 = vmatpush3.bf16.msra.mxu1 %v7480_v30 }
 0x124   : > { %5802 = vmatprep.subr.bf16.mxu1 %v7483_v46 }
 0x125   : > { %5077 = vmatmul.mubr.f32.gmra.mrb[10].mxu1 %v7484_v16 }
 0x126   : > { %5421 = vmatmul.mubr.f32.gmra.mrb[26].mxu0 %v6096_v26  ;;  %5079 = vmatprep.mubr.f32.mxu1 %v7485_v60 }
 0x127   : > { %5423 = vmatprep.mubr.f32.mxu0 %v7487_v5  ;;  %5810 = vmatpush3.bf16.msra.mxu1 %v7483_v46 }
 0x128   : > { %5803 = vmatprep.subr.bf16.mxu1 %v7488_v33 }
 0x129   : > { %5080 = vmatmul.mubr.f32.gmra.mrb[12].mxu1 %v7489_v57 }
 0x12a   : > { %5424 = vmatmul.mubr.f32.gmra.mrb[28].mxu0 %v7491_v58  ;;  %5082 = vmatprep.mubr.f32.mxu1 %v7492_v37 }
 0x12b   : > { %5426 = vmatprep.mubr.f32.mxu0 %v4314_v11  ;;  %5811 = vmatpush3.bf16.msra.mxu1 %v7488_v33 }
 0x12c   : > { %5804 = vmatprep.subr.bf16.mxu1 %v7493_v23 }
 0x12d   : > { %5083 = vmatmul.mubr.f32.gmra.mrb[14].mxu1 %v7494_v31 }
 0x12e   : > { %5427 = vmatmul.mubr.f32.gmra.mrb[30].mxu0 %v4315_v47  ;;  %5085 = vmatprep.mubr.f32.mxu1 %v7033_v7  ;;  %v4321_v7 = vld [vmem:[#allocation2 + $0x6a] sm:$0xff] }
 0x12f   : > { %5461 = vmatprep.mubr.f32.mxu0 %v4316_v8  ;;  %5812 = vmatpush3.bf16.msra.mxu1 %v7493_v23 }
 0x131   : > { %5086 = vmatmul.mubr.f32.gmra.mrb[16].mxu1 %v7045_v10  ;;  %v4323_v10 = vld [vmem:[#allocation2 + $0x82] sm:$0xff] }
 0x132   : > { %5462 = vmatmul.mubr.f32.vlgmr.msra.gmra.mrb[0].mxu0 %v4317_v38  ;;  %5088 = vmatprep.mubr.f32.mxu1 %v7049_v27  ;;  %v4325_v27 = vld [vmem:[#allocation2 + $0x9a] sm:$0xff] }
 0x133   : > { %5464 = vmatprep.mubr.f32.mxu0 %v4318_v34 }
 0x135   : > { %5089 = vmatmul.mubr.f32.gmra.mrb[18].mxu1 %v7060_v6  ;;  %v4326_v6 = vld [vmem:[#allocation2 + $0xaa] sm:$0xff] }
 0x136   : > { %5465 = vmatmul.mubr.f32.gmra.mrb[2].mxu0 %v4319_v12  ;;  %5091 = vmatprep.mubr.f32.mxu1 %v7063_v39  ;;  %v4328_v39 = vld [vmem:[#allocation2 + $0xc2] sm:$0xff] }
 0x137   : > { %5467 = vmatprep.mubr.f32.mxu0 %v4320_v25 }
 0x139   : > { %5092 = vmatmul.mubr.f32.gmra.mrb[20].mxu1 %v7074_v13  ;;  %v4327_v13 = vld [vmem:[#allocation2 + $0xb2] sm:$0xff] }
 0x13a   : > { %5468 = vmatmul.mubr.f32.gmra.mrb[4].mxu0 %v4321_v7  ;;  %5094 = vmatprep.mubr.f32.mxu1 %v7077_v19  ;;  %v4330_v19 = vld [vmem:[#allocation2 + $0xda] sm:$0xff] }
 0x13b   : > { %5470 = vmatprep.mubr.f32.mxu0 %v4322_v2 }
 0x13d   : > { %5095 = vmatmul.mubr.f32.gmra.mrb[22].mxu1 %v7088_v53  ;;  %v4329_v53 = vld [vmem:[#allocation2 + $0xca] sm:$0xff] }
 0x13e   : > { %5471 = vmatmul.mubr.f32.gmra.mrb[6].mxu0 %v4323_v10  ;;  %5097 = vmatprep.mubr.f32.mxu1 %v7091_v43  ;;  %v4332_v43 = vld [vmem:[#allocation2 + $0xf2] sm:$0xff] }
 0x13f   : > { %5473 = vmatprep.mubr.f32.mxu0 %v4324_v1 }
 0x141   : > { %5098 = vmatmul.mubr.f32.gmra.mrb[24].mxu1 %v7102_v28  ;;  %v4331_v28 = vld [vmem:[#allocation2 + $0xe2] sm:$0xff] }
 0x142   : > { %5474 = vmatmul.mubr.f32.gmra.mrb[8].mxu0 %v4325_v27  ;;  %5100 = vmatprep.mubr.f32.mxu1 %v7105_v29  ;;  %v4334_v29 = vld [vmem:[#allocation2 + $0x10a] sm:$0xff] }
 0x143   : > { %5476 = vmatprep.mubr.f32.mxu0 %v4326_v6 }
 0x145   : > { %5101 = vmatmul.mubr.f32.gmra.mrb[26].mxu1 %v7116_v55  ;;  %v4333_v55 = vld [vmem:[#allocation2 + $0xfa] sm:$0xff] }
 0x146   : > { %5477 = vmatmul.mubr.f32.gmra.mrb[10].mxu0 %v4327_v13  ;;  %5103 = vmatprep.mubr.f32.mxu1 %v7119_v63  ;;  %v4336_v63 = vld [vmem:[#allocation2 + $0x122] sm:$0xff] }
 0x147   : > { %5479 = vmatprep.mubr.f32.mxu0 %v4328_v39 }
 0x149   : > { %5104 = vmatmul.mubr.f32.gmra.mrb[28].mxu1 %v7130_v41  ;;  %v4335_v41 = vld [vmem:[#allocation2 + $0x112] sm:$0xff] }
 0x14a   : > { %5480 = vmatmul.mubr.f32.gmra.mrb[12].mxu0 %v4329_v53  ;;  %5106 = vmatprep.mubr.f32.mxu1 %v7195_v14  ;;  %v4337_v14 = vld [vmem:[#allocation2 + $0x12a] sm:$0xff] }
 0x14b   : > { %5482 = vmatprep.mubr.f32.mxu0 %v4330_v19 }
 0x14d   : > { %5107 = vmatmul.mubr.f32.gmra.mrb[30].mxu1 %v7207_v42  ;;  %v4338_v42 = vld [vmem:[#allocation2 + $0x13a] sm:$0xff] }
 0x14e   : > { %5483 = vmatmul.mubr.f32.gmra.mrb[14].mxu0 %v4331_v28  ;;  %5165 = vmatprep.mubr.f32.mxu1 %v7270_v50  ;;  %v4217_v50 = vld [vmem:[#allocation2 + $0x171] sm:$0xff] }
 0x14f   : > { %5485 = vmatprep.mubr.f32.mxu0 %v4332_v43 }
 0x151   : > { %5166 = vmatmul.mubr.f32.vlgmr.msra.gmra.mrb[16].mxu1 %v7275_v40  ;;  %v4218_v40 = vld [vmem:[#allocation2 + $0x181] sm:$0xff] }
 0x152   : > { %5486 = vmatmul.mubr.f32.gmra.mrb[16].mxu0 %v4333_v55  ;;  %5168 = vmatprep.mubr.f32.mxu1 %v7277_v56  ;;  %v4346_v56 = vld [vmem:[#allocation2 + $0x19a] sm:$0xff] }
 0x153   : > { %5488 = vmatprep.mubr.f32.mxu0 %v4334_v29 }
 0x155   : > { %5169 = vmatmul.mubr.f32.gmra.mrb[18].mxu1 %v7283_v18  ;;  %v4219_v18 = vld [vmem:[#allocation2 + $0x189] sm:$0xff] }
 0x156   : > { %5489 = vmatmul.mubr.f32.gmra.mrb[18].mxu0 %v4335_v41  ;;  %5171 = vmatprep.mubr.f32.mxu1 %v7285_v22  ;;  %v4347_v22 = vld [vmem:[#allocation2 + $0x1a2] sm:$0xff] }
 0x157   : > { %5491 = vmatprep.mubr.f32.mxu0 %v4336_v63 }
 0x159   : > { %5172 = vmatmul.mubr.f32.gmra.mrb[20].mxu1 %v7292_v51 }
 0x15a   : > { %5492 = vmatmul.mubr.f32.gmra.mrb[20].mxu0 %v4337_v14  ;;  %5174 = vmatprep.mubr.f32.mxu1 %v7294_v61 }
 0x15b   : > { %5494 = vmatprep.mubr.f32.mxu0 %v4338_v42 }
 0x15d   : > { %5175 = vmatmul.mubr.f32.gmra.mrb[22].mxu1 %v7301_v9 }
 0x15e   : > { %5495 = vmatmul.mubr.f32.gmra.mrb[22].mxu0 %v4339_v45  ;;  %5177 = vmatprep.mubr.f32.mxu1 %v7304_v44 }
 0x15f   : > { %5497 = vmatprep.mubr.f32.mxu0 %v4340_v35 }
 0x161   : > { %5178 = vmatmul.mubr.f32.gmra.mrb[24].mxu1 %v7311_v36 }
 0x162   : > { %5498 = vmatmul.mubr.f32.gmra.mrb[24].mxu0 %v4341_v4  ;;  %5180 = vmatprep.mubr.f32.mxu1 %v7314_v32 }
 0x163   : > { %5500 = vmatprep.mubr.f32.mxu0 %v4342_v59 }
 0x165   : > { %5181 = vmatmul.mubr.f32.gmra.mrb[26].mxu1 %v7321_v48 }
 0x166   : > { %5501 = vmatmul.mubr.f32.gmra.mrb[26].mxu0 %v4343_v52  ;;  %5183 = vmatprep.mubr.f32.mxu1 %v7324_v17 }
 0x167   : > { %5503 = vmatprep.mubr.f32.mxu0 %v4344_v0 }
 0x169   : > { %5184 = vmatmul.mubr.f32.gmra.mrb[28].mxu1 %v4217_v50 }
 0x16a   : > { %5504 = vmatmul.mubr.f32.gmra.mrb[28].mxu0 %v4345_v62  ;;  %5186 = vmatprep.mubr.f32.mxu1 %v4218_v40 }
 0x16b   : > { %5506 = vmatprep.mubr.f32.mxu0 %v4346_v56 }
 0x16d   : > { %5187 = vmatmul.mubr.f32.gmra.mrb[30].mxu1 %v4219_v18 }
 0x16e   : > { %5507 = vmatmul.mubr.f32.gmra.mrb[30].mxu0 %v4347_v22 }
 0x1e4   : > { %v5063_v51 = vpop.f32.mrb[0].mxu1 }
 0x1e5   : > { %v1912_v61 = vpop.f32.mrb[1].mxu1 }
 0x1e8   : > { %v5066_v9 = vpop.f32.mrb[2].mxu1 }
 0x1e9   : > { %v1922_v44 = vpop.f32.mrb[3].mxu1 }
 0x1ec   : > { %v5069_v36 = vpop.f32.mrb[4].mxu1 }
 0x1ed   : > { %v1932_v32 = vpop.f32.mrb[5].mxu1 }
 0x1f0   : > { %v5072_v21 = vpop.f32.mrb[6].mxu1 }
 0x1f1   : > { %v1942_v49 = vpop.f32.mrb[7].mxu1 }
 0x1f4   : > { %v5075_v3 = vpop.f32.mrb[8].mxu1 }
 0x1f5   : > { %v1952_v48 = vpop.f32.mrb[9].mxu1 }
 0x1f8   : > { %v5078_v17 = vpop.f32.mrb[10].mxu1 }
 0x1f9   : > { %v7376_v30 = vpop.f32.mrb[11].mxu1 }
 0x1fc   : > { %v7378_v54 = vpop.f32.mrb[12].mxu1 }
 0x1fd   : > { %v7380_v20 = vpop.f32.mrb[13].mxu1 }
 0x200   : > { %v7382_v46 = vpop.f32.mrb[14].mxu1 }
 0x201   : > { %v7384_v16 = vpop.f32.mrb[15].mxu1 }
 0x205   : > { %v5463_v26 = vpop.f32.mrb[0].mxu0 }
 0x206   : > { %v5813_v60 = vadd.f32 %v5463_v26, %v5063_v51  ;;  %v3439_v15 = vpop.f32.mrb[1].mxu0 }
 0x207   : > { %v5814_v5 = vadd.f32 %v3439_v15, %v1912_v61 }
 0x208   : > { %3631 = vst [vmem:[%s6182_s27 + $0x8] sm:$0xff] %v5813_v60  ;;  %v3700_v11 = vmul.f32 %v5813_v60, %v5813_v60 }
 0x209   : > { %3630 = vst [vmem:[%s6182_s27] sm:$0xff] %v5814_v5  ;;  %v3662_v33 = vadd.f32 %v5814_v5, %v5813_v60  ;;  %v3699_v57 = vmul.f32 %v5814_v5, %v5814_v5  ;;  %v5466_v24 = vpop.f32.mrb[2].mxu0 }
 0x20a   : > { %v5815_v58 = vadd.f32 %v5466_v24, %v5066_v9  ;;  %v3449_v37 = vpop.f32.mrb[3].mxu0 }
 0x20b   : > { %v3731_v47 = vadd.f32 %v3700_v11, %v3699_v57  ;;  %v5816_v8 = vadd.f32 %v3449_v37, %v1922_v44 }
 0x20c   : > { %3633 = vst [vmem:[%s6182_s27 + $0x18] sm:$0xff] %v5815_v58  ;;  %v3702_v25 = vmul.f32 %v5815_v58, %v5815_v58 }
 0x20d   : > { %3632 = vst [vmem:[%s6182_s27 + $0x10] sm:$0xff] %v5816_v8  ;;  %v3663_v23 = vadd.f32 %v5816_v8, %v3662_v33  ;;  %v3701_v31 = vmul.f32 %v5816_v8, %v5816_v8  ;;  %v5469_v38 = vpop.f32.mrb[4].mxu0 }
 0x20e   : > { %v5817_v34 = vadd.f32 %v5469_v38, %v5069_v36  ;;  %v3459_v12 = vpop.f32.mrb[5].mxu0 }
 0x20f   : > { %v3732_v7 = vadd.f32 %v3731_v47, %v3701_v31  ;;  %v5818_v2 = vadd.f32 %v3459_v12, %v1932_v32  ;;  %v3664_v10 = vadd.f32 %v5815_v58, %v3663_v23 }
 0x210   : > { %3635 = vst [vmem:[%s6182_s27 + $0x28] sm:$0xff] %v5817_v34  ;;  %v3704_v19 = vmul.f32 %v5817_v34, %v5817_v34 }
 0x211   : > { %3634 = vst [vmem:[%s6182_s27 + $0x20] sm:$0xff] %v5818_v2  ;;  %v3665_v1 = vadd.f32 %v5818_v2, %v3664_v10  ;;  %v3703_v27 = vmul.f32 %v5818_v2, %v5818_v2  ;;  %v3733_v6 = vadd.f32 %v3732_v7, %v3702_v25  ;;  %v5472_v13 = vpop.f32.mrb[6].mxu0 }
 0x212   : > { %v5819_v39 = vadd.f32 %v5472_v13, %v5072_v21  ;;  %v3469_v53 = vpop.f32.mrb[7].mxu0 }
 0x213   : > { %v3734_v28 = vadd.f32 %v3733_v6, %v3703_v27  ;;  %v5820_v43 = vadd.f32 %v3469_v53, %v1942_v49  ;;  %v3666_v55 = vadd.f32 %v5817_v34, %v3665_v1 }
 0x214   : > { %3637 = vst [vmem:[%s6182_s27 + $0x38] sm:$0xff] %v5819_v39  ;;  %v3706_v35 = vmul.f32 %v5819_v39, %v5819_v39 }
 0x215   : > { %3636 = vst [vmem:[%s6182_s27 + $0x30] sm:$0xff] %v5820_v43  ;;  %v3667_v29 = vadd.f32 %v5820_v43, %v3666_v55  ;;  %v3705_v41 = vmul.f32 %v5820_v43, %v5820_v43  ;;  %v3735_v63 = vadd.f32 %v3734_v28, %v3704_v19  ;;  %v5475_v14 = vpop.f32.mrb[8].mxu0 }
 0x216   : > { %v5821_v42 = vadd.f32 %v5475_v14, %v5075_v3  ;;  %v3479_v45 = vpop.f32.mrb[9].mxu0 }
 0x217   : > { %v3736_v4 = vadd.f32 %v3735_v63, %v3705_v41  ;;  %v5822_v59 = vadd.f32 %v3479_v45, %v1952_v48  ;;  %v3668_v52 = vadd.f32 %v5819_v39, %v3667_v29 }
 0x218   : > { %3639 = vst [vmem:[%s6182_s27 + $0x48] sm:$0xff] %v5821_v42  ;;  %v3708_v22 = vmul.f32 %v5821_v42, %v5821_v42 }
 0x219   : > { %3638 = vst [vmem:[%s6182_s27 + $0x40] sm:$0xff] %v5822_v59  ;;  %v3669_v0 = vadd.f32 %v5822_v59, %v3668_v52  ;;  %v3707_v50 = vmul.f32 %v5822_v59, %v5822_v59  ;;  %v3737_v62 = vadd.f32 %v3736_v4, %v3706_v35  ;;  %v5478_v40 = vpop.f32.mrb[10].mxu0 }
 0x21a   : > { %v5823_v56 = vadd.f32 %v5478_v40, %v5078_v17  ;;  %v3489_v18 = vpop.f32.mrb[11].mxu0 }
 0x21b   : > { %v3738_v51 = vadd.f32 %v3737_v62, %v3707_v50  ;;  %v5824_v61 = vadd.f32 %v3489_v18, %v7376_v30  ;;  %v3670_v9 = vadd.f32 %v5821_v42, %v3669_v0 }
 0x21c   : > { %3641 = vst [vmem:[%s6182_s27 + $0x58] sm:$0xff] %v5823_v56  ;;  %v3710_v48 = vmul.f32 %v5823_v56, %v5823_v56 }
 0x21d   : > { %3640 = vst [vmem:[%s6182_s27 + $0x50] sm:$0xff] %v5824_v61  ;;  %v3671_v44 = vadd.f32 %v5824_v61, %v3670_v9  ;;  %v3709_v36 = vmul.f32 %v5824_v61, %v5824_v61  ;;  %v3739_v32 = vadd.f32 %v3738_v51, %v3708_v22  ;;  %v5481_v21 = vpop.f32.mrb[12].mxu0 }
 0x21e   : > { %v5825_v49 = vadd.f32 %v5481_v21, %v7378_v54  ;;  %v3499_v3 = vpop.f32.mrb[13].mxu0 }
 0x21f   : > { %v3740_v17 = vadd.f32 %v3739_v32, %v3709_v36  ;;  %v5826_v26 = vadd.f32 %v3499_v3, %v7380_v20  ;;  %v3672_v60 = vadd.f32 %v5823_v56, %v3671_v44 }
 0x220   : > { %3643 = vst [vmem:[%s6182_s27 + $0x68] sm:$0xff] %v5825_v49  ;;  %v3712_v24 = vmul.f32 %v5825_v49, %v5825_v49 }
 0x221   : > { %3642 = vst [vmem:[%s6182_s27 + $0x60] sm:$0xff] %v5826_v26  ;;  %v3673_v30 = vadd.f32 %v5826_v26, %v3672_v60  ;;  %v3711_v15 = vmul.f32 %v5826_v26, %v5826_v26  ;;  %v3741_v5 = vadd.f32 %v3740_v17, %v3710_v48  ;;  %v5484_v11 = vpop.f32.mrb[14].mxu0 }
 0x222   : > { %v5827_v33 = vadd.f32 %v5484_v11, %v7382_v46  ;;  %v3509_v57 = vpop.f32.mrb[15].mxu0 }
 0x223   : > { %v3742_v58 = vadd.f32 %v3741_v5, %v3711_v15  ;;  %v5828_v54 = vadd.f32 %v3509_v57, %v7384_v16  ;;  %v3674_v37 = vadd.f32 %v5825_v49, %v3673_v30 }
 0x224   : > { %3645 = vst [vmem:[%s6182_s27 + $0x78] sm:$0xff] %v5827_v33  ;;  %v5167_v20 = vpop.f32.mrb[16].mxu1  ;;  %v3714_v25 = vmul.f32 %v5827_v33, %v5827_v33 }
 0x225   : > { %3644 = vst [vmem:[%s6182_s27 + $0x70] sm:$0xff] %v5828_v54  ;;  %v3675_v47 = vadd.f32 %v5828_v54, %v3674_v37  ;;  %v3713_v8 = vmul.f32 %v5828_v54, %v5828_v54  ;;  %v3743_v23 = vadd.f32 %v3742_v58, %v3712_v24  ;;  %v5487_v31 = vpop.f32.mrb[16].mxu0  ;;  %v2297_v38 = vpop.f32.mrb[17].mxu1 }
 0x226   : > { %v5829_v34 = vadd.f32 %v5487_v31, %v5167_v20  ;;  %v3519_v12 = vpop.f32.mrb[17].mxu0 }
 0x227   : > { %v3744_v46 = vadd.f32 %v3743_v23, %v3713_v8  ;;  %v5830_v7 = vadd.f32 %v3519_v12, %v2297_v38  ;;  %v3676_v2 = vadd.f32 %v5827_v33, %v3675_v47 }
 0x228   : > { %3647 = vst [vmem:[%s6182_s27 + $0x88] sm:$0xff] %v5829_v34  ;;  %v5170_v16 = vpop.f32.mrb[18].mxu1  ;;  %v3716_v19 = vmul.f32 %v5829_v34, %v5829_v34 }
 0x229   : > { %3646 = vst [vmem:[%s6182_s27 + $0x80] sm:$0xff] %v5830_v7  ;;  %v3677_v10 = vadd.f32 %v5830_v7, %v3676_v2  ;;  %v3715_v1 = vmul.f32 %v5830_v7, %v5830_v7  ;;  %v3745_v27 = vadd.f32 %v3744_v46, %v3714_v25  ;;  %v5490_v6 = vpop.f32.mrb[18].mxu0  ;;  %v2307_v13 = vpop.f32.mrb[19].mxu1 }
 0x22a   : > { %v5831_v39 = vadd.f32 %v5490_v6, %v5170_v16  ;;  %v3529_v53 = vpop.f32.mrb[19].mxu0 }
 0x22b   : > { %v3746_v28 = vadd.f32 %v3745_v27, %v3715_v1  ;;  %v5832_v43 = vadd.f32 %v3529_v53, %v2307_v13  ;;  %v3678_v55 = vadd.f32 %v5829_v34, %v3677_v10 }
 0x22c   : > { %3649 = vst [vmem:[%s6182_s27 + $0x98] sm:$0xff] %v5831_v39  ;;  %v5173_v29 = vpop.f32.mrb[20].mxu1  ;;  %v3718_v59 = vmul.f32 %v5831_v39, %v5831_v39 }
 0x22d   : > { %3648 = vst [vmem:[%s6182_s27 + $0x90] sm:$0xff] %v5832_v43  ;;  %v3679_v41 = vadd.f32 %v5832_v43, %v3678_v55  ;;  %v3717_v63 = vmul.f32 %v5832_v43, %v5832_v43  ;;  %v3747_v14 = vadd.f32 %v3746_v28, %v3716_v19  ;;  %v5493_v42 = vpop.f32.mrb[20].mxu0  ;;  %v2317_v45 = vpop.f32.mrb[21].mxu1 }
 0x22e   : > { %v5833_v35 = vadd.f32 %v5493_v42, %v5173_v29  ;;  %v3539_v4 = vpop.f32.mrb[21].mxu0 }
 0x22f   : > { %v3748_v52 = vadd.f32 %v3747_v14, %v3717_v63  ;;  %v5834_v0 = vadd.f32 %v3539_v4, %v2317_v45  ;;  %v3680_v50 = vadd.f32 %v5831_v39, %v3679_v41 }
 0x230   : > { %3651 = vst [vmem:[%s6182_s27 + $0xa8] sm:$0xff] %v5833_v35  ;;  %v5176_v62 = vpop.f32.mrb[22].mxu1  ;;  %v3720_v44 = vmul.f32 %v5833_v35, %v5833_v35 }
 0x231   : > { %3650 = vst [vmem:[%s6182_s27 + $0xa0] sm:$0xff] %v5834_v0  ;;  %v3681_v40 = vadd.f32 %v5834_v0, %v3680_v50  ;;  %v3719_v56 = vmul.f32 %v5834_v0, %v5834_v0  ;;  %v3749_v18 = vadd.f32 %v3748_v52, %v3718_v59  ;;  %v5496_v22 = vpop.f32.mrb[22].mxu0  ;;  %v2327_v51 = vpop.f32.mrb[23].mxu1 }
 0x232   : > { %v5835_v61 = vadd.f32 %v5496_v22, %v5176_v62  ;;  %v3549_v9 = vpop.f32.mrb[23].mxu0 }
 0x233   : > { %v3750_v36 = vadd.f32 %v3749_v18, %v3719_v56  ;;  %v5836_v32 = vadd.f32 %v3549_v9, %v2327_v51  ;;  %v3682_v21 = vadd.f32 %v5833_v35, %v3681_v40 }
 0x234   : > { %3653 = vst [vmem:[%s6182_s27 + $0xb8] sm:$0xff] %v5835_v61  ;;  %v5179_v49 = vpop.f32.mrb[24].mxu1  ;;  %v3722_v5 = vmul.f32 %v5835_v61, %v5835_v61 }
 0x235   : > { %3652 = vst [vmem:[%s6182_s27 + $0xb0] sm:$0xff] %v5836_v32  ;;  %v3683_v3 = vadd.f32 %v5836_v32, %v3682_v21  ;;  %v3721_v48 = vmul.f32 %v5836_v32, %v5836_v32  ;;  %v3751_v17 = vadd.f32 %v3750_v36, %v3720_v44  ;;  %v5499_v26 = vpop.f32.mrb[24].mxu0  ;;  %v2337_v60 = vpop.f32.mrb[25].mxu1 }
 0x236   : > { %v5837_v30 = vadd.f32 %v5499_v26, %v5179_v49  ;;  %v3559_v15 = vpop.f32.mrb[25].mxu0 }
 0x237   : > { %v3752_v11 = vadd.f32 %v3751_v17, %v3721_v48  ;;  %v5838_v33 = vadd.f32 %v3559_v15, %v2337_v60  ;;  %v3684_v57 = vadd.f32 %v5835_v61, %v3683_v3 }
 0x238   : > { %3655 = vst [vmem:[%s6182_s27 + $0xc8] sm:$0xff] %v5837_v30  ;;  %v5182_v24 = vpop.f32.mrb[26].mxu1  ;;  %v3724_v31 = vmul.f32 %v5837_v30, %v5837_v30 }
 0x239   : > { %3654 = vst [vmem:[%s6182_s27 + $0xc0] sm:$0xff] %v5838_v33  ;;  %v3685_v58 = vadd.f32 %v5838_v33, %v3684_v57  ;;  %v3723_v54 = vmul.f32 %v5838_v33, %v5838_v33  ;;  %v3753_v37 = vadd.f32 %v3752_v11, %v3722_v5  ;;  %v5502_v20 = vpop.f32.mrb[26].mxu0  ;;  %v2347_v47 = vpop.f32.mrb[27].mxu1 }
 0x23a   : > { %v5839_v8 = vadd.f32 %v5502_v20, %v5182_v24  ;;  %v3569_v23 = vpop.f32.mrb[27].mxu0 }
 0x23b   : > { %v3754_v38 = vadd.f32 %v3753_v37, %v3723_v54  ;;  %v5840_v34 = vadd.f32 %v3569_v23, %v2347_v47  ;;  %v3686_v12 = vadd.f32 %v5837_v30, %v3685_v58 }
 0x23c   : > { %3657 = vst [vmem:[%s6182_s27 + $0xd8] sm:$0xff] %v5839_v8  ;;  %v5185_v25 = vpop.f32.mrb[28].mxu1  ;;  %v3726_v6 = vmul.f32 %v5839_v8, %v5839_v8 }
 0x23d   : > { %3656 = vst [vmem:[%s6182_s27 + $0xd0] sm:$0xff] %v5840_v34  ;;  %v3687_v46 = vadd.f32 %v5840_v34, %v3686_v12  ;;  %v3725_v7 = vmul.f32 %v5840_v34, %v5840_v34  ;;  %v3755_v2 = vadd.f32 %v3754_v38, %v3724_v31  ;;  %v5505_v16 = vpop.f32.mrb[28].mxu0  ;;  %v2357_v10 = vpop.f32.mrb[29].mxu1 }
 0x23e   : > { %v5841_v1 = vadd.f32 %v5505_v16, %v5185_v25  ;;  %v3579_v27 = vpop.f32.mrb[29].mxu0 }
 0x23f   : > { %v3756_v13 = vadd.f32 %v3755_v2, %v3725_v7  ;;  %v5842_v39 = vadd.f32 %v3579_v27, %v2357_v10  ;;  %v3688_v53 = vadd.f32 %v5839_v8, %v3687_v46 }
 0x240   : > { %3659 = vst [vmem:[%s6182_s27 + $0xe8] sm:$0xff] %v5841_v1  ;;  %v5188_v19 = vpop.f32.mrb[30].mxu1  ;;  %v3728_v42 = vmul.f32 %v5841_v1, %v5841_v1 }
 0x241   : > { %3658 = vst [vmem:[%s6182_s27 + $0xe0] sm:$0xff] %v5842_v39  ;;  %v3689_v28 = vadd.f32 %v5842_v39, %v3688_v53  ;;  %v3727_v43 = vmul.f32 %v5842_v39, %v5842_v39  ;;  %v3757_v55 = vadd.f32 %v3756_v13, %v3726_v6  ;;  %v5508_v29 = vpop.f32.mrb[30].mxu0  ;;  %v2367_v41 = vpop.f32.mrb[31].mxu1 }
 0x242   : > { %v5843_v63 = vadd.f32 %v5508_v29, %v5188_v19  ;;  %v3589_v14 = vpop.f32.mrb[31].mxu0 }
 0x243   : > { %v3758_v45 = vadd.f32 %v3757_v55, %v3727_v43  ;;  %v5844_v35 = vadd.f32 %v3589_v14, %v2367_v41  ;;  %v3690_v4 = vadd.f32 %v5841_v1, %v3689_v28 }
 0x244   : > { %3661 = vst [vmem:[%s6182_s27 + $0xf8] sm:$0xff] %v5843_v63  ;;  %v3730_v50 = vmul.f32 %v5843_v63, %v5843_v63 }
 0x245   : > { %3660 = vst [vmem:[%s6182_s27 + $0xf0] sm:$0xff] %v5844_v35  ;;  %v3691_v59 = vadd.f32 %v5844_v35, %v3690_v4  ;;  %v3729_v52 = vmul.f32 %v5844_v35, %v5844_v35  ;;  %v3759_v0 = vadd.f32 %v3758_v45, %v3728_v42 }
 0x247   : > { %v3692_v62 = vadd.f32 %v5843_v63, %v3691_v59  ;;  %v3760_v40 = vadd.f32 %v3759_v0, %v3729_v52 }
 0x249   : > { %v3693_v56 = vrot.slane %v3692_v62, 4  ;;  %v3761_v18 = vadd.f32 %v3760_v40, %v3730_v50 }
 0x24b   : > { %v3694_v22 = vadd.f32 %v3693_v56, %v3692_v62  ;;  %v3762_v51 = vrot.slane %v3761_v18, 4 }
 0x24d   : > { %v3695_v61 = vrot.slane %v3694_v22, 2  ;;  %v3763_v9 = vadd.f32 %v3762_v51, %v3761_v18 }
 0x24f   : > { %v3696_v44 = vadd.f32 %v3695_v61, %v3694_v22  ;;  %v3764_v36 = vrot.slane %v3763_v9, 2 }
 0x251   : > { %v3697_v32 = vrot.slane %v3696_v44, 1  ;;  %v3765_v21 = vadd.f32 %v3764_v36, %v3763_v9 }
 0x253   : > { %v3766_v49 = vrot.slane %v3765_v21, 1  ;;  %v3698_v3 = vadd.f32 %v3697_v32, %v3696_v44 }
 0x255   : > { %v3767_v48 = vadd.f32 %v3766_v49, %v3765_v21 }
 0x257   : > { %v3769_v17 = vsel %vm3768_vm0, %v3698_v3, %v3767_v48 }
 0x258   : > { %3770 = vst [vmem:[%s6187_s30] sm:$0x3] %v3769_v17 }
 0x259 PF: > { %s15_s17 = sadd.s32 1, %s6125_s17   ;;  %s7495_s15 = smov %s6121_s16 }
 0x25a   : > { %p12_p5 = scmp.ge.s32.totalorder %s15_s17, 4   ;;  %s7496_s16 = smov %s7498_s18 }
 0x25c   :  { %14 = sbr.rel (!%p12_p5) target bundleno = 2 (0x2), region = 359 }
 0x263   :  { %3823 = vsyncmov [#allocation3] }
 0x266   :  { %s3824_s27 = vpop.sfrf %3823 }
 0x267   :  { %p4350_p6 = scmp.ne.s32.totalorder %s3824_s27, 0 }
 0x269   :  { %3828 = shalt.err (%p4350_p6)  }
 0x26a   :  { %3830 = vsyncmov [#allocation3 + $0x1] }
 0x26d   :  { %s3831_s6 = vpop.sfrf %3830 }
 0x26e   :  { %p4351_p7 = scmp.ne.s32.totalorder %s3831_s6, 0 }
 0x270   :  { %3835 = shalt.err (%p4351_p7)  }
 0x271   :  { %3837 = vsyncmov [#allocation3 + $0x2] }
 0x274   :  { %s3838_s30 = vpop.sfrf %3837 }
 0x275   :  { %p4352_p8 = scmp.ne.s32.totalorder %s3838_s30, 0 }
 0x277   :  { %3842 = shalt.err (%p4352_p8)  }
 0x278   :  { %3844 = vsyncmov [#allocation3 + $0x3] }
 0x27b   :  { %s3845_s7 = vpop.sfrf %3844 }
 0x27c   :  { %p4353_p9 = scmp.ne.s32.totalorder %s3845_s7, 0 }
 0x27e   :  { %3849 = shalt.err (%p4353_p9)  }
 0x27f   :  { %3851 = vsyncmov [#allocation3 + $0x4] }
 0x282   :  { %s3852_s18 = vpop.sfrf %3851 }
 0x283   :  { %p4354_p10 = scmp.ne.s32.totalorder %s3852_s18, 0 }
 0x285   :  { %3856 = shalt.err (%p4354_p10)  }
 0x286   :  { %3858 = vsyncmov [#allocation3 + $0x5] }
 0x289   :  { %s3859_s0 = vpop.sfrf %3858 }
 0x28a   :  { %p4355_p11 = scmp.ne.s32.totalorder %s3859_s0, 0 }
 0x28c   :  { %3863 = shalt.err (%p4355_p11)  }

</bundles_post_ra>
